<compile_context>
chip_gen: v5e
topology: v5e:2x2
jax: 0.10.0
libtpu: 0.0.40
codegen_flags: <defaults>
</compile_context>

<pallas_src>
import numpy as np

import jax
import jax.numpy as jnp
from jax.experimental import pallas as pl
from jax.experimental.pallas import tpu as pltpu

LANE = 128


def _round_up(n, m=LANE):
    return ((n + m - 1) // m) * m


# ----------------------------------------------------------------------------
# Pallas kernel: whole forward pass (matmuls + ReLUs + residual adds) in-kernel.
# Params are small, fully VMEM-resident; the batch dimension is tiled by grid.
# ----------------------------------------------------------------------------
def _make_kernel(n_hidden_mlp: int, n_fc: int, bias_offsets, bias_widths):
    def kernel(x_ref, b_ref, *rest):
        out_ref = rest[-1]
        w_refs = rest[:-1]

        layer = [0]

        def linear(v, relu):
            k = layer[0]
            layer[0] = k + 1
            # Lazy, point-of-use loads: keeps weight live-ranges short.
            w = w_refs[k][...]                                          # bf16
            off, width = bias_offsets[k], bias_widths[k]
            b = b_ref[:, off:off + width]                               # f32
            y = jnp.dot(v.astype(jnp.bfloat16), w,
                        preferred_element_type=jnp.float32) + b
            return jnp.maximum(y, 0.0) if relu else y

        x = x_ref[...].astype(jnp.float32)

        # firstMLP + activation
        x = linear(x, relu=True)

        # residual hidden-MLP blocks
        for _ in range(n_hidden_mlp):
            t = linear(x, relu=True)
            t = linear(t, relu=True)
            t = linear(t, relu=False)
            t = jnp.maximum(t, 0.0)      # activation after the Sequential
            x = x + t                    # residual add (f32 on VPU)

        # firstFc + activation
        x = linear(x, relu=True)

        # hidden FC layers + activation
        for _ in range(n_fc):
            x = linear(x, relu=True)

        # finalFc (no activation)
        x = linear(x, relu=False)

        out_ref[...] = x.astype(out_ref.dtype)

    return kernel


# ----------------------------------------------------------------------------
# Wrapper: pads lanes to 128 multiples, packs biases, tiles the batch.
# ----------------------------------------------------------------------------
def decorated_resmlp_forward(x, params, *, n_hidden_mlp, n_fc, out_size,
                             batch_tile=256):
    """x: (B, inSize) float32.  params: flat list [W, b, W, b, ...] (f32)."""
    B, in_size = x.shape
    weights = params[0::2]
    biases = params[1::2]

    # Pad every layer's in/out feature dims to multiples of 128 (exact math:
    # zero rows/cols and zero bias in the padded lanes). Weights -> bf16.
    w_pad, b_pad, widths = [], [], []
    for w, b in zip(weights, biases):
        din, dout = w.shape
        dinp, doutp = _round_up(din), _round_up(dout)
        wp = jnp.zeros((dinp, doutp), jnp.float32).at[:din, :dout].set(w)
        bp = jnp.zeros((1, doutp), jnp.float32).at[:, :dout].set(
            b.reshape(1, -1))
        w_pad.append(wp.astype(jnp.bfloat16))
        b_pad.append(bp)
        widths.append(doutp)

    bias_slab = jnp.concatenate(b_pad, axis=1)          # (1, sum(widths)) f32
    offsets = [int(v) for v in np.cumsum([0] + widths[:-1])]

    in_pad = _round_up(in_size)
    out_pad = widths[-1]

    # Pad batch to a multiple of batch_tile and features to in_pad.
    Bp = _round_up(B, batch_tile)
    xp = jnp.zeros((Bp, in_pad), jnp.float32).at[:B, :in_size].set(x)

    grid = (Bp // batch_tile,)

    in_specs = [
        pl.BlockSpec((batch_tile, in_pad), lambda i: (i, 0)),   # x tile
        pl.BlockSpec(bias_slab.shape, lambda i: (0, 0)),        # bias slab
    ]
    for wp in w_pad:                                            # weights
        in_specs.append(pl.BlockSpec(wp.shape, lambda i: (0, 0)))
    out_specs = pl.BlockSpec((batch_tile, out_pad), lambda i: (i, 0))

    kernel = _make_kernel(n_hidden_mlp, n_fc, offsets, widths)
    out = pl.pallas_call(
        kernel,
        out_shape=jax.ShapeDtypeStruct((Bp, out_pad), jnp.float32),
        grid_spec=pltpu.PrefetchScalarGridSpec(
            num_scalar_prefetch=0,
            grid=grid,
            in_specs=in_specs,
            out_specs=out_specs,
        ),
        compiler_params=pltpu.CompilerParams(
            dimension_semantics=("parallel",)),   # batch axis -> megacore/v7x TCs
    )(xp, bias_slab, *w_pad)

    return out[:B, :out_size]


# ----------------------------------------------------------------------------
# Deterministic parameter construction (matches shapes in __init__)
# ----------------------------------------------------------------------------
def init_params(key, in_size, hidden, n_hidden_mlp, fc_size, n_fc, out_size):
    shapes = []
    shapes.append((in_size, 2 * hidden))                 # firstMLP
    for _ in range(n_hidden_mlp):                        # hiddenMLP blocks
        shapes.append((2 * hidden, hidden))
        shapes.append((hidden, hidden))
        shapes.append((hidden, 2 * hidden))
    shapes.append((2 * hidden, fc_size))                 # firstFc
    for _ in range(n_fc):                                # hiddenFc
        shapes.append((fc_size, fc_size))
    shapes.append((fc_size, out_size))                   # finalFc

    params = []
    for shp in shapes:
        key, kw, kb = jax.random.split(key, 3)
        fan_in = shp[0]
        bound = 1.0 / np.sqrt(fan_in)                    # PyTorch default-ish
        w = jax.random.uniform(kw, shp, jnp.float32, -bound, bound)
        b = jax.random.uniform(kb, (1, shp[1]), jnp.float32, -bound, bound)
        params += [w, b]
    return params


# ----------------------------------------------------------------------------
# Pure-JAX reference (mirrors DecoratedResMLP._networkFwd, reshape=None).
# bf16_matmul=True matches the kernel's bf16-operand / f32-accumulate math.
# ----------------------------------------------------------------------------
def reference_forward(x, params, *, n_hidden_mlp, n_fc, bf16_matmul=True):
    def lin(v, w, b):
        if bf16_matmul:
            v = v.astype(jnp.bfloat16)
            w = w.astype(jnp.bfloat16)
        return jnp.dot(v, w, preferred_element_type=jnp.float32) + b

    act = lambda v: jnp.maximum(v, 0.0)
    idx = 0

    def take():
        nonlocal idx
        w, b = params[idx], params[idx + 1]
        idx += 2
        return w, b

    w, b = take()
    x = act(lin(x, w, b))
    for _ in range(n_hidden_mlp):
        w1, b1 = take(); w2, b2 = take(); w3, b3 = take()
        t = act(lin(x, w1, b1))
        t = act(lin(t, w2, b2))
        t = act(lin(t, w3, b3))
        x = x + t
    w, b = take()
    x = act(lin(x, w, b))
    for _ in range(n_fc):
        w, b = take()
        x = act(lin(x, w, b))
    w, b = take()
    return lin(x, w, b)


if __name__ == "__main__":
    # Module-consistent config:
    #   inSize=32, hiddenSize=32 (2H=64), hiddenMLPlayers=2,
    #   fcSize=64, fcLayers=2, outSize=16, activation=ReLU, reshape=None.
    in_size, hidden, n_hidden_mlp = 32, 32, 2
    fc_size, n_fc, out_size = 64, 2, 16
    # batch=512, tile=256: M is a multiple of 256 (v6e/v7x MXU) and 128 (v5e),
    # and grid=(2,) keeps both v7x TensorCores busy.
    batch = 512

    key = jax.random.PRNGKey(0)
    key, kx = jax.random.split(key)
    x = jax.random.normal(kx, (batch, in_size), jnp.float32)
    params = init_params(key, in_size, hidden, n_hidden_mlp,
                         fc_size, n_fc, out_size)

    out = decorated_resmlp_forward(
        x, params, n_hidden_mlp=n_hidden_mlp, n_fc=n_fc,
        out_size=out_size, batch_tile=256)
    out = jax.block_until_ready(out)

    ref = reference_forward(x, params, n_hidden_mlp=n_hidden_mlp, n_fc=n_fc,
                            bf16_matmul=True)
    np.testing.assert_allclose(np.asarray(out), np.asarray(ref),
                               rtol=1e-2, atol=1e-2)

    print("KERNEL_OK")
</pallas_src>

<mosaic_0001>
module attributes {stable_mosaic.version = 11 : i64} {
  func.func @kernel(%arg0: i32, %arg1: memref<256x128xf32, #tpu.memory_space<vmem>>, %arg2: memref<1x1408xf32, #tpu.memory_space<vmem>>, %arg3: memref<128x128xbf16, #tpu.memory_space<vmem>>, %arg4: memref<128x128xbf16, #tpu.memory_space<vmem>>, %arg5: memref<128x128xbf16, #tpu.memory_space<vmem>>, %arg6: memref<128x128xbf16, #tpu.memory_space<vmem>>, %arg7: memref<128x128xbf16, #tpu.memory_space<vmem>>, %arg8: memref<128x128xbf16, #tpu.memory_space<vmem>>, %arg9: memref<128x128xbf16, #tpu.memory_space<vmem>>, %arg10: memref<128x128xbf16, #tpu.memory_space<vmem>>, %arg11: memref<128x128xbf16, #tpu.memory_space<vmem>>, %arg12: memref<128x128xbf16, #tpu.memory_space<vmem>>, %arg13: memref<128x128xbf16, #tpu.memory_space<vmem>>, %arg14: memref<256x128xf32, #tpu.memory_space<vmem>>) attributes {dimension_semantics = [#tpu.dimension_semantics<parallel>], iteration_bounds = array<i64: 2>, scalar_prefetch = 0 : i64, scratch_operands = 0 : i64, tpu.core_type = #tpu.core_type<tc>, window_params = [{transform_indices = @transform_0, window_bounds = array<i64: 256, 128>}, {pipeline_mode = #tpu.pipeline_mode<synchronous>, transform_indices = @transform_1, window_bounds = array<i64: 1, 1408>}, {pipeline_mode = #tpu.pipeline_mode<synchronous>, transform_indices = @transform_2, window_bounds = array<i64: 128, 128>}, {pipeline_mode = #tpu.pipeline_mode<synchronous>, transform_indices = @transform_3, window_bounds = array<i64: 128, 128>}, {pipeline_mode = #tpu.pipeline_mode<synchronous>, transform_indices = @transform_4, window_bounds = array<i64: 128, 128>}, {pipeline_mode = #tpu.pipeline_mode<synchronous>, transform_indices = @transform_5, window_bounds = array<i64: 128, 128>}, {pipeline_mode = #tpu.pipeline_mode<synchronous>, transform_indices = @transform_6, window_bounds = array<i64: 128, 128>}, {pipeline_mode = #tpu.pipeline_mode<synchronous>, transform_indices = @transform_7, window_bounds = array<i64: 128, 128>}, {pipeline_mode = #tpu.pipeline_mode<synchronous>, transform_indices = @transform_8, window_bounds = array<i64: 128, 128>}, {pipeline_mode = #tpu.pipeline_mode<synchronous>, transform_indices = @transform_9, window_bounds = array<i64: 128, 128>}, {pipeline_mode = #tpu.pipeline_mode<synchronous>, transform_indices = @transform_10, window_bounds = array<i64: 128, 128>}, {pipeline_mode = #tpu.pipeline_mode<synchronous>, transform_indices = @transform_11, window_bounds = array<i64: 128, 128>}, {pipeline_mode = #tpu.pipeline_mode<synchronous>, transform_indices = @transform_12, window_bounds = array<i64: 128, 128>}, {transform_indices = @transform_13, window_bounds = array<i64: 256, 128>}]} {
    %c0 = arith.constant 0 : index
    %c0_0 = arith.constant 0 : index
    %0 = vector.load %arg1[%c0, %c0_0] : memref<256x128xf32, #tpu.memory_space<vmem>>, vector<256x128xf32>
    %c0_1 = arith.constant 0 : index
    %c0_2 = arith.constant 0 : index
    %1 = vector.load %arg3[%c0_1, %c0_2] : memref<128x128xbf16, #tpu.memory_space<vmem>>, vector<128x128xbf16>
    %c0_3 = arith.constant 0 : index
    %c0_4 = arith.constant 0 : index
    %2 = vector.load %arg2[%c0_3, %c0_4] : memref<1x1408xf32, #tpu.memory_space<vmem>>, vector<1x128xf32>
    %3 = arith.truncf %0 : vector<256x128xf32> to vector<256x128xbf16>
    %cst = arith.constant dense<0.000000e+00> : vector<256x128xf32>
    %4 = tpu.matmul %3, %1, %cst {dimension_numbers = #tpu.dot_dimension_numbers<[1], [0], [0], [1], [0, 0, 1, 1], [], []>} : vector<256x128xbf16>, vector<128x128xbf16>, vector<256x128xf32> -> vector<256x128xf32>
    %5 = vector.broadcast %2 : vector<1x128xf32> to vector<256x128xf32>
    %6 = arith.addf %4, %5 : vector<256x128xf32>
    %cst_5 = arith.constant 0.000000e+00 : f32
    %7 = vector.broadcast %cst_5 : f32 to vector<256x128xf32>
    %8 = arith.maximumf %6, %7 : vector<256x128xf32>
    %c0_6 = arith.constant 0 : index
    %c0_7 = arith.constant 0 : index
    %9 = vector.load %arg4[%c0_6, %c0_7] : memref<128x128xbf16, #tpu.memory_space<vmem>>, vector<128x128xbf16>
    %c0_8 = arith.constant 0 : index
    %c128 = arith.constant 128 : index
    %10 = vector.load %arg2[%c0_8, %c128] : memref<1x1408xf32, #tpu.memory_space<vmem>>, vector<1x128xf32>
    %11 = arith.truncf %8 : vector<256x128xf32> to vector<256x128xbf16>
    %cst_9 = arith.constant dense<0.000000e+00> : vector<256x128xf32>
    %12 = tpu.matmul %11, %9, %cst_9 {dimension_numbers = #tpu.dot_dimension_numbers<[1], [0], [0], [1], [0, 0, 1, 1], [], []>} : vector<256x128xbf16>, vector<128x128xbf16>, vector<256x128xf32> -> vector<256x128xf32>
    %13 = vector.broadcast %10 : vector<1x128xf32> to vector<256x128xf32>
    %14 = arith.addf %12, %13 : vector<256x128xf32>
    %cst_10 = arith.constant 0.000000e+00 : f32
    %15 = vector.broadcast %cst_10 : f32 to vector<256x128xf32>
    %16 = arith.maximumf %14, %15 : vector<256x128xf32>
    %c0_11 = arith.constant 0 : index
    %c0_12 = arith.constant 0 : index
    %17 = vector.load %arg5[%c0_11, %c0_12] : memref<128x128xbf16, #tpu.memory_space<vmem>>, vector<128x128xbf16>
    %c0_13 = arith.constant 0 : index
    %c256 = arith.constant 256 : index
    %18 = vector.load %arg2[%c0_13, %c256] : memref<1x1408xf32, #tpu.memory_space<vmem>>, vector<1x128xf32>
    %19 = arith.truncf %16 : vector<256x128xf32> to vector<256x128xbf16>
    %cst_14 = arith.constant dense<0.000000e+00> : vector<256x128xf32>
    %20 = tpu.matmul %19, %17, %cst_14 {dimension_numbers = #tpu.dot_dimension_numbers<[1], [0], [0], [1], [0, 0, 1, 1], [], []>} : vector<256x128xbf16>, vector<128x128xbf16>, vector<256x128xf32> -> vector<256x128xf32>
    %21 = vector.broadcast %18 : vector<1x128xf32> to vector<256x128xf32>
    %22 = arith.addf %20, %21 : vector<256x128xf32>
    %cst_15 = arith.constant 0.000000e+00 : f32
    %23 = vector.broadcast %cst_15 : f32 to vector<256x128xf32>
    %24 = arith.maximumf %22, %23 : vector<256x128xf32>
    %c0_16 = arith.constant 0 : index
    %c0_17 = arith.constant 0 : index
    %25 = vector.load %arg6[%c0_16, %c0_17] : memref<128x128xbf16, #tpu.memory_space<vmem>>, vector<128x128xbf16>
    %c0_18 = arith.constant 0 : index
    %c384 = arith.constant 384 : index
    %26 = vector.load %arg2[%c0_18, %c384] : memref<1x1408xf32, #tpu.memory_space<vmem>>, vector<1x128xf32>
    %27 = arith.truncf %24 : vector<256x128xf32> to vector<256x128xbf16>
    %cst_19 = arith.constant dense<0.000000e+00> : vector<256x128xf32>
    %28 = tpu.matmul %27, %25, %cst_19 {dimension_numbers = #tpu.dot_dimension_numbers<[1], [0], [0], [1], [0, 0, 1, 1], [], []>} : vector<256x128xbf16>, vector<128x128xbf16>, vector<256x128xf32> -> vector<256x128xf32>
    %29 = vector.broadcast %26 : vector<1x128xf32> to vector<256x128xf32>
    %30 = arith.addf %28, %29 : vector<256x128xf32>
    %cst_20 = arith.constant 0.000000e+00 : f32
    %31 = vector.broadcast %cst_20 : f32 to vector<256x128xf32>
    %32 = arith.maximumf %30, %31 : vector<256x128xf32>
    %33 = arith.addf %8, %32 : vector<256x128xf32>
    %c0_21 = arith.constant 0 : index
    %c0_22 = arith.constant 0 : index
    %34 = vector.load %arg7[%c0_21, %c0_22] : memref<128x128xbf16, #tpu.memory_space<vmem>>, vector<128x128xbf16>
    %c0_23 = arith.constant 0 : index
    %c512 = arith.constant 512 : index
    %35 = vector.load %arg2[%c0_23, %c512] : memref<1x1408xf32, #tpu.memory_space<vmem>>, vector<1x128xf32>
    %36 = arith.truncf %33 : vector<256x128xf32> to vector<256x128xbf16>
    %cst_24 = arith.constant dense<0.000000e+00> : vector<256x128xf32>
    %37 = tpu.matmul %36, %34, %cst_24 {dimension_numbers = #tpu.dot_dimension_numbers<[1], [0], [0], [1], [0, 0, 1, 1], [], []>} : vector<256x128xbf16>, vector<128x128xbf16>, vector<256x128xf32> -> vector<256x128xf32>
    %38 = vector.broadcast %35 : vector<1x128xf32> to vector<256x128xf32>
    %39 = arith.addf %37, %38 : vector<256x128xf32>
    %cst_25 = arith.constant 0.000000e+00 : f32
    %40 = vector.broadcast %cst_25 : f32 to vector<256x128xf32>
    %41 = arith.maximumf %39, %40 : vector<256x128xf32>
    %c0_26 = arith.constant 0 : index
    %c0_27 = arith.constant 0 : index
    %42 = vector.load %arg8[%c0_26, %c0_27] : memref<128x128xbf16, #tpu.memory_space<vmem>>, vector<128x128xbf16>
    %c0_28 = arith.constant 0 : index
    %c640 = arith.constant 640 : index
    %43 = vector.load %arg2[%c0_28, %c640] : memref<1x1408xf32, #tpu.memory_space<vmem>>, vector<1x128xf32>
    %44 = arith.truncf %41 : vector<256x128xf32> to vector<256x128xbf16>
    %cst_29 = arith.constant dense<0.000000e+00> : vector<256x128xf32>
    %45 = tpu.matmul %44, %42, %cst_29 {dimension_numbers = #tpu.dot_dimension_numbers<[1], [0], [0], [1], [0, 0, 1, 1], [], []>} : vector<256x128xbf16>, vector<128x128xbf16>, vector<256x128xf32> -> vector<256x128xf32>
    %46 = vector.broadcast %43 : vector<1x128xf32> to vector<256x128xf32>
    %47 = arith.addf %45, %46 : vector<256x128xf32>
    %cst_30 = arith.constant 0.000000e+00 : f32
    %48 = vector.broadcast %cst_30 : f32 to vector<256x128xf32>
    %49 = arith.maximumf %47, %48 : vector<256x128xf32>
    %c0_31 = arith.constant 0 : index
    %c0_32 = arith.constant 0 : index
    %50 = vector.load %arg9[%c0_31, %c0_32] : memref<128x128xbf16, #tpu.memory_space<vmem>>, vector<128x128xbf16>
    %c0_33 = arith.constant 0 : index
    %c768 = arith.constant 768 : index
    %51 = vector.load %arg2[%c0_33, %c768] : memref<1x1408xf32, #tpu.memory_space<vmem>>, vector<1x128xf32>
    %52 = arith.truncf %49 : vector<256x128xf32> to vector<256x128xbf16>
    %cst_34 = arith.constant dense<0.000000e+00> : vector<256x128xf32>
    %53 = tpu.matmul %52, %50, %cst_34 {dimension_numbers = #tpu.dot_dimension_numbers<[1], [0], [0], [1], [0, 0, 1, 1], [], []>} : vector<256x128xbf16>, vector<128x128xbf16>, vector<256x128xf32> -> vector<256x128xf32>
    %54 = vector.broadcast %51 : vector<1x128xf32> to vector<256x128xf32>
    %55 = arith.addf %53, %54 : vector<256x128xf32>
    %cst_35 = arith.constant 0.000000e+00 : f32
    %56 = vector.broadcast %cst_35 : f32 to vector<256x128xf32>
    %57 = arith.maximumf %55, %56 : vector<256x128xf32>
    %58 = arith.addf %33, %57 : vector<256x128xf32>
    %c0_36 = arith.constant 0 : index
    %c0_37 = arith.constant 0 : index
    %59 = vector.load %arg10[%c0_36, %c0_37] : memref<128x128xbf16, #tpu.memory_space<vmem>>, vector<128x128xbf16>
    %c0_38 = arith.constant 0 : index
    %c896 = arith.constant 896 : index
    %60 = vector.load %arg2[%c0_38, %c896] : memref<1x1408xf32, #tpu.memory_space<vmem>>, vector<1x128xf32>
    %61 = arith.truncf %58 : vector<256x128xf32> to vector<256x128xbf16>
    %cst_39 = arith.constant dense<0.000000e+00> : vector<256x128xf32>
    %62 = tpu.matmul %61, %59, %cst_39 {dimension_numbers = #tpu.dot_dimension_numbers<[1], [0], [0], [1], [0, 0, 1, 1], [], []>} : vector<256x128xbf16>, vector<128x128xbf16>, vector<256x128xf32> -> vector<256x128xf32>
    %63 = vector.broadcast %60 : vector<1x128xf32> to vector<256x128xf32>
    %64 = arith.addf %62, %63 : vector<256x128xf32>
    %cst_40 = arith.constant 0.000000e+00 : f32
    %65 = vector.broadcast %cst_40 : f32 to vector<256x128xf32>
    %66 = arith.maximumf %64, %65 : vector<256x128xf32>
    %c0_41 = arith.constant 0 : index
    %c0_42 = arith.constant 0 : index
    %67 = vector.load %arg11[%c0_41, %c0_42] : memref<128x128xbf16, #tpu.memory_space<vmem>>, vector<128x128xbf16>
    %c0_43 = arith.constant 0 : index
    %c1024 = arith.constant 1024 : index
    %68 = vector.load %arg2[%c0_43, %c1024] : memref<1x1408xf32, #tpu.memory_space<vmem>>, vector<1x128xf32>
    %69 = arith.truncf %66 : vector<256x128xf32> to vector<256x128xbf16>
    %cst_44 = arith.constant dense<0.000000e+00> : vector<256x128xf32>
    %70 = tpu.matmul %69, %67, %cst_44 {dimension_numbers = #tpu.dot_dimension_numbers<[1], [0], [0], [1], [0, 0, 1, 1], [], []>} : vector<256x128xbf16>, vector<128x128xbf16>, vector<256x128xf32> -> vector<256x128xf32>
    %71 = vector.broadcast %68 : vector<1x128xf32> to vector<256x128xf32>
    %72 = arith.addf %70, %71 : vector<256x128xf32>
    %cst_45 = arith.constant 0.000000e+00 : f32
    %73 = vector.broadcast %cst_45 : f32 to vector<256x128xf32>
    %74 = arith.maximumf %72, %73 : vector<256x128xf32>
    %c0_46 = arith.constant 0 : index
    %c0_47 = arith.constant 0 : index
    %75 = vector.load %arg12[%c0_46, %c0_47] : memref<128x128xbf16, #tpu.memory_space<vmem>>, vector<128x128xbf16>
    %c0_48 = arith.constant 0 : index
    %c1152 = arith.constant 1152 : index
    %76 = vector.load %arg2[%c0_48, %c1152] : memref<1x1408xf32, #tpu.memory_space<vmem>>, vector<1x128xf32>
    %77 = arith.truncf %74 : vector<256x128xf32> to vector<256x128xbf16>
    %cst_49 = arith.constant dense<0.000000e+00> : vector<256x128xf32>
    %78 = tpu.matmul %77, %75, %cst_49 {dimension_numbers = #tpu.dot_dimension_numbers<[1], [0], [0], [1], [0, 0, 1, 1], [], []>} : vector<256x128xbf16>, vector<128x128xbf16>, vector<256x128xf32> -> vector<256x128xf32>
    %79 = vector.broadcast %76 : vector<1x128xf32> to vector<256x128xf32>
    %80 = arith.addf %78, %79 : vector<256x128xf32>
    %cst_50 = arith.constant 0.000000e+00 : f32
    %81 = vector.broadcast %cst_50 : f32 to vector<256x128xf32>
    %82 = arith.maximumf %80, %81 : vector<256x128xf32>
    %c0_51 = arith.constant 0 : index
    %c0_52 = arith.constant 0 : index
    %83 = vector.load %arg13[%c0_51, %c0_52] : memref<128x128xbf16, #tpu.memory_space<vmem>>, vector<128x128xbf16>
    %c0_53 = arith.constant 0 : index
    %c1280 = arith.constant 1280 : index
    %84 = vector.load %arg2[%c0_53, %c1280] : memref<1x1408xf32, #tpu.memory_space<vmem>>, vector<1x128xf32>
    %85 = arith.truncf %82 : vector<256x128xf32> to vector<256x128xbf16>
    %cst_54 = arith.constant dense<0.000000e+00> : vector<256x128xf32>
    %86 = tpu.matmul %85, %83, %cst_54 {dimension_numbers = #tpu.dot_dimension_numbers<[1], [0], [0], [1], [0, 0, 1, 1], [], []>} : vector<256x128xbf16>, vector<128x128xbf16>, vector<256x128xf32> -> vector<256x128xf32>
    %87 = vector.broadcast %84 : vector<1x128xf32> to vector<256x128xf32>
    %88 = arith.addf %86, %87 : vector<256x128xf32>
    %c0_55 = arith.constant 0 : index
    %c0_56 = arith.constant 0 : index
    %89 = vector.load %arg14[%c0_55, %c0_56] : memref<256x128xf32, #tpu.memory_space<vmem>>, vector<256x128xf32>
    tpu.vector_store %arg14[%c0_55, %c0_56], %88 {strides = array<i32>} : memref<256x128xf32, #tpu.memory_space<vmem>>, vector<256x128xf32>,
    return
  }
  func.func @transform_0(%arg0: i32) -> (i32, i32) {
    %c0_i32 = arith.constant 0 : i32
    %c0_i32_0 = arith.constant 0 : i32
    return %arg0, %c0_i32 : i32, i32
  }
  func.func @transform_1(%arg0: i32) -> (i32, i32) {
    %c0_i32 = arith.constant 0 : i32
    %c0_i32_0 = arith.constant 0 : i32
    %c0_i32_1 = arith.constant 0 : i32
    return %c0_i32, %c0_i32_0 : i32, i32
  }
  func.func @transform_2(%arg0: i32) -> (i32, i32) {
    %c0_i32 = arith.constant 0 : i32
    %c0_i32_0 = arith.constant 0 : i32
    %c0_i32_1 = arith.constant 0 : i32
    return %c0_i32, %c0_i32_0 : i32, i32
  }
  func.func @transform_3(%arg0: i32) -> (i32, i32) {
    %c0_i32 = arith.constant 0 : i32
    %c0_i32_0 = arith.constant 0 : i32
    %c0_i32_1 = arith.constant 0 : i32
    return %c0_i32, %c0_i32_0 : i32, i32
  }
  func.func @transform_4(%arg0: i32) -> (i32, i32) {
    %c0_i32 = arith.constant 0 : i32
    %c0_i32_0 = arith.constant 0 : i32
    %c0_i32_1 = arith.constant 0 : i32
    return %c0_i32, %c0_i32_0 : i32, i32
  }
  func.func @transform_5(%arg0: i32) -> (i32, i32) {
    %c0_i32 = arith.constant 0 : i32
    %c0_i32_0 = arith.constant 0 : i32
    %c0_i32_1 = arith.constant 0 : i32
    return %c0_i32, %c0_i32_0 : i32, i32
  }
  func.func @transform_6(%arg0: i32) -> (i32, i32) {
    %c0_i32 = arith.constant 0 : i32
    %c0_i32_0 = arith.constant 0 : i32
    %c0_i32_1 = arith.constant 0 : i32
    return %c0_i32, %c0_i32_0 : i32, i32
  }
  func.func @transform_7(%arg0: i32) -> (i32, i32) {
    %c0_i32 = arith.constant 0 : i32
    %c0_i32_0 = arith.constant 0 : i32
    %c0_i32_1 = arith.constant 0 : i32
    return %c0_i32, %c0_i32_0 : i32, i32
  }
  func.func @transform_8(%arg0: i32) -> (i32, i32) {
    %c0_i32 = arith.constant 0 : i32
    %c0_i32_0 = arith.constant 0 : i32
    %c0_i32_1 = arith.constant 0 : i32
    return %c0_i32, %c0_i32_0 : i32, i32
  }
  func.func @transform_9(%arg0: i32) -> (i32, i32) {
    %c0_i32 = arith.constant 0 : i32
    %c0_i32_0 = arith.constant 0 : i32
    %c0_i32_1 = arith.constant 0 : i32
    return %c0_i32, %c0_i32_0 : i32, i32
  }
  func.func @transform_10(%arg0: i32) -> (i32, i32) {
    %c0_i32 = arith.constant 0 : i32
    %c0_i32_0 = arith.constant 0 : i32
    %c0_i32_1 = arith.constant 0 : i32
    return %c0_i32, %c0_i32_0 : i32, i32
  }
  func.func @transform_11(%arg0: i32) -> (i32, i32) {
    %c0_i32 = arith.constant 0 : i32
    %c0_i32_0 = arith.constant 0 : i32
    %c0_i32_1 = arith.constant 0 : i32
    return %c0_i32, %c0_i32_0 : i32, i32
  }
  func.func @transform_12(%arg0: i32) -> (i32, i32) {
    %c0_i32 = arith.constant 0 : i32
    %c0_i32_0 = arith.constant 0 : i32
    %c0_i32_1 = arith.constant 0 : i32
    return %c0_i32, %c0_i32_0 : i32, i32
  }
  func.func @transform_13(%arg0: i32) -> (i32, i32) {
    %c0_i32 = arith.constant 0 : i32
    %c0_i32_0 = arith.constant 0 : i32
    return %arg0, %c0_i32 : i32, i32
  }
}

</mosaic_0001>

<bundles_post_ra>
// kernel: tpu_custom_call.1
= control target key start
LH: loop header
LB: loop body
LE: loop exit
PB: predicated region body
PF: predicated region fallthrough
CT: control target
= control target key end

     0   :  { %s5550_s0 = inlined_call_operand.hbm [shape: f32[512,128], index: 0, kind: input, shape index: {}]   ;;  %s5551_s1 = inlined_call_operand.hbm [shape: f32[1,1408], index: 1, kind: input, shape index: {}]   ;;  %s5552_s2 = inlined_call_operand.hbm [shape: bf16[128,128], index: 2, kind: input, shape index: {}]   ;;  %s5553_s3 = inlined_call_operand.hbm [shape: bf16[128,128], index: 3, kind: input, shape index: {}]   ;;  %s5554_s4 = inlined_call_operand.hbm [shape: bf16[128,128], index: 4, kind: input, shape index: {}]   ;;  %s5555_s5 = inlined_call_operand.hbm [shape: bf16[128,128], index: 5, kind: input, shape index: {}]   ;;  %s5556_s6 = inlined_call_operand.hbm [shape: bf16[128,128], index: 6, kind: input, shape index: {}]   ;;  %s5557_s7 = inlined_call_operand.hbm [shape: bf16[128,128], index: 7, kind: input, shape index: {}]   ;;  %s5558_s8 = inlined_call_operand.hbm [shape: bf16[128,128], index: 8, kind: input, shape index: {}]   ;;  %s5559_s9 = inlined_call_operand.hbm [shape: bf16[128,128], index: 9, kind: input, shape index: {}]   ;;  %s5560_s10 = inlined_call_operand.hbm [shape: bf16[128,128], index: 10, kind: input, shape index: {}]   ;;  %s5561_s11 = inlined_call_operand.hbm [shape: bf16[128,128], index: 11, kind: input, shape index: {}]   ;;  %s5562_s12 = inlined_call_operand.hbm [shape: bf16[128,128], index: 12, kind: input, shape index: {}]   ;;  %s5563_s13 = inlined_call_operand.hbm [shape: f32[512,128], index: 13, kind: output, shape index: {}]  }
   0x1   :  { %5590 = sst [smem:[#allocation32_spill]] %s5551_s1 }
   0x2   :  { %5591 = sst [smem:[#allocation33_spill]] %s5552_s2 }
   0x3   :  { %5592 = sst [smem:[#allocation34_spill]] %s5553_s3 }
   0x4   :  { %5593 = sst [smem:[#allocation35_spill]] %s5554_s4 }
   0x5   :  { %5594 = sst [smem:[#allocation36_spill]] %s5555_s5 }
   0x6   :  { %5595 = sst [smem:[#allocation37_spill]] %s5556_s6 }
   0x7   :  { %5596 = sst [smem:[#allocation38_spill]] %s5557_s7 }
   0x8   :  { %5597 = sst [smem:[#allocation39_spill]] %s5563_s13 }
   0x9   :  { %18 = vsyncpa [#allocation3], 0 }
   0xa   :  { %20 = vsyncpa [#allocation3 + $0x1], 0 }
   0xb   :  { %21 = vsyncpa [#allocation6], 0 }
   0xc   :  { %22 = vsyncpa [#allocation9], 0 }
   0xd   :  { %23 = vsyncpa [#allocation12], 0 }
   0xe   :  { %24 = vsyncpa [#allocation15], 0 }
   0xf   :  { %25 = vsyncpa [#allocation18], 0 }
  0x10   :  { %26 = vsyncpa [#allocation21], 0 }
  0x11   :  { %27 = vsyncpa [#allocation4], 0 }
  0x12   :  { %29 = vsyncpa [#allocation4 + $0x1], 0  ;;  %s4471_s25 = smov 0   ;;  %s4473_s26 = smov 0  }
  0x13   :  { %s4475_s27 = smov 0   ;;  %s4477_s28 = smov 0  }
  0x14 LB: > { %s5598_s1 = sld [smem:[#allocation32_spill]]  ;;  %s4495_s15 = sadd.s32 4294967295, %s4381_s28   ;;  %s4381_s28 = sphi %s4477_s28, %s5642_s28   ;;  %s4377_s27 = sphi %s4475_s27, %s5641_s27   ;;  %s4373_s26 = sphi %s4473_s26, %s5640_s26   ;;  %s4369_s25 = sphi %s4471_s25, %s5639_s25  }
  0x15   : > { %p3214_p0 = scmp.ge.s32.totalorder %s4381_s28, 1  ;;  %p56_p1 = scmp.eq.s32.totalorder %s4495_s15, 0 }
  0x16   : > { %p344_p2 = scmp.lt.s32.totalorder %s4381_s28, 3  ;;  %s4383_s17 = smov [#allocation5]  }
  0x17   : > { %s358_s18 = sshll.u32 %s4383_s17, 4  ;;  %s5600_s3 = sld [smem:[#allocation34_spill]]  ;;  %s359_s18 = int_to_ptr.vmem [resolvable:$true] %s358_s18 }
  0x18   : > { %p4500_p3 = pnand %p3214_p0, %p344_p2  ;;  %s5602_s5 = sld [smem:[#allocation36_spill]] }
  0x19   : > { %s4384_s30 = smov [#allocation8]   ;;  %s4385_s19 = smov 64  }
  0x1a   : > { %s356_s14 = sshll.u32 %s5598_s1, 4  ;;  %p3769_p5 = pneg %p4500_p3  ;;  %s357_s14 = int_to_ptr.hbm [resolvable:$true] %s356_s14 }
  0x1b   : > { %s383_s17 = sshll.u32 %s4384_s30, 4  ;;  %s4386_s20 = smov 4   ;;  %s384_s17 = int_to_ptr.vmem [resolvable:$true] %s383_s17 }
  0x1c   : > { %p4512_p6 = pnand %p3769_p5, %p56_p1  ;;  %s5603_s7 = sld [smem:[#allocation38_spill]] }
  0x1d   : > { %s381_s21 = sshll.u32 %s5600_s3, 4  ;;  %s4387_s23 = smov [#allocation11]   ;;  %s382_s21 = int_to_ptr.hbm [resolvable:$true] %s381_s21 }
  0x1e   : > { %s409_s29 = sshll.u32 %s5602_s5, 4  ;;  %s411_s24 = sshll.u32 %s4387_s23, 4  ;;  %s410_s29 = int_to_ptr.hbm [resolvable:$true] %s409_s29  ;;  %s412_s24 = int_to_ptr.vmem [resolvable:$true] %s411_s24 }
  0x1f   : > { %3772 = dma.hbm_to_vmem [thread:$0]  (!%p4512_p6), %s357_s14, 176, %s359_s18, [#allocation6]  }
  0x20   : > { %3778 = dma.hbm_to_vmem [thread:$0]  (!%p4512_p6), %s382_s21, 1024, %s384_s17, [#allocation9], %s4385_s19, %s4385_s19, %s4386_s20  }
  0x21   : > { %3784 = dma.hbm_to_vmem [thread:$0]  (!%p4512_p6), %s410_s29, 1024, %s412_s24, [#allocation12], %s4385_s19, %s4385_s19, %s4386_s20  }
  0x22   : > { %s437_s13 = sshll.u32 %s5603_s7, 4  ;;  %s4388_s14 = smov [#allocation14]   ;;  %s438_s13 = int_to_ptr.hbm [resolvable:$true] %s437_s13 }
  0x23   : > { %s439_s18 = sshll.u32 %s4388_s14, 4  ;;  %s465_s21 = sshll.u32 %s5559_s9, 4  ;;  %s440_s18 = int_to_ptr.vmem [resolvable:$true] %s439_s18  ;;  %s466_s21 = int_to_ptr.hbm [resolvable:$true] %s465_s21 }
  0x24   : > { %3790 = dma.hbm_to_vmem [thread:$0]  (!%p4512_p6), %s438_s13, 1024, %s440_s18, [#allocation15], %s4385_s19, %s4385_s19, %s4386_s20  }
  0x25   : > { %s493_s17 = sshll.u32 %s5561_s11, 4  ;;  %s4389_s23 = smov [#allocation17]   ;;  %s494_s17 = int_to_ptr.hbm [resolvable:$true] %s493_s17 }
  0x26   : > { %s467_s29 = sshll.u32 %s4389_s23, 4  ;;  %s4390_s5 = smov [#allocation20]   ;;  %s468_s29 = int_to_ptr.vmem [resolvable:$true] %s467_s29 }
  0x27   : > { %3796 = dma.hbm_to_vmem [thread:$0]  (!%p4512_p6), %s466_s21, 1024, %s468_s29, [#allocation18], %s4385_s19, %s4385_s19, %s4386_s20  }
  0x28   : > { %s495_s24 = sshll.u32 %s4390_s5, 4  ;;  %s5604_s2 = sld [smem:[#allocation33_spill]]  ;;  %s496_s24 = int_to_ptr.vmem [resolvable:$true] %s495_s24 }
  0x29   : > { %3802 = dma.hbm_to_vmem [thread:$0]  (!%p4512_p6), %s494_s17, 1024, %s496_s24, [#allocation21], %s4385_s19, %s4385_s19, %s4386_s20  }
  0x2a   : > { %s5605_s4 = sld [smem:[#allocation35_spill]]  ;;  %s4391_s23 = smov [#allocation7]  }
  0x2b   : > { %s369_s21 = sshll.u32 %s4391_s23, 4  ;;  %s4392_s29 = smov [#allocation10]   ;;  %s370_s21 = int_to_ptr.vmem [resolvable:$true] %s369_s21 }
  0x2c   : > { %s397_s5 = sshll.u32 %s4392_s29, 4  ;;  %s5606_s6 = sld [smem:[#allocation37_spill]]  ;;  %s398_s5 = int_to_ptr.vmem [resolvable:$true] %s397_s5 }
  0x2d   : > { %s451_s1 = sshll.u32 %s5558_s8, 4  ;;  %s4393_s23 = smov [#allocation13]   ;;  %s452_s1 = int_to_ptr.hbm [resolvable:$true] %s451_s1 }
  0x2e   : > { %s367_s13 = sshll.u32 %s5604_s2, 4  ;;  %s507_s24 = sshll.u32 %s5562_s12, 4  ;;  %s368_s13 = int_to_ptr.hbm [resolvable:$true] %s367_s13  ;;  %s508_s24 = int_to_ptr.hbm [resolvable:$true] %s507_s24 }
  0x2f   : > { %3775 = dma.hbm_to_vmem [thread:$0]  (!%p4512_p6), %s368_s13, 1024, %s370_s21, [#allocation6], %s4385_s19, %s4385_s19, %s4386_s20  }
  0x30   : > { %s395_s3 = sshll.u32 %s5605_s4, 4  ;;  %s425_s13 = sshll.u32 %s4393_s23, 4  ;;  %s396_s3 = int_to_ptr.hbm [resolvable:$true] %s395_s3  ;;  %s426_s13 = int_to_ptr.vmem [resolvable:$true] %s425_s13 }
  0x31   : > { %3781 = dma.hbm_to_vmem [thread:$0]  (!%p4512_p6), %s396_s3, 1024, %s398_s5, [#allocation9], %s4385_s19, %s4385_s19, %s4386_s20  }
  0x32   : > { %s423_s17 = sshll.u32 %s5606_s6, 4  ;;  %s4394_s21 = smov [#allocation16]   ;;  %s424_s17 = int_to_ptr.hbm [resolvable:$true] %s423_s17 }
  0x33   : > { %3787 = dma.hbm_to_vmem [thread:$0]  (!%p4512_p6), %s424_s17, 1024, %s426_s13, [#allocation12], %s4385_s19, %s4385_s19, %s4386_s20  }
  0x34   : > { %s453_s29 = sshll.u32 %s4394_s21, 4  ;;  %s479_s5 = sshll.u32 %s5560_s10, 4  ;;  %s454_s29 = int_to_ptr.vmem [resolvable:$true] %s453_s29  ;;  %s480_s5 = int_to_ptr.hbm [resolvable:$true] %s479_s5 }
  0x35   : > { %3793 = dma.hbm_to_vmem [thread:$0]  (!%p4512_p6), %s452_s1, 1024, %s454_s29, [#allocation15], %s4385_s19, %s4385_s19, %s4386_s20  }
  0x36   : > { %s4395_s18 = smov [#allocation19]   ;;  %s4396_s1 = smov [#allocation22]  }
  0x37   : > { %s481_s23 = sshll.u32 %s4395_s18, 4  ;;  %s509_s13 = sshll.u32 %s4396_s1, 4  ;;  %s482_s23 = int_to_ptr.vmem [resolvable:$true] %s481_s23  ;;  %s510_s13 = int_to_ptr.vmem [resolvable:$true] %s509_s13 }
  0x38   : > { %3799 = dma.hbm_to_vmem [thread:$0]  (!%p4512_p6), %s480_s5, 1024, %s482_s23, [#allocation18], %s4385_s19, %s4385_s19, %s4386_s20  }
  0x39   : > { %3805 = dma.hbm_to_vmem [thread:$0]  (!%p4512_p6), %s508_s24, 1024, %s510_s13, [#allocation21], %s4385_s19, %s4385_s19, %s4386_s20  }
  0x3a   : > { %s3213_s21 = sadd.s32 4294967294, %s4381_s28   ;;  %s4605_s29 = sadd.s32 1, %s4381_s28  }
  0x3b   : > { %s39_s14 = ssub.s32 %s4381_s28, %s4605_s29  ;;  %s42_s3 = sadd.s32 1, %s4377_s27 }
  0x3c   : > { %p40_p7 = scmp.eq.s32.totalorder %s39_s14, 0  ;;  %p49_p8 = scmp.ne.s32.totalorder %s4377_s27, %s4373_s26 }
  0x3d   : > { %p50_p9 = scmp.eq.s32.totalorder %s4381_s28, 0  ;;  %p55_p10 = scmp.ne.s32.totalorder %s4373_s26, %s4369_s25 }
  0x3e   : > { %s4616_s5 = scalar_select %p40_p7, %s4377_s27, %s42_s3  }
  0x3f   : > { %p4618_p11 = por %p50_p9, %p49_p8  ;;  %p4624_p12 = por %p56_p1, %p55_p10 }
  0x40   : > { %p331_p13 = scmp.eq.s32.totalorder %s4495_s15, 1  ;;  %p337_p0 = scmp.eq.s32.totalorder %s3213_s21, 1 }
  0x41   : > { %p3826_p2 = scmp.lt.s32.totalorder %s4381_s28, 2  ;;  %s523_s20 = sand.u32 1, %s4377_s27  }
  0x42   : > { %p4631_p5 = por %p331_p13, %p49_p8  ;;  %p4635_p6 = por %p337_p0, %p55_p10 }
  0x43   : > { %s3228_s24 = sshll.u32 %s523_s20, 8  ;;  %s3603_s18 = sshll.u32 %s4381_s28, 8 }
  0x44   : > { %s532_s13 = scalar_lea.hbm %s5550_s0, %s3603_s18  ;;  %s527_s14 = scalar_lea.vmem [#allocation2], %s3228_s24 }
  0x45   : > { %s535_s3 = sshll.u32 %s527_s14, 4  ;;  %s533_s2 = sshll.u32 %s532_s13, 4  ;;  %s536_s3 = int_to_ptr.vmem [resolvable:$true] %s535_s3  ;;  %s534_s2 = int_to_ptr.hbm [resolvable:$true] %s533_s2 }
  0x46   : > { %p4645_p7 = pnand %p3826_p2, %p4618_p11  ;;  %s524_s4 = scalar_lea.sflag [#allocation3], %s523_s20 }
  0x47   : > { %s4261_s6 = sshra.s32 %s534_s2, 4  ;;  %s4268_s23 = scalar_lea.hbm %s5550_s0, 512  ;;  %s4262_s6 = int_to_ptr.hbm [resolvable:$true] %s4261_s6 }
  0x48   : > { %s4263_s7 = scalar_lea.hbm %s4262_s6, 256  ;;  %p4265_p9 = pneg %p4645_p7 }
  0x49   : > { %p4264_p8 = scmp.ne.s32.totalorder %s4262_s6, %s4263_s7  ;;  %p4269_p11 = scmp.lt.s32.totalorder %s4262_s6, %s5550_s0 }
  0x4a   : > { %p4270_p0 = scmp.lt.s32.totalorder %s4268_s23, %s4263_s7 }
  0x4b   : > { %p4266_p10 = pnand %p4265_p9, %p4264_p8 }
  0x4c   : > { %p4271_p2 = por %p4270_p0, %p4269_p11 }
  0x4d   : > { %p4267_p13 = pneg %p4266_p10 }
  0x4f   : > { %p4272_p4 = pnand %p4271_p2, %p4267_p13 }
  0x51   : > { %4275 = shalt.err (!%p4272_p4)
}
  0x52   : > { %s4397_s20 = smov 128   ;;  %s4398_s13 = smov 8  }
  0x53   : > { %3809 = dma.hbm_to_vmem [thread:$0]  (!%p4645_p7), %s534_s2, 4096, %s536_s3, %s524_s4, %s4397_s20, %s4397_s20, %s4398_s13  }
  0x54   : > { %547 = sbr.rel (%p4500_p3) target bundleno = 1948 (0x79c), region = 72  ;;  %s4662_s14 = sand.u32 (!%p4500_p3), 1, %s4373_s26  }
  0x55   : > { %s3232_s6 = sshll.u32 (!%p4500_p3), %s4662_s14, 8  ;;  %s550_s7 = scalar_lea.sflag (!%p4500_p3), [#allocation3], %s4662_s14 }
  0x56   : > { %s4668_s24 = scalar_lea.vmem (!%p4500_p3), [#allocation2], %s3232_s6 }
  0x59   : > { %4336 = dma.done.wait (%p4624_p12), %s550_s7, 4096  }
  0x5a   : > { %4338 = vsyncadd (%p4624_p12), %s550_s7, 4294963200 }
  0x5b   : > { %4340 = dma.done.wait (%p56_p1), [#allocation6], 1200  }
  0x5c   : > { %4342 = vsyncadd (%p56_p1), [#allocation6], 4294966096 }
  0x5d   : > { %4344 = dma.done.wait (%p56_p1), [#allocation9], 2048  }
  0x5e   : > { %4346 = vsyncadd (%p56_p1), [#allocation9], 4294965248 }
  0x5f   : > { %4348 = dma.done.wait (%p56_p1), [#allocation12], 2048  }
  0x60   : > { %4350 = vsyncadd (%p56_p1), [#allocation12], 4294965248 }
  0x61   : > { %4352 = dma.done.wait (%p56_p1), [#allocation15], 2048  }
  0x62   : > { %4354 = vsyncadd (%p56_p1), [#allocation15], 4294965248 }
  0x63   : > { %4356 = dma.done.wait (%p56_p1), [#allocation18], 2048  }
  0x64   : > { %4358 = vsyncadd (%p56_p1), [#allocation18], 4294965248 }
  0x65   : > { %4360 = dma.done.wait (%p56_p1), [#allocation21], 2048  }
  0x66   : > { %4362 = vsyncadd (%p56_p1), [#allocation21], 4294965248  ;;  %v3611_v0 = vld [vmem:[#allocation7 + $0x38] sm:$0xff]  ;;  %v3610_v1 = vld [vmem:[#allocation7 + $0x30] sm:$0xff]  ;;  %s5437_s2 = scalar_lea.vmem [#allocation23], %s3232_s6  ;;  %s3692_s4 = sshll.u32 %s4495_s15, 8 }
  0x67   : > { %775 = vmatpush.bf16.msra.mxu0 %v3611_v0  ;;  %3693 = vmatpush.bf16.msra.mxu3 %v3611_v0  ;;  %v3609_v2 = vld [vmem:[#allocation7 + $0x28] sm:$0xff]  ;;  %v3608_v3 = vld [vmem:[#allocation7 + $0x20] sm:$0xff]  ;;  %v3607_v4 = vld [vmem:[#allocation7 + $0x18] sm:$0xff]  ;;  %s5637_s3 = sld [smem:[#allocation39_spill]]  ;;  %s3023_s18 = sshll.u32 %s5437_s2, 4  ;;  %s3024_s18 = int_to_ptr.vmem [resolvable:$true] %s3023_s18 }
  0x68   : > { %v3606_v5 = vld [vmem:[#allocation7 + $0x10] sm:$0xff]  ;;  %v3605_v6 = vld [vmem:[#allocation7 + $0x8] sm:$0xff]  ;;  %v3604_v7 = vld [vmem:[#allocation7] sm:$0xff]  ;;  %s3011_s1 = scalar_lea.sflag [#allocation4], %s4662_s14 }
  0x69   : > { %v659_v8 = vld [vmem:[%s4668_s24] sm:$0xff]  ;;  %v660_v9 = vld [vmem:[%s4668_s24 + $0x8] sm:$0xff]  ;;  %v661_v14 = vld [vmem:[%s4668_s24 + $0x10] sm:$0xff] }
  0x6a   : > { %v708_v10 = vpack.c.bf16 %v660_v9, %v659_v8  ;;  %v683_v11 = vld [vmem:[%s4668_s24 + $0xc0] sm:$0xff]  ;;  %v684_v12 = vld [vmem:[%s4668_s24 + $0xc8] sm:$0xff]  ;;  %v662_v15 = vld [vmem:[%s4668_s24 + $0x18] sm:$0xff] }
  0x6b   : > { %776 = vmatpush.bf16.msra.mxu0 %v3610_v1  ;;  %3694 = vmatpush.bf16.msra.mxu3 %v3610_v1  ;;  %v720_v13 = vpack.c.bf16 %v684_v12, %v683_v11  ;;  %v709_v16 = vpack.c.bf16 %v662_v15, %v661_v14  ;;  %v685_v17 = vld [vmem:[%s4668_s24 + $0xd0] sm:$0xff]  ;;  %v686_v18 = vld [vmem:[%s4668_s24 + $0xd8] sm:$0xff]  ;;  %v663_v20 = vld [vmem:[%s4668_s24 + $0x20] sm:$0xff] }
  0x6c   : > { %v721_v19 = vpack.c.bf16 %v686_v18, %v685_v17  ;;  %v664_v21 = vld [vmem:[%s4668_s24 + $0x28] sm:$0xff]  ;;  %v687_v23 = vld [vmem:[%s4668_s24 + $0xe0] sm:$0xff]  ;;  %v665_v26 = vld [vmem:[%s4668_s24 + $0x30] sm:$0xff] }
  0x6d   : > { %v710_v22 = vpack.c.bf16 %v664_v21, %v663_v20  ;;  %v688_v24 = vld [vmem:[%s4668_s24 + $0xe8] sm:$0xff]  ;;  %v666_v27 = vld [vmem:[%s4668_s24 + $0x38] sm:$0xff]  ;;  %v689_v29 = vld [vmem:[%s4668_s24 + $0xf0] sm:$0xff]  ;;  %s3022_s21 = scalar_lea.hbm %s5637_s3, %s3692_s4  ;;  %s4311_s6 = scalar_lea.hbm %s5637_s3, 512 }
  0x6e   : > { %v722_v25 = vpack.c.bf16 %v688_v24, %v687_v23  ;;  %v711_v28 = vpack.c.bf16 %v666_v27, %v665_v26  ;;  %v690_v30 = vld [vmem:[%s4668_s24 + $0xf8] sm:$0xff]  ;;  %v667_v32 = vld [vmem:[%s4668_s24 + $0x40] sm:$0xff]  ;;  %v668_v33 = vld [vmem:[%s4668_s24 + $0x48] sm:$0xff]  ;;  %s3025_s23 = sshll.u32 %s3022_s21, 4  ;;  %s3026_s23 = int_to_ptr.hbm [resolvable:$true] %s3025_s23 }
  0x6f   : > { %777 = vmatpush.bf16.msra.mxu0 %v3609_v2  ;;  %3695 = vmatpush.bf16.msra.mxu3 %v3609_v2  ;;  %v723_v31 = vpack.c.bf16 %v690_v30, %v689_v29  ;;  %v712_v34 = vpack.c.bf16 %v668_v33, %v667_v32  ;;  %v3619_v35 = vld [vmem:[#allocation8 + $0x38] sm:$0xff]  ;;  %v669_v36 = vld [vmem:[%s4668_s24 + $0x50] sm:$0xff]  ;;  %v670_v37 = vld [vmem:[%s4668_s24 + $0x58] sm:$0xff]  ;;  %s4305_s22 = sshra.s32 %s3026_s23, 4  ;;  %s4306_s22 = int_to_ptr.hbm [resolvable:$true] %s4305_s22 }
  0x70   : > { %980 = vmatpush.bf16.msra.mxu1 %v3619_v35  ;;  %v713_v38 = vpack.c.bf16 %v670_v37, %v669_v36  ;;  %v3618_v39 = vld [vmem:[#allocation8 + $0x30] sm:$0xff]  ;;  %v3617_v40 = vld [vmem:[#allocation8 + $0x28] sm:$0xff]  ;;  %v3616_v41 = vld [vmem:[#allocation8 + $0x20] sm:$0xff]  ;;  %s4307_s15 = scalar_lea.hbm %s4306_s22, 256  ;;  %p4312_p12 = scmp.lt.s32.totalorder %s4306_s22, %s5637_s3 }
  0x71   : > { %v671_v42 = vld [vmem:[%s4668_s24 + $0x60] sm:$0xff]  ;;  %v672_v43 = vld [vmem:[%s4668_s24 + $0x68] sm:$0xff]  ;;  %v3613_v47 = vld [vmem:[#allocation8 + $0x8] sm:$0xff]  ;;  %p4308_p1 = scmp.ne.s32.totalorder %s4306_s22, %s4307_s15  ;;  %p4313_p7 = scmp.lt.s32.totalorder %s4311_s6, %s4307_s15 }
  0x72   : > { %v3615_v44 = vld [vmem:[#allocation8 + $0x18] sm:$0xff]  ;;  %v714_v45 = vpack.c.bf16 %v672_v43, %v671_v42  ;;  %v3614_v46 = vld [vmem:[#allocation8 + $0x10] sm:$0xff]  ;;  %v3612_v48 = vld [vmem:[#allocation8] sm:$0xff] }
  0x73   : > { %778 = vmatpush.bf16.msra.mxu0 %v3608_v3  ;;  %3696 = vmatpush.bf16.msra.mxu3 %v3608_v3  ;;  %v673_v49 = vld [vmem:[%s4668_s24 + $0x70] sm:$0xff]  ;;  %v674_v50 = vld [vmem:[%s4668_s24 + $0x78] sm:$0xff]  ;;  %v675_v52 = vld [vmem:[%s4668_s24 + $0x80] sm:$0xff]  ;;  %p4309_p3 = pnand %p4308_p1, %p4631_p5  ;;  %p4314_p8 = por %p4313_p7, %p4312_p12 }
  0x74   : > { %981 = vmatpush.bf16.msra.mxu1 %v3618_v39  ;;  %v715_v51 = vpack.c.bf16 %v674_v50, %v673_v49  ;;  %v676_v53 = vld [vmem:[%s4668_s24 + $0x88] sm:$0xff]  ;;  %v4724_v56 = vld [vmem:[#allocation5] ss:$0 sm:$0xff]  ;;  %v677_v62 = vld [vmem:[%s4668_s24 + $0x90] sm:$0xff] }
  0x75   : > { %v716_v54 = vpack.c.bf16 %v676_v53, %v675_v52  ;;  %v678_v63 = vld [vmem:[%s4668_s24 + $0x98] sm:$0xff]  ;;  %v679_v11 = vld [vmem:[%s4668_s24 + $0xa0] sm:$0xff]  ;;  %v680_v12 = vld [vmem:[%s4668_s24 + $0xa8] sm:$0xff]  ;;  %p4310_p4 = pneg %p4309_p3 }
  0x76   : > { %v717_v1 = vpack.c.bf16 %v678_v63, %v677_v62  ;;  %v718_v17 = vpack.c.bf16 %v680_v12, %v679_v11  ;;  %v682_v29 = vld [vmem:[%s4668_s24 + $0xb8] sm:$0xff] }
  0x77   : > { %779 = vmatpush.bf16.msra.mxu0 %v3607_v4  ;;  %3697 = vmatpush.bf16.msra.mxu3 %v3607_v4  ;;  %p4315_p9 = pnand %p4314_p8, %p4310_p4 }
  0x78   : > { %982 = vmatpush.bf16.msra.mxu1 %v3617_v40 }
  0x7b   : > { %780 = vmatpush.bf16.msra.mxu0 %v3606_v5  ;;  %3698 = vmatpush.bf16.msra.mxu3 %v3606_v5 }
  0x7c   : > { %983 = vmatpush.bf16.msra.mxu1 %v3616_v41 }
  0x7f   : > { %781 = vmatpush.bf16.msra.mxu0 %v3605_v6  ;;  %3699 = vmatpush.bf16.msra.mxu3 %v3605_v6 }
  0x80   : > { %984 = vmatpush.bf16.msra.mxu1 %v3615_v44 }
  0x83   : > { %782 = vmatpush.bf16.msra.mxu0 %v3604_v7  ;;  %3700 = vmatpush.bf16.msra.mxu3 %v3604_v7 }
  0x84   : > { %985 = vmatpush.bf16.msra.mxu1 %v3614_v46 }
  0x86   : > { %783 = vmatmul.bf16.vlgmr.msra.gmra.mxu0 %v708_v10  ;;  %843 = vmatmul.bf16.vlgmr.msra.gmra.mxu3 %v720_v13 }
  0x87   : > { %3701 = vmatpush.bf16.msrb.mxu3 %v3619_v35 }
  0x88   : > { %986 = vmatpush.bf16.msra.mxu1 %v3613_v47 }
  0x8b   : > { %3702 = vmatpush.bf16.msrb.mxu3 %v3618_v39 }
  0x8c   : > { %987 = vmatpush.bf16.msra.mxu1 %v3612_v48 }
  0x8f   : > { %3703 = vmatpush.bf16.msrb.mxu3 %v3617_v40 }
  0x93   : > { %3704 = vmatpush.bf16.msrb.mxu3 %v3616_v41 }
  0x96   : > { %788 = vmatmul.bf16.gmra.mxu0 %v709_v16  ;;  %848 = vmatmul.bf16.gmra.mxu3 %v721_v19 }
  0x97   : > { %3705 = vmatpush.bf16.msrb.mxu3 %v3615_v44 }
  0x9b   : > { %3706 = vmatpush.bf16.msrb.mxu3 %v3614_v46 }
  0x9f   : > { %3707 = vmatpush.bf16.msrb.mxu3 %v3613_v47 }
  0xa3   : > { %3708 = vmatpush.bf16.msrb.mxu3 %v3612_v48 }
  0xa6   : > { %793 = vmatmul.bf16.gmra.mxu0 %v710_v22  ;;  %853 = vmatmul.bf16.gmra.mxu3 %v722_v25 }
  0xb6   : > { %798 = vmatmul.bf16.gmra.mxu0 %v711_v28  ;;  %858 = vmatmul.bf16.gmra.mxu3 %v723_v31  ;;  %v681_v28 = vld [vmem:[%s4668_s24 + $0xb0] sm:$0xff] }
  0xc6   : > { %803 = vmatmul.bf16.gmra.mxu0 %v712_v34  ;;  %v719_v34 = vpack.c.bf16 %v682_v29, %v681_v28  ;;  %v3625_v28 = vld [vmem:[#allocation10 + $0x28] sm:$0xff]  ;;  %v3624_v29 = vld [vmem:[#allocation10 + $0x20] sm:$0xff] }
  0xd6   : > { %808 = vmatmul.bf16.gmra.mxu0 %v713_v38 }
  0xe6   : > { %813 = vmatmul.bf16.gmra.mxu0 %v714_v45 }
  0xf6   : > { %818 = vmatmul.bf16.gmra.mxu0 %v715_v51 }
 0x103   : > { %v784_v55 = vpop.f32.mrf.mxu0 }
 0x104   : > { %v4727_v57 = vadd.f32 %v4724_v56, %v784_v55 }
 0x106   : > { %823 = vmatmul.bf16.gmra.mxu0 %v716_v54  ;;  %v864_v60 = vmax.f32 %v4727_v57, 0.0 }
 0x109   : > { %v844_v3 = vpop.f32.mrf.mxu3 }
 0x10a   : > { %v4747_v7 = vadd.f32 %v4724_v56, %v844_v3 }
 0x10b   : > { %v786_v58 = vpop.f32.mrf.mxu0 }
 0x10c   : > { %v4730_v59 = vadd.f32 %v4724_v56, %v786_v58  ;;  %v5572_v15 = vmax.f32 %v4747_v7, 0.0 }
 0x10e   : > { %v865_v61 = vmax.f32 %v4730_v59, 0.0 }
 0x110   : > { %v913_v0 = vpack.c.bf16 %v865_v61, %v864_v60 }
 0x111   : > { %v846_v10 = vpop.f32.mrf.mxu3 }
 0x112   : > { %988 = vmatmul.bf16.vlgmr.msra.gmra.mxu1 %v913_v0  ;;  %v4754_v13 = vadd.f32 %v4724_v56, %v846_v10 }
 0x113   : > { %v789_v2 = vpop.f32.mrf.mxu0 }
 0x114   : > { %v4741_v4 = vadd.f32 %v4724_v56, %v789_v2  ;;  %v5571_v16 = vmax.f32 %v4754_v13, 0.0 }
 0x116   : > { %828 = vmatmul.bf16.gmra.mxu0 %v717_v1  ;;  %v866_v8 = vmax.f32 %v4741_v4, 0.0  ;;  %v925_v19 = vpack.c.bf16 %v5571_v16, %v5572_v15 }
 0x118   : > { %1048 = vmatmul.bf16.vlgmr.msrb.gmra.mxu3 %v925_v19 }
 0x119   : > { %v849_v20 = vpop.f32.mrf.mxu3 }
 0x11a   : > { %v4773_v24 = vadd.f32 %v4724_v56, %v849_v20 }
 0x11b   : > { %v791_v5 = vpop.f32.mrf.mxu0 }
 0x11c   : > { %v4744_v6 = vadd.f32 %v4724_v56, %v791_v5  ;;  %v5570_v32 = vmax.f32 %v4773_v24, 0.0 }
 0x11e   : > { %v867_v9 = vmax.f32 %v4744_v6, 0.0 }
 0x120   : > { %v914_v14 = vpack.c.bf16 %v867_v9, %v866_v8 }
 0x121   : > { %v851_v27 = vpop.f32.mrf.mxu3 }
 0x122   : > { %993 = vmatmul.bf16.gmra.mxu1 %v914_v14  ;;  %v4780_v30 = vadd.f32 %v4724_v56, %v851_v27 }
 0x123   : > { %v794_v18 = vpop.f32.mrf.mxu0 }
 0x124   : > { %v4767_v21 = vadd.f32 %v4724_v56, %v794_v18  ;;  %v5569_v33 = vmax.f32 %v4780_v30, 0.0 }
 0x126   : > { %833 = vmatmul.bf16.gmra.mxu0 %v718_v17  ;;  %v868_v25 = vmax.f32 %v4767_v21, 0.0  ;;  %v926_v36 = vpack.c.bf16 %v5569_v33, %v5570_v32  ;;  %v3627_v17 = vld [vmem:[#allocation10 + $0x38] sm:$0xff] }
 0x127   : > { %1185 = vmatpush.bf16.msra.mxu2 %v3627_v17  ;;  %3709 = vmatpush.bf16.msra.mxu3 %v3627_v17 }
 0x128   : > { %1053 = vmatmul.bf16.gmra.mxu3 %v926_v36  ;;  %v3623_v36 = vld [vmem:[#allocation10 + $0x18] sm:$0xff] }
 0x129   : > { %v854_v37 = vpop.f32.mrf.mxu3 }
 0x12a   : > { %v4799_v41 = vadd.f32 %v4724_v56, %v854_v37 }
 0x12b   : > { %v796_v22 = vpop.f32.mrf.mxu0 }
 0x12c   : > { %v4770_v23 = vadd.f32 %v4724_v56, %v796_v22  ;;  %v5568_v47 = vmax.f32 %v4799_v41, 0.0  ;;  %v3626_v22 = vld [vmem:[#allocation10 + $0x30] sm:$0xff] }
 0x12d   : > { %1186 = vmatpush.bf16.msra.mxu2 %v3626_v22  ;;  %3710 = vmatpush.bf16.msra.mxu3 %v3626_v22 }
 0x12e   : > { %v869_v26 = vmax.f32 %v4770_v23, 0.0 }
 0x130   : > { %v915_v31 = vpack.c.bf16 %v869_v26, %v868_v25 }
 0x131   : > { %v856_v44 = vpop.f32.mrf.mxu3  ;;  %1187 = vmatpush.bf16.msra.mxu2 %v3625_v28  ;;  %3711 = vmatpush.bf16.msra.mxu3 %v3625_v28 }
 0x132   : > { %998 = vmatmul.bf16.gmra.mxu1 %v915_v31  ;;  %v4804_v45 = vadd.f32 %v4724_v56, %v856_v44 }
 0x133   : > { %v799_v35 = vpop.f32.mrf.mxu0 }
 0x134   : > { %v4793_v38 = vadd.f32 %v4724_v56, %v799_v35  ;;  %v5567_v48 = vmax.f32 %v4804_v45, 0.0 }
 0x135   : > { %1188 = vmatpush.bf16.msra.mxu2 %v3624_v29  ;;  %3712 = vmatpush.bf16.msra.mxu3 %v3624_v29 }
 0x136   : > { %838 = vmatmul.bf16.gmra.mxu0 %v719_v34  ;;  %v870_v42 = vmax.f32 %v4793_v38, 0.0  ;;  %v927_v50 = vpack.c.bf16 %v5567_v48, %v5568_v47 }
 0x138   : > { %1058 = vmatmul.bf16.gmra.mxu3 %v927_v50  ;;  %v3621_v50 = vld [vmem:[#allocation10 + $0x8] sm:$0xff] }
 0x139   : > { %v859_v51 = vpop.f32.mrf.mxu3  ;;  %1189 = vmatpush.bf16.msra.mxu2 %v3623_v36  ;;  %3713 = vmatpush.bf16.msra.mxu3 %v3623_v36 }
 0x13a   : > { %v4823_v55 = vadd.f32 %v4724_v56, %v859_v51  ;;  %v3620_v51 = vld [vmem:[#allocation10] sm:$0xff] }
 0x13b   : > { %v801_v39 = vpop.f32.mrf.mxu0 }
 0x13c   : > { %v4796_v40 = vadd.f32 %v4724_v56, %v801_v39  ;;  %v5566_v2 = vmax.f32 %v4823_v55, 0.0 }
 0x13e   : > { %v5589_v43 = vmax.f32 %v4796_v40, 0.0 }
 0x140   : > { %v916_v46 = vpack.c.bf16 %v5589_v43, %v870_v42 }
 0x141   : > { %v861_v63 = vpop.f32.mrf.mxu3 }
 0x142   : > { %1003 = vmatmul.bf16.gmra.mxu1 %v916_v46  ;;  %v4828_v0 = vadd.f32 %v4724_v56, %v861_v63  ;;  %v3622_v46 = vld [vmem:[#allocation10 + $0x10] sm:$0xff] }
 0x143   : > { %v804_v49 = vpop.f32.mrf.mxu0  ;;  %1190 = vmatpush.bf16.msra.mxu2 %v3622_v46  ;;  %3714 = vmatpush.bf16.msra.mxu3 %v3622_v46 }
 0x144   : > { %v4817_v52 = vadd.f32 %v4724_v56, %v804_v49  ;;  %v5565_v3 = vmax.f32 %v4828_v0, 0.0 }
 0x146   : > { %v5588_v58 = vmax.f32 %v4817_v52, 0.0  ;;  %v928_v10 = vpack.c.bf16 %v5565_v3, %v5566_v2 }
 0x147   : > { %1191 = vmatpush.bf16.msra.mxu2 %v3621_v50  ;;  %3715 = vmatpush.bf16.msra.mxu3 %v3621_v50 }
 0x148   : > { %1063 = vmatmul.bf16.gmra.mxu3 %v928_v10 }
 0x14b   : > { %v806_v53 = vpop.f32.mrf.mxu0  ;;  %1192 = vmatpush.bf16.msra.mxu2 %v3620_v51  ;;  %3716 = vmatpush.bf16.msra.mxu3 %v3620_v51 }
 0x14c   : > { %v4820_v54 = vadd.f32 %v4724_v56, %v806_v53 }
 0x14e   : > { %v5587_v62 = vmax.f32 %v4820_v54, 0.0 }
 0x150   : > { %v917_v1 = vpack.c.bf16 %v5587_v62, %v5588_v58 }
 0x152   : > { %1008 = vmatmul.bf16.gmra.mxu1 %v917_v1 }
 0x153   : > { %v809_v5 = vpop.f32.mrf.mxu0 }
 0x154   : > { %v4841_v11 = vadd.f32 %v4724_v56, %v809_v5 }
 0x156   : > { %v5586_v18 = vmax.f32 %v4841_v11, 0.0 }
 0x15b   : > { %v811_v12 = vpop.f32.mrf.mxu0 }
 0x15c   : > { %v4844_v14 = vadd.f32 %v4724_v56, %v811_v12 }
 0x15e   : > { %v5585_v19 = vmax.f32 %v4844_v14, 0.0 }
 0x160   : > { %v918_v20 = vpack.c.bf16 %v5585_v19, %v5586_v18 }
 0x162   : > { %1013 = vmatmul.bf16.gmra.mxu1 %v918_v20 }
 0x163   : > { %v814_v27 = vpop.f32.mrf.mxu0 }
 0x164   : > { %v4853_v31 = vadd.f32 %v4724_v56, %v814_v27 }
 0x166   : > { %v5584_v37 = vmax.f32 %v4853_v31, 0.0 }
 0x16b   : > { %v816_v34 = vpop.f32.mrf.mxu0 }
 0x16c   : > { %v4856_v35 = vadd.f32 %v4724_v56, %v816_v34 }
 0x16e   : > { %v5583_v39 = vmax.f32 %v4856_v35, 0.0 }
 0x170   : > { %v919_v44 = vpack.c.bf16 %v5583_v39, %v5584_v37  ;;  %v3635_v39 = vld [vmem:[#allocation11 + $0x38] sm:$0xff] }
 0x171   : > { %1390 = vmatpush.bf16.msrb.mxu3 %v3635_v39 }
 0x172   : > { %1018 = vmatmul.bf16.gmra.mxu1 %v919_v44  ;;  %v4888_v44 = vld [vmem:[#allocation5 + $0x1] ss:$0 sm:$0xff] }
 0x173   : > { %v819_v49 = vpop.f32.mrf.mxu0 }
 0x174   : > { %v4865_v53 = vadd.f32 %v4724_v56, %v819_v49 }
 0x176   : > { %v5580_v5 = vmax.f32 %v4865_v53, 0.0 }
 0x17b   : > { %v821_v63 = vpop.f32.mrf.mxu0 }
 0x17c   : > { %v4868_v1 = vadd.f32 %v4724_v56, %v821_v63 }
 0x17e   : > { %v5577_v10 = vmax.f32 %v4868_v1, 0.0 }
 0x180   : > { %v920_v12 = vpack.c.bf16 %v5577_v10, %v5580_v5 }
 0x182   : > { %1023 = vmatmul.bf16.gmra.mxu1 %v920_v12 }
 0x183   : > { %v824_v17 = vpop.f32.mrf.mxu0 }
 0x184   : > { %v4877_v20 = vadd.f32 %v4724_v56, %v824_v17 }
 0x186   : > { %v5576_v28 = vmax.f32 %v4877_v20, 0.0 }
 0x18b   : > { %v826_v22 = vpop.f32.mrf.mxu0 }
 0x18c   : > { %v4880_v27 = vadd.f32 %v4724_v56, %v826_v22 }
 0x18e   : > { %v5575_v29 = vmax.f32 %v4880_v27, 0.0 }
 0x18f   : > { %v989_v34 = vpop.f32.mrf.mxu1 }
 0x190   : > { %v921_v36 = vpack.c.bf16 %v5575_v29, %v5576_v28  ;;  %v990_v49 = vadd.f32 %v4888_v44, %v989_v34 }
 0x192   : > { %1028 = vmatmul.bf16.gmra.mxu1 %v921_v36  ;;  %v1069_v63 = vmax.f32 %v990_v49, 0.0 }
 0x193   : > { %v829_v46 = vpop.f32.mrf.mxu0 }
 0x194   : > { %v4893_v12 = vadd.f32 %v4724_v56, %v829_v46 }
 0x196   : > { %v5574_v48 = vmax.f32 %v4893_v12, 0.0 }
 0x197   : > { %v991_v50 = vpop.f32.mrf.mxu1 }
 0x198   : > { %v992_v51 = vadd.f32 %v4888_v44, %v991_v50 }
 0x19a   : > { %v1070_v17 = vmax.f32 %v992_v51, 0.0 }
 0x19b   : > { %v831_v22 = vpop.f32.mrf.mxu0 }
 0x19c   : > { %v4896_v3 = vadd.f32 %v4724_v56, %v831_v22  ;;  %v1118_v2 = vpack.c.bf16 %v1070_v17, %v1069_v63  ;;  %v1049_v22 = vpop.f32.mrf.mxu3 }
 0x19e   : > { %v5573_v36 = vmax.f32 %v4896_v3, 0.0  ;;  %1193 = vmatmul.bf16.vlgmr.msra.gmra.mxu2 %v1118_v2 }
 0x19f   : > { %v994_v47 = vpop.f32.mrf.mxu1 }
 0x1a0   : > { %v922_v34 = vpack.c.bf16 %v5573_v36, %v5574_v48  ;;  %v995_v49 = vadd.f32 %v4888_v44, %v994_v47  ;;  %v1050_v47 = vadd.f32 %v4888_v44, %v1049_v22 }
 0x1a2   : > { %1033 = vmatmul.bf16.gmra.mxu1 %v922_v34  ;;  %v1071_v63 = vmax.f32 %v995_v49, 0.0 }
 0x1a3   : > { %v834_v46 = vpop.f32.mrf.mxu0 }
 0x1a4   : > { %v4907_v17 = vadd.f32 %v4724_v56, %v834_v46  ;;  %v1051_v49 = vpop.f32.mrf.mxu3 }
 0x1a6   : > { %v5579_v15 = vmax.f32 %v4907_v17, 0.0 }
 0x1a7   : > { %v996_v50 = vpop.f32.mrf.mxu1 }
 0x1a8   : > { %v997_v51 = vadd.f32 %v4888_v44, %v996_v50  ;;  %v1093_v50 = vmax.f32 %v1050_v47, 0.0 }
 0x1aa   : > { %v1072_v33 = vmax.f32 %v997_v51, 0.0  ;;  %v1052_v51 = vadd.f32 %v4888_v44, %v1051_v49 }
 0x1ab   : > { %v836_v2 = vpop.f32.mrf.mxu0 }
 0x1ac   : > { %v4910_v32 = vadd.f32 %v4724_v56, %v836_v2  ;;  %v1119_v16 = vpack.c.bf16 %v1072_v33, %v1071_v63  ;;  %v1094_v33 = vmax.f32 %v1052_v51, 0.0  ;;  %v1054_v22 = vpop.f32.mrf.mxu3 }
 0x1ae   : > { %v5578_v34 = vmax.f32 %v4910_v32, 0.0  ;;  %1198 = vmatmul.bf16.gmra.mxu2 %v1119_v16  ;;  %v1130_v48 = vpack.c.bf16 %v1094_v33, %v1093_v50  ;;  %v1055_v50 = vadd.f32 %v4888_v44, %v1054_v22 }
 0x1af   : > { %v999_v36 = vpop.f32.mrf.mxu1 }
 0x1b0   : > { %v923_v46 = vpack.c.bf16 %v5578_v34, %v5579_v15  ;;  %v1000_v63 = vadd.f32 %v4888_v44, %v999_v36  ;;  %1253 = vmatmul.bf16.vlgmr.msra.gmra.mxu3 %v1130_v48 }
 0x1b2   : > { %1038 = vmatmul.bf16.gmra.mxu1 %v923_v46  ;;  %v1073_v28 = vmax.f32 %v1000_v63, 0.0 }
 0x1b3   : > { %v839_v2 = vpop.f32.mrf.mxu0 }
 0x1b4   : > { %v4923_v10 = vadd.f32 %v4724_v56, %v839_v2  ;;  %v1056_v51 = vpop.f32.mrf.mxu3  ;;  %v1095_v2 = vmax.f32 %v1055_v50, 0.0 }
 0x1b6   : > { %v5582_v49 = vmax.f32 %v4923_v10, 0.0 }
 0x1b7   : > { %v1001_v29 = vpop.f32.mrf.mxu1 }
 0x1b8   : > { %v1002_v16 = vadd.f32 %v4888_v44, %v1001_v29 }
 0x1ba   : > { %v1074_v34 = vmax.f32 %v1002_v16, 0.0 }
 0x1bb   : > { %v841_v15 = vpop.f32.mrf.mxu0 }
 0x1bc   : > { %v4926_v47 = vadd.f32 %v4724_v56, %v841_v15  ;;  %v1120_v46 = vpack.c.bf16 %v1074_v34, %v1073_v28  ;;  %v1057_v56 = vadd.f32 %v4888_v44, %v1056_v51  ;;  %v1059_v16 = vpop.f32.mrf.mxu3 }
 0x1be   : > { %v5581_v36 = vmax.f32 %v4926_v47, 0.0  ;;  %1203 = vmatmul.bf16.gmra.mxu2 %v1120_v46  ;;  %v1096_v15 = vmax.f32 %v1057_v56, 0.0 }
 0x1bf   : > { %v1004_v29 = vpop.f32.mrf.mxu1 }
 0x1c0   : > { %v924_v48 = vpack.c.bf16 %v5581_v36, %v5582_v49  ;;  %v1005_v28 = vadd.f32 %v4888_v44, %v1004_v29  ;;  %v1131_v34 = vpack.c.bf16 %v1096_v15, %v1095_v2  ;;  %v1060_v36 = vadd.f32 %v4888_v44, %v1059_v16 }
 0x1c2   : > { %1043 = vmatmul.bf16.gmra.mxu1 %v924_v48  ;;  %1258 = vmatmul.bf16.gmra.mxu3 %v1131_v34  ;;  %v1075_v22 = vmax.f32 %v1005_v28, 0.0  ;;  %v1097_v50 = vmax.f32 %v1060_v36, 0.0 }
 0x1c4   : > { %v1061_v48 = vpop.f32.mrf.mxu3 }
 0x1c5   : > { %v1062_v51 = vadd.f32 %v4888_v44, %v1061_v48  ;;  %v3633_v48 = vld [vmem:[#allocation11 + $0x28] sm:$0xff] }
 0x1c7   : > { %v1006_v33 = vpop.f32.mrf.mxu1  ;;  %v1098_v29 = vmax.f32 %v1062_v51, 0.0 }
 0x1c8   : > { %v1007_v63 = vadd.f32 %v4888_v44, %v1006_v33 }
 0x1c9   : > { %v1132_v56 = vpack.c.bf16 %v1098_v29, %v1097_v50  ;;  %v3643_v50 = vld [vmem:[#allocation13 + $0x38] sm:$0xff] }
 0x1ca   : > { %v1076_v46 = vmax.f32 %v1007_v63, 0.0  ;;  %v3634_v63 = vld [vmem:[#allocation11 + $0x30] sm:$0xff]  ;;  %1627 = vmatpush.bf16.msrb.mxu0 %v3643_v50 }
 0x1cb   : > { %1391 = vmatpush.bf16.msrb.mxu3 %v3634_v63  ;;  %v3642_v50 = vld [vmem:[#allocation13 + $0x30] sm:$0xff] }
 0x1cc   : > { %v1121_v5 = vpack.c.bf16 %v1076_v46, %v1075_v22  ;;  %v1064_v28 = vpop.f32.mrf.mxu3 }
 0x1cd   : > { %v1065_v36 = vadd.f32 %v4888_v44, %v1064_v28  ;;  %v3632_v28 = vld [vmem:[#allocation11 + $0x20] sm:$0xff] }
 0x1ce   : > { %1208 = vmatmul.bf16.gmra.mxu2 %v1121_v5  ;;  %1628 = vmatpush.bf16.msrb.mxu0 %v3642_v50 }
 0x1cf   : > { %v1009_v49 = vpop.f32.mrf.mxu1  ;;  %v1099_v39 = vmax.f32 %v1065_v36, 0.0  ;;  %1392 = vmatpush.bf16.msrb.mxu3 %v3633_v48 }
 0x1d0   : > { %v1010_v2 = vadd.f32 %v4888_v44, %v1009_v49 }
 0x1d2   : > { %1263 = vmatmul.bf16.gmra.mxu3 %v1132_v56  ;;  %v1077_v33 = vmax.f32 %v1010_v2, 0.0 }
 0x1d3   : > { %1393 = vmatpush.bf16.msrb.mxu3 %v3632_v28 }
 0x1d4   : > { %v1066_v46 = vpop.f32.mrf.mxu3 }
 0x1d5   : > { %v1067_v49 = vadd.f32 %v4888_v44, %v1066_v46 }
 0x1d7   : > { %v1011_v15 = vpop.f32.mrf.mxu1  ;;  %v1100_v51 = vmax.f32 %v1067_v49, 0.0  ;;  %v3630_v49 = vld [vmem:[#allocation11 + $0x10] sm:$0xff] }
 0x1d8   : > { %v1012_v34 = vadd.f32 %v4888_v44, %v1011_v15 }
 0x1d9   : > { %v1133_v2 = vpack.c.bf16 %v1100_v51, %v1099_v39 }
 0x1da   : > { %v1078_v5 = vmax.f32 %v1012_v34, 0.0 }
 0x1dc   : > { %v1122_v16 = vpack.c.bf16 %v1078_v5, %v1077_v33 }
 0x1de   : > { %1213 = vmatmul.bf16.gmra.mxu2 %v1122_v16  ;;  %v3631_v16 = vld [vmem:[#allocation11 + $0x18] sm:$0xff] }
 0x1df   : > { %v1014_v22 = vpop.f32.mrf.mxu1  ;;  %1394 = vmatpush.bf16.msrb.mxu3 %v3631_v16 }
 0x1e0   : > { %v1015_v29 = vadd.f32 %v4888_v44, %v1014_v22 }
 0x1e2   : > { %1268 = vmatmul.bf16.gmra.mxu3 %v1133_v2  ;;  %v1079_v34 = vmax.f32 %v1015_v29, 0.0  ;;  %v3629_v2 = vld [vmem:[#allocation11 + $0x8] sm:$0xff] }
 0x1e3   : > { %1395 = vmatpush.bf16.msrb.mxu3 %v3630_v49 }
 0x1e7   : > { %v1016_v56 = vpop.f32.mrf.mxu1  ;;  %1396 = vmatpush.bf16.msrb.mxu3 %v3629_v2  ;;  %v4952_v2 = vld [vmem:[#allocation5 + $0x2] ss:$0 sm:$0xff] }
 0x1e8   : > { %v1017_v15 = vadd.f32 %v4888_v44, %v1016_v56 }
 0x1ea   : > { %v1080_v33 = vmax.f32 %v1017_v15, 0.0 }
 0x1ec   : > { %v1123_v5 = vpack.c.bf16 %v1080_v33, %v1079_v34 }
 0x1ee   : > { %1218 = vmatmul.bf16.gmra.mxu2 %v1123_v5  ;;  %v3628_v5 = vld [vmem:[#allocation11] sm:$0xff] }
 0x1ef   : > { %v1019_v63 = vpop.f32.mrf.mxu1  ;;  %1397 = vmatpush.bf16.msrb.mxu3 %v3628_v5 }
 0x1f0   : > { %v1020_v36 = vadd.f32 %v4888_v44, %v1019_v63 }
 0x1f2   : > { %v1081_v22 = vmax.f32 %v1020_v36, 0.0  ;;  %v3641_v36 = vld [vmem:[#allocation13 + $0x28] sm:$0xff] }
 0x1f3   : > { %1629 = vmatpush.bf16.msrb.mxu0 %v3641_v36 }
 0x1f7   : > { %v1021_v46 = vpop.f32.mrf.mxu1 }
 0x1f8   : > { %v1022_v48 = vadd.f32 %v4888_v44, %v1021_v46 }
 0x1fa   : > { %v1082_v39 = vmax.f32 %v1022_v48, 0.0 }
 0x1fc   : > { %v1124_v51 = vpack.c.bf16 %v1082_v39, %v1081_v22 }
 0x1fe   : > { %1223 = vmatmul.bf16.gmra.mxu2 %v1124_v51 }
 0x1ff   : > { %v1024_v29 = vpop.f32.mrf.mxu1 }
 0x200   : > { %v1025_v56 = vadd.f32 %v4888_v44, %v1024_v29 }
 0x202   : > { %v1083_v33 = vmax.f32 %v1025_v56, 0.0 }
 0x207   : > { %v1026_v15 = vpop.f32.mrf.mxu1 }
 0x208   : > { %v1027_v34 = vadd.f32 %v4888_v44, %v1026_v15 }
 0x20a   : > { %v1084_v28 = vmax.f32 %v1027_v34, 0.0 }
 0x20c   : > { %v1125_v63 = vpack.c.bf16 %v1084_v28, %v1083_v33 }
 0x20e   : > { %1228 = vmatmul.bf16.gmra.mxu2 %v1125_v63 }
 0x20f   : > { %v1029_v16 = vpop.f32.mrf.mxu1 }
 0x210   : > { %v1030_v46 = vadd.f32 %v4888_v44, %v1029_v16 }
 0x212   : > { %v1085_v39 = vmax.f32 %v1030_v46, 0.0 }
 0x217   : > { %v1031_v48 = vpop.f32.mrf.mxu1 }
 0x218   : > { %v1032_v22 = vadd.f32 %v4888_v44, %v1031_v48 }
 0x21a   : > { %v1086_v49 = vmax.f32 %v1032_v22, 0.0  ;;  %v3640_v22 = vld [vmem:[#allocation13 + $0x20] sm:$0xff] }
 0x21b   : > { %1630 = vmatpush.bf16.msrb.mxu0 %v3640_v22  ;;  %v3639_v22 = vld [vmem:[#allocation13 + $0x18] sm:$0xff] }
 0x21c   : > { %v1126_v50 = vpack.c.bf16 %v1086_v49, %v1085_v39 }
 0x21e   : > { %1233 = vmatmul.bf16.gmra.mxu2 %v1126_v50 }
 0x21f   : > { %v1034_v51 = vpop.f32.mrf.mxu1  ;;  %1631 = vmatpush.bf16.msrb.mxu0 %v3639_v22 }
 0x220   : > { %v1035_v56 = vadd.f32 %v4888_v44, %v1034_v51 }
 0x221   : > { %v1194_v29 = vpop.f32.mrf.mxu2 }
 0x222   : > { %v1195_v34 = vadd.f32 %v4952_v2, %v1194_v29  ;;  %v1087_v5 = vmax.f32 %v1035_v56, 0.0 }
 0x224   : > { %v1274_v36 = vmax.f32 %v1195_v34, 0.0 }
 0x227   : > { %v1036_v15 = vpop.f32.mrf.mxu1 }
 0x228   : > { %v1037_v33 = vadd.f32 %v4888_v44, %v1036_v15 }
 0x229   : > { %v1196_v28 = vpop.f32.mrf.mxu2 }
 0x22a   : > { %v1088_v63 = vmax.f32 %v1037_v33, 0.0  ;;  %v1197_v16 = vadd.f32 %v4952_v2, %v1196_v28 }
 0x22c   : > { %v1275_v46 = vmax.f32 %v1197_v16, 0.0  ;;  %v1127_v48 = vpack.c.bf16 %v1088_v63, %v1087_v5 }
 0x22e   : > { %v1323_v39 = vpack.c.bf16 %v1275_v46, %v1274_v36  ;;  %1238 = vmatmul.bf16.gmra.mxu2 %v1127_v48 }
 0x22f   : > { %v1039_v49 = vpop.f32.mrf.mxu1 }
 0x230   : > { %1398 = vmatmul.bf16.vlgmr.msrb.gmra.mxu3 %v1323_v39  ;;  %v1040_v51 = vadd.f32 %v4888_v44, %v1039_v49 }
 0x231   : > { %v1199_v50 = vpop.f32.mrf.mxu2 }
 0x232   : > { %v1200_v15 = vadd.f32 %v4952_v2, %v1199_v50  ;;  %v1089_v37 = vmax.f32 %v1040_v51, 0.0 }
 0x234   : > { %v1276_v5 = vmax.f32 %v1200_v15, 0.0 }
 0x237   : > { %v1041_v29 = vpop.f32.mrf.mxu1 }
 0x238   : > { %v1042_v56 = vadd.f32 %v4888_v44, %v1041_v29 }
 0x239   : > { %v1201_v33 = vpop.f32.mrf.mxu2 }
 0x23a   : > { %v1090_v28 = vmax.f32 %v1042_v56, 0.0  ;;  %v1202_v34 = vadd.f32 %v4952_v2, %v1201_v33 }
 0x23c   : > { %v1277_v63 = vmax.f32 %v1202_v34, 0.0  ;;  %v1128_v16 = vpack.c.bf16 %v1090_v28, %v1089_v37 }
 0x23e   : > { %1243 = vmatmul.bf16.gmra.mxu2 %v1128_v16  ;;  %v1324_v36 = vpack.c.bf16 %v1277_v63, %v1276_v5 }
 0x23f   : > { %v1044_v46 = vpop.f32.mrf.mxu1 }
 0x240   : > { %1403 = vmatmul.bf16.gmra.mxu3 %v1324_v36  ;;  %v1045_v39 = vadd.f32 %v4888_v44, %v1044_v46 }
 0x241   : > { %v1204_v48 = vpop.f32.mrf.mxu2 }
 0x242   : > { %v1205_v50 = vadd.f32 %v4952_v2, %v1204_v48  ;;  %v1091_v56 = vmax.f32 %v1045_v39, 0.0 }
 0x244   : > { %v1278_v37 = vmax.f32 %v1205_v50, 0.0 }
 0x247   : > { %v1046_v49 = vpop.f32.mrf.mxu1 }
 0x248   : > { %v1047_v51 = vadd.f32 %v4888_v44, %v1046_v49  ;;  %v3638_v44 = vld [vmem:[#allocation13 + $0x10] sm:$0xff] }
 0x249   : > { %v1206_v29 = vpop.f32.mrf.mxu2  ;;  %1632 = vmatpush.bf16.msrb.mxu0 %v3638_v44 }
 0x24a   : > { %v1092_v33 = vmax.f32 %v1047_v51, 0.0  ;;  %v1207_v15 = vadd.f32 %v4952_v2, %v1206_v29  ;;  %v4968_v51 = vpop.f32.mrf.mxu3 }
 0x24c   : > { %v1279_v28 = vmax.f32 %v1207_v15, 0.0  ;;  %v1129_v34 = vpack.c.bf16 %v1092_v33, %v1091_v56 }
 0x24e   : > { %1248 = vmatmul.bf16.gmra.mxu2 %v1129_v34  ;;  %v1325_v5 = vpack.c.bf16 %v1279_v28, %v1278_v37  ;;  %v3651_v34 = vld [vmem:[#allocation14 + $0x38] sm:$0xff] }
 0x24f   : > { %1832 = vmatpush.bf16.msrb.mxu1 %v3651_v34 }
 0x250   : > { %1408 = vmatmul.bf16.gmra.mxu3 %v1325_v5 }
 0x251   : > { %v1209_v63 = vpop.f32.mrf.mxu2 }
 0x252   : > { %v1210_v16 = vadd.f32 %v4952_v2, %v1209_v63  ;;  %v4972_v28 = vpop.f32.mrf.mxu3  ;;  %v3637_v63 = vld [vmem:[#allocation13 + $0x8] sm:$0xff] }
 0x253   : > { %1633 = vmatpush.bf16.msrb.mxu0 %v3637_v63 }
 0x254   : > { %v1280_v48 = vmax.f32 %v1210_v16, 0.0 }
 0x259   : > { %v1211_v36 = vpop.f32.mrf.mxu2 }
 0x25a   : > { %v1212_v46 = vadd.f32 %v4952_v2, %v1211_v36  ;;  %v4975_v36 = vpop.f32.mrf.mxu3 }
 0x25c   : > { %v1281_v22 = vmax.f32 %v1212_v46, 0.0 }
 0x25e   : > { %v1326_v49 = vpack.c.bf16 %v1281_v22, %v1280_v48 }
 0x260   : > { %1413 = vmatmul.bf16.gmra.mxu3 %v1326_v49 }
 0x261   : > { %v1214_v39 = vpop.f32.mrf.mxu2 }
 0x262   : > { %v1215_v50 = vadd.f32 %v4952_v2, %v1214_v39 }
 0x264   : > { %v1282_v33 = vmax.f32 %v1215_v50, 0.0  ;;  %v4978_v50 = vpop.f32.mrf.mxu3 }
 0x269   : > { %v1216_v29 = vpop.f32.mrf.mxu2 }
 0x26a   : > { %v1217_v56 = vadd.f32 %v4952_v2, %v1216_v29  ;;  %v3650_v29 = vld [vmem:[#allocation14 + $0x30] sm:$0xff] }
 0x26b   : > { %1833 = vmatpush.bf16.msrb.mxu1 %v3650_v29 }
 0x26c   : > { %v1283_v15 = vmax.f32 %v1217_v56, 0.0  ;;  %v4982_v63 = vpop.f32.mrf.mxu3 }
 0x26e   : > { %v1327_v37 = vpack.c.bf16 %v1283_v15, %v1282_v33 }
 0x270   : > { %1418 = vmatmul.bf16.gmra.mxu3 %v1327_v37 }
 0x271   : > { %v1219_v5 = vpop.f32.mrf.mxu2 }
 0x272   : > { %v1220_v16 = vadd.f32 %v4952_v2, %v1219_v5  ;;  %v3636_v5 = vld [vmem:[#allocation13] sm:$0xff] }
 0x273   : > { %1634 = vmatpush.bf16.msrb.mxu0 %v3636_v5 }
 0x274   : > { %v1284_v22 = vmax.f32 %v1220_v16, 0.0 }
 0x279   : > { %v1221_v46 = vpop.f32.mrf.mxu2 }
 0x27a   : > { %v1222_v48 = vadd.f32 %v4952_v2, %v1221_v46 }
 0x27c   : > { %v1285_v44 = vmax.f32 %v1222_v48, 0.0  ;;  %v4984_v48 = vpop.f32.mrf.mxu3 }
 0x27e   : > { %v1328_v49 = vpack.c.bf16 %v1285_v44, %v1284_v22 }
 0x280   : > { %1423 = vmatmul.bf16.gmra.mxu3 %v1328_v49 }
 0x281   : > { %v1224_v39 = vpop.f32.mrf.mxu2 }
 0x282   : > { %v1225_v56 = vadd.f32 %v4952_v2, %v1224_v39 }
 0x284   : > { %v1286_v37 = vmax.f32 %v1225_v56, 0.0  ;;  %v4988_v56 = vpop.f32.mrf.mxu3 }
 0x289   : > { %v1226_v33 = vpop.f32.mrf.mxu2 }
 0x28a   : > { %v1227_v15 = vadd.f32 %v4952_v2, %v1226_v33 }
 0x28c   : > { %v1287_v34 = vmax.f32 %v1227_v15, 0.0  ;;  %v3649_v15 = vld [vmem:[#allocation14 + $0x28] sm:$0xff] }
 0x28d   : > { %1834 = vmatpush.bf16.msrb.mxu1 %v3649_v15 }
 0x28e   : > { %v1329_v46 = vpack.c.bf16 %v1287_v34, %v1286_v37 }
 0x290   : > { %1428 = vmatmul.bf16.gmra.mxu3 %v1329_v46  ;;  %v4992_v46 = vpop.f32.mrf.mxu3 }
 0x291   : > { %v1229_v16 = vpop.f32.mrf.mxu2 }
 0x292   : > { %v1230_v22 = vadd.f32 %v4952_v2, %v1229_v16 }
 0x294   : > { %v1288_v39 = vmax.f32 %v1230_v22, 0.0 }
 0x299   : > { %v1231_v44 = vpop.f32.mrf.mxu2 }
 0x29a   : > { %v1232_v49 = vadd.f32 %v4952_v2, %v1231_v44 }
 0x29c   : > { %v1289_v29 = vmax.f32 %v1232_v49, 0.0  ;;  %v4994_v49 = vld [vmem:[#allocation5 + $0x3] ss:$0 sm:$0xff] }
 0x29e   : > { %v1330_v19 = vpack.c.bf16 %v1289_v29, %v1288_v39  ;;  %v3648_v29 = vld [vmem:[#allocation14 + $0x20] sm:$0xff] }
 0x29f   : > { %1835 = vmatpush.bf16.msrb.mxu1 %v3648_v29 }
 0x2a0   : > { %1433 = vmatmul.bf16.gmra.mxu3 %v1330_v19 }
 0x2a1   : > { %v1234_v33 = vpop.f32.mrf.mxu2 }
 0x2a2   : > { %v1235_v37 = vadd.f32 %v4952_v2, %v1234_v33 }
 0x2a4   : > { %v1290_v16 = vmax.f32 %v1235_v37, 0.0 }
 0x2a9   : > { %v1236_v34 = vpop.f32.mrf.mxu2 }
 0x2aa   : > { %v1237_v5 = vadd.f32 %v4952_v2, %v1236_v34 }
 0x2ac   : > { %v1291_v18 = vmax.f32 %v1237_v5, 0.0 }
 0x2ae   : > { %v1331_v62 = vpack.c.bf16 %v1291_v18, %v1290_v16 }
 0x2b0   : > { %1438 = vmatmul.bf16.gmra.mxu3 %v1331_v62 }
 0x2b1   : > { %v1239_v22 = vpop.f32.mrf.mxu2 }
 0x2b2   : > { %v1240_v19 = vadd.f32 %v4952_v2, %v1239_v22 }
 0x2b3   : > { %v1399_v44 = vpop.f32.mrf.mxu3 }
 0x2b4   : > { %v1400_v39 = vadd.f32 %v4994_v49, %v1399_v44  ;;  %v1292_v58 = vmax.f32 %v1240_v19, 0.0 }
 0x2b6   : > { %v1479_v43 = vmax.f32 %v1400_v39, 0.0 }
 0x2b8   : > { %v5002_v16 = vadd.f32 %v1479_v43, %v864_v60 }
 0x2b9   : > { %v1241_v15 = vpop.f32.mrf.mxu2 }
 0x2ba   : > { %v1242_v33 = vadd.f32 %v4952_v2, %v1241_v15 }
 0x2bb   : > { %v1401_v34 = vpop.f32.mrf.mxu3 }
 0x2bc   : > { %v1293_v37 = vmax.f32 %v1242_v33, 0.0  ;;  %v1402_v18 = vadd.f32 %v4994_v49, %v1401_v34 }
 0x2be   : > { %v1480_v62 = vmax.f32 %v1402_v18, 0.0  ;;  %v1332_v5 = vpack.c.bf16 %v1293_v37, %v1292_v58 }
 0x2c0   : > { %v5006_v22 = vadd.f32 %v1480_v62, %v865_v61  ;;  %1443 = vmatmul.bf16.gmra.mxu3 %v1332_v5  ;;  %v3647_v5 = vld [vmem:[#allocation14 + $0x18] sm:$0xff] }
 0x2c1   : > { %v1244_v44 = vpop.f32.mrf.mxu2  ;;  %1836 = vmatpush.bf16.msrb.mxu1 %v3647_v5  ;;  %v1255_v5 = vadd.f32 %v4952_v2, %v4968_v51  ;;  %v5612_v51 = vmax.f32 %v4796_v40, 0.0 }
 0x2c2   : > { %v1560_v29 = vpack.c.bf16 %v5006_v22, %v5002_v16  ;;  %v1245_v39 = vadd.f32 %v4952_v2, %v1244_v44 }
 0x2c3   : > { %v1404_v19 = vpop.f32.mrf.mxu3 }
 0x2c4   : > { %1635 = vmatmul.bf16.vlgmr.msrb.gmra.mxu0 %v1560_v29  ;;  %v1405_v15 = vadd.f32 %v4994_v49, %v1404_v19  ;;  %v1294_v43 = vmax.f32 %v1245_v39, 0.0 }
 0x2c6   : > { %v1481_v33 = vmax.f32 %v1405_v15, 0.0 }
 0x2c8   : > { %v5016_v18 = vadd.f32 %v1481_v33, %v866_v8 }
 0x2c9   : > { %v1246_v58 = vpop.f32.mrf.mxu2 }
 0x2ca   : > { %v1247_v57 = vadd.f32 %v4952_v2, %v1246_v58 }
 0x2cb   : > { %v1406_v60 = vpop.f32.mrf.mxu3 }
 0x2cc   : > { %v1295_v59 = vmax.f32 %v1247_v57, 0.0  ;;  %v1407_v61 = vadd.f32 %v4994_v49, %v1406_v60 }
 0x2ce   : > { %v1482_v34 = vmax.f32 %v1407_v61, 0.0  ;;  %v1333_v37 = vpack.c.bf16 %v1295_v59, %v1294_v43 }
 0x2d0   : > { %v5020_v62 = vadd.f32 %v1482_v34, %v867_v9  ;;  %1448 = vmatmul.bf16.gmra.mxu3 %v1333_v37 }
 0x2d1   : > { %v1249_v44 = vpop.f32.mrf.mxu2 }
 0x2d2   : > { %v1561_v29 = vpack.c.bf16 %v5020_v62, %v5016_v18  ;;  %v1250_v39 = vadd.f32 %v4952_v2, %v1249_v44  ;;  %v1257_v44 = vadd.f32 %v4952_v2, %v4972_v28 }
 0x2d3   : > { %v1409_v19 = vpop.f32.mrf.mxu3 }
 0x2d4   : > { %1640 = vmatmul.bf16.gmra.mxu0 %v1561_v29  ;;  %v1410_v15 = vadd.f32 %v4994_v49, %v1409_v19  ;;  %v1296_v6 = vmax.f32 %v1250_v39, 0.0  ;;  %v1298_v29 = vmax.f32 %v1255_v5, 0.0  ;;  %v1299_v19 = vmax.f32 %v1257_v44, 0.0 }
 0x2d5   : > { %v5613_v5 = vmax.f32 %v4817_v52, 0.0  ;;  %v1267_v52 = vadd.f32 %v4952_v2, %v4984_v48 }
 0x2d6   : > { %v1483_v9 = vmax.f32 %v1410_v15, 0.0 }
 0x2d8   : > { %v5030_v59 = vadd.f32 %v1483_v9, %v868_v25  ;;  %v3646_v25 = vld [vmem:[#allocation14 + $0x10] sm:$0xff]  ;;  %v1260_v9 = vadd.f32 %v4952_v2, %v4975_v36 }
 0x2d9   : > { %v1251_v4 = vpop.f32.mrf.mxu2  ;;  %1837 = vmatpush.bf16.msrb.mxu1 %v3646_v25  ;;  %v3645_v25 = vld [vmem:[#allocation14 + $0x8] sm:$0xff] }
 0x2da   : > { %v1252_v8 = vadd.f32 %v4952_v2, %v1251_v4  ;;  %v1335_v4 = vpack.c.bf16 %v1299_v19, %v1298_v29 }
 0x2db   : > { %v1411_v58 = vpop.f32.mrf.mxu3 }
 0x2dc   : > { %v1297_v57 = vmax.f32 %v1252_v8, 0.0  ;;  %v1412_v60 = vadd.f32 %v4994_v49, %v1411_v58 }
 0x2dd   : > { %1838 = vmatpush.bf16.msrb.mxu1 %v3645_v25 }
 0x2de   : > { %v1484_v43 = vmax.f32 %v1412_v60, 0.0  ;;  %v1334_v33 = vpack.c.bf16 %v1297_v57, %v1296_v6  ;;  %v1262_v57 = vadd.f32 %v4952_v2, %v4978_v50  ;;  %v3659_v50 = vld [vmem:[#allocation16 + $0x38] sm:$0xff] }
 0x2df   : > { %2037 = vmatpush.bf16.msrb.mxu2 %v3659_v50 }
 0x2e0   : > { %v5034_v61 = vadd.f32 %v1484_v43, %v869_v26  ;;  %1453 = vmatmul.bf16.gmra.mxu3 %v1334_v33  ;;  %v1301_v60 = vmax.f32 %v1262_v57, 0.0 }
 0x2e2   : > { %v1562_v34 = vpack.c.bf16 %v5034_v61, %v5030_v59 }
 0x2e3   : > { %v1414_v37 = vpop.f32.mrf.mxu3 }
 0x2e4   : > { %1645 = vmatmul.bf16.gmra.mxu0 %v1562_v34  ;;  %v1415_v21 = vadd.f32 %v4994_v49, %v1414_v37 }
 0x2e6   : > { %v1485_v26 = vmax.f32 %v1415_v21, 0.0  ;;  %v5614_v21 = vmax.f32 %v4820_v54, 0.0 }
 0x2e8   : > { %v5046_v8 = vadd.f32 %v1485_v26, %v870_v42  ;;  %v1300_v42 = vmax.f32 %v1260_v9, 0.0  ;;  %v5615_v9 = vmax.f32 %v4841_v11, 0.0 }
 0x2ea   : > { %v1336_v37 = vpack.c.bf16 %v1301_v60, %v1300_v42  ;;  %v1270_v60 = vadd.f32 %v4952_v2, %v4988_v56 }
 0x2eb   : > { %v1416_v23 = vpop.f32.mrf.mxu3 }
 0x2ec   : > { %v1417_v39 = vadd.f32 %v4994_v49, %v1416_v23  ;;  %v1265_v23 = vadd.f32 %v4952_v2, %v4982_v63 }
 0x2ee   : > { %v1486_v15 = vmax.f32 %v1417_v39, 0.0  ;;  %v1302_v26 = vmax.f32 %v1265_v23, 0.0  ;;  %v1303_v39 = vmax.f32 %v1267_v52, 0.0 }
 0x2f0   : > { %v5050_v58 = vadd.f32 %v1486_v15, %v5612_v51  ;;  %1458 = vmatmul.bf16.gmra.mxu3 %v1335_v4 }
 0x2f2   : > { %v1563_v28 = vpack.c.bf16 %v5050_v58, %v5046_v8 }
 0x2f3   : > { %v1419_v6 = vpop.f32.mrf.mxu3 }
 0x2f4   : > { %1650 = vmatmul.bf16.gmra.mxu0 %v1563_v28  ;;  %v1420_v38 = vadd.f32 %v4994_v49, %v1419_v6  ;;  %v1337_v6 = vpack.c.bf16 %v1303_v39, %v1302_v26 }
 0x2f6   : > { %v1487_v40 = vmax.f32 %v1420_v38, 0.0  ;;  %v5616_v38 = vmax.f32 %v4844_v14, 0.0 }
 0x2f8   : > { %v5062_v44 = vadd.f32 %v1487_v40, %v5613_v5  ;;  %v3658_v40 = vld [vmem:[#allocation16 + $0x30] sm:$0xff] }
 0x2f9   : > { %2038 = vmatpush.bf16.msrb.mxu2 %v3658_v40 }
 0x2fb   : > { %v1421_v43 = vpop.f32.mrf.mxu3 }
 0x2fc   : > { %v1422_v33 = vadd.f32 %v4994_v49, %v1421_v43  ;;  %v1272_v43 = vadd.f32 %v4952_v2, %v4992_v46  ;;  %v5618_v2 = vmax.f32 %v4856_v35, 0.0  ;;  %v5620_v35 = vmax.f32 %v4868_v1, 0.0 }
 0x2fd   : > { %v5622_v1 = vmax.f32 %v4880_v27, 0.0 }
 0x2fe   : > { %v1488_v34 = vmax.f32 %v1422_v33, 0.0  ;;  %v3644_v33 = vld [vmem:[#allocation14] sm:$0xff]  ;;  %v1305_v14 = vmax.f32 %v1272_v43, 0.0  ;;  %v5621_v43 = vmax.f32 %v4877_v20, 0.0 }
 0x2ff   : > { %1839 = vmatpush.bf16.msrb.mxu1 %v3644_v33 }
 0x300   : > { %v5066_v36 = vadd.f32 %v1488_v34, %v5614_v21  ;;  %1463 = vmatmul.bf16.gmra.mxu3 %v1336_v37  ;;  %v1304_v34 = vmax.f32 %v1270_v60, 0.0 }
 0x302   : > { %v1564_v29 = vpack.c.bf16 %v5066_v36, %v5062_v44  ;;  %v1338_v25 = vpack.c.bf16 %v1305_v14, %v1304_v34 }
 0x303   : > { %v1424_v19 = vpop.f32.mrf.mxu3 }
 0x304   : > { %1655 = vmatmul.bf16.gmra.mxu0 %v1564_v29  ;;  %v1425_v54 = vadd.f32 %v4994_v49, %v1424_v19  ;;  %v5617_v29 = vmax.f32 %v4853_v31, 0.0  ;;  %v5619_v31 = vmax.f32 %v4865_v53, 0.0 }
 0x306   : > { %v1489_v4 = vmax.f32 %v1425_v54, 0.0 }
 0x308   : > { %v5078_v57 = vadd.f32 %v1489_v4, %v5615_v9 }
 0x30b   : > { %v1426_v15 = vpop.f32.mrf.mxu3 }
 0x30c   : > { %v1427_v51 = vadd.f32 %v4994_v49, %v1426_v15 }
 0x30e   : > { %v1490_v28 = vmax.f32 %v1427_v51, 0.0 }
 0x310   : > { %v5082_v63 = vadd.f32 %v1490_v28, %v5616_v38  ;;  %1468 = vmatmul.bf16.gmra.mxu3 %v1337_v6  ;;  %v3657_v28 = vld [vmem:[#allocation16 + $0x28] sm:$0xff] }
 0x311   : > { %2039 = vmatpush.bf16.msrb.mxu2 %v3657_v28 }
 0x312   : > { %v1565_v48 = vpack.c.bf16 %v5082_v63, %v5078_v57 }
 0x313   : > { %v1429_v42 = vpop.f32.mrf.mxu3 }
 0x314   : > { %1660 = vmatmul.bf16.gmra.mxu0 %v1565_v48  ;;  %v1430_v11 = vadd.f32 %v4994_v49, %v1429_v42 }
 0x316   : > { %v1491_v5 = vmax.f32 %v1430_v11, 0.0 }
 0x318   : > { %v5094_v56 = vadd.f32 %v1491_v5, %v5617_v29 }
 0x31b   : > { %v1431_v37 = vpop.f32.mrf.mxu3 }
 0x31c   : > { %v1432_v21 = vadd.f32 %v4994_v49, %v1431_v37  ;;  %v5126_v37 = vld [vmem:[#allocation5 + $0x4] ss:$0 sm:$0xff] }
 0x31e   : > { %v1492_v50 = vmax.f32 %v1432_v21, 0.0 }
 0x320   : > { %v5098_v46 = vadd.f32 %v1492_v50, %v5618_v2  ;;  %1473 = vmatmul.bf16.gmra.mxu3 %v1338_v25  ;;  %v3656_v50 = vld [vmem:[#allocation16 + $0x20] sm:$0xff] }
 0x321   : > { %2040 = vmatpush.bf16.msrb.mxu2 %v3656_v50 }
 0x322   : > { %v1566_v19 = vpack.c.bf16 %v5098_v46, %v5094_v56 }
 0x323   : > { %v1434_v23 = vpop.f32.mrf.mxu3 }
 0x324   : > { %1665 = vmatmul.bf16.gmra.mxu0 %v1566_v19  ;;  %v1435_v52 = vadd.f32 %v4994_v49, %v1434_v23 }
 0x326   : > { %v1493_v26 = vmax.f32 %v1435_v52, 0.0 }
 0x328   : > { %v5106_v4 = vadd.f32 %v1493_v26, %v5619_v31  ;;  %v5623_v26 = vmax.f32 %v4893_v12, 0.0 }
 0x32b   : > { %v1436_v54 = vpop.f32.mrf.mxu3 }
 0x32c   : > { %v1437_v39 = vadd.f32 %v4994_v49, %v1436_v54 }
 0x32e   : > { %v1494_v15 = vmax.f32 %v1437_v39, 0.0 }
 0x330   : > { %v5110_v51 = vadd.f32 %v1494_v15, %v5620_v35  ;;  %v5624_v15 = vmax.f32 %v4896_v3, 0.0  ;;  %v3667_v35 = vld [vmem:[#allocation17 + $0x38] sm:$0xff] }
 0x331   : > { %2274 = vmatpush.bf16.msra.mxu3 %v3667_v35 }
 0x332   : > { %v1567_v6 = vpack.c.bf16 %v5110_v51, %v5106_v4 }
 0x333   : > { %v1439_v9 = vpop.f32.mrf.mxu3 }
 0x334   : > { %1670 = vmatmul.bf16.gmra.mxu0 %v1567_v6  ;;  %v1440_v38 = vadd.f32 %v4994_v49, %v1439_v9 }
 0x336   : > { %v1495_v42 = vmax.f32 %v1440_v38, 0.0 }
 0x338   : > { %v5118_v11 = vadd.f32 %v1495_v42, %v5621_v43 }
 0x33b   : > { %v1441_v48 = vpop.f32.mrf.mxu3 }
 0x33c   : > { %v1442_v60 = vadd.f32 %v4994_v49, %v1441_v48 }
 0x33e   : > { %v1496_v53 = vmax.f32 %v1442_v60, 0.0 }
 0x340   : > { %v5122_v40 = vadd.f32 %v1496_v53, %v5622_v1 }
 0x341   : > { %v1636_v33 = vpop.f32.mrf.mxu0 }
 0x342   : > { %v1568_v34 = vpack.c.bf16 %v5122_v40, %v5118_v11  ;;  %v1637_v5 = vadd.f32 %v5126_v37, %v1636_v33 }
 0x343   : > { %v1444_v14 = vpop.f32.mrf.mxu3 }
 0x344   : > { %1675 = vmatmul.bf16.gmra.mxu0 %v1568_v34  ;;  %v1445_v21 = vadd.f32 %v4994_v49, %v1444_v14  ;;  %v1716_v29 = vmax.f32 %v1637_v5, 0.0  ;;  %v5625_v14 = vmax.f32 %v4907_v17, 0.0 }
 0x346   : > { %v1497_v2 = vmax.f32 %v1445_v21, 0.0  ;;  %v5626_v21 = vmax.f32 %v4910_v32, 0.0 }
 0x348   : > { %v5134_v39 = vadd.f32 %v1497_v2, %v5623_v26 }
 0x349   : > { %v1638_v20 = vpop.f32.mrf.mxu0 }
 0x34a   : > { %v1639_v25 = vadd.f32 %v5126_v37, %v1638_v20  ;;  %v3655_v20 = vld [vmem:[#allocation16 + $0x18] sm:$0xff] }
 0x34b   : > { %v1446_v27 = vpop.f32.mrf.mxu3  ;;  %2041 = vmatpush.bf16.msrb.mxu2 %v3655_v20 }
 0x34c   : > { %v1717_v19 = vmax.f32 %v1639_v25, 0.0  ;;  %v1447_v23 = vadd.f32 %v4994_v49, %v1446_v27 }
 0x34e   : > { %v1765_v52 = vpack.c.bf16 %v1717_v19, %v1716_v29  ;;  %v1498_v54 = vmax.f32 %v1447_v23, 0.0 }
 0x350   : > { %v5138_v31 = vadd.f32 %v1498_v54, %v5624_v15  ;;  %1840 = vmatmul.bf16.vlgmr.msrb.gmra.mxu1 %v1765_v52 }
 0x351   : > { %v1641_v28 = vpop.f32.mrf.mxu0 }
 0x352   : > { %v1569_v6 = vpack.c.bf16 %v5138_v31, %v5134_v39  ;;  %v1642_v38 = vadd.f32 %v5126_v37, %v1641_v28 }
 0x353   : > { %v1449_v9 = vpop.f32.mrf.mxu3 }
 0x354   : > { %1680 = vmatmul.bf16.gmra.mxu0 %v1569_v6  ;;  %v1450_v48 = vadd.f32 %v4994_v49, %v1449_v9  ;;  %v1718_v3 = vmax.f32 %v1642_v38, 0.0  ;;  %v5627_v6 = vmax.f32 %v4923_v10, 0.0  ;;  %v5628_v38 = vmax.f32 %v4926_v47, 0.0  ;;  %v3654_v10 = vld [vmem:[#allocation16 + $0x10] sm:$0xff] }
 0x355   : > { %2042 = vmatpush.bf16.msrb.mxu2 %v3654_v10  ;;  %v3653_v10 = vld [vmem:[#allocation16 + $0x8] sm:$0xff] }
 0x356   : > { %v1499_v53 = vmax.f32 %v1450_v48, 0.0 }
 0x358   : > { %v5148_v5 = vadd.f32 %v1499_v53, %v5625_v14 }
 0x359   : > { %v1643_v12 = vpop.f32.mrf.mxu0  ;;  %2043 = vmatpush.bf16.msrb.mxu2 %v3653_v10 }
 0x35a   : > { %v1644_v42 = vadd.f32 %v5126_v37, %v1643_v12  ;;  %v3666_v12 = vld [vmem:[#allocation17 + $0x30] sm:$0xff] }
 0x35b   : > { %v1451_v60 = vpop.f32.mrf.mxu3  ;;  %2275 = vmatpush.bf16.msra.mxu3 %v3666_v12 }
 0x35c   : > { %v1719_v43 = vmax.f32 %v1644_v42, 0.0  ;;  %v1452_v1 = vadd.f32 %v4994_v49, %v1451_v60 }
 0x35e   : > { %v1500_v33 = vmax.f32 %v1452_v1, 0.0  ;;  %v1766_v34 = vpack.c.bf16 %v1719_v43, %v1718_v3 }
 0x360   : > { %v5152_v50 = vadd.f32 %v1500_v33, %v5626_v21  ;;  %1845 = vmatmul.bf16.gmra.mxu1 %v1766_v34 }
 0x361   : > { %v1646_v25 = vpop.f32.mrf.mxu0 }
 0x362   : > { %v1570_v27 = vpack.c.bf16 %v5152_v50, %v5148_v5  ;;  %v1647_v2 = vadd.f32 %v5126_v37, %v1646_v25 }
 0x363   : > { %v1454_v29 = vpop.f32.mrf.mxu3 }
 0x364   : > { %1685 = vmatmul.bf16.gmra.mxu0 %v1570_v27  ;;  %v1455_v19 = vadd.f32 %v4994_v49, %v1454_v29  ;;  %v1720_v32 = vmax.f32 %v1647_v2, 0.0  ;;  %v5629_v29 = vmax.f32 %v4747_v7, 0.0 }
 0x366   : > { %v1501_v54 = vmax.f32 %v1455_v19, 0.0  ;;  %v5630_v19 = vmax.f32 %v4754_v13, 0.0 }
 0x368   : > { %v5162_v9 = vadd.f32 %v1501_v54, %v5627_v6 }
 0x369   : > { %v1648_v17 = vpop.f32.mrf.mxu0 }
 0x36a   : > { %v1649_v23 = vadd.f32 %v5126_v37, %v1648_v17 }
 0x36b   : > { %v1456_v52 = vpop.f32.mrf.mxu3 }
 0x36c   : > { %v1721_v26 = vmax.f32 %v1649_v23, 0.0  ;;  %v1457_v15 = vadd.f32 %v4994_v49, %v1456_v52 }
 0x36e   : > { %v1502_v35 = vmax.f32 %v1457_v15, 0.0  ;;  %v1767_v28 = vpack.c.bf16 %v1721_v26, %v1720_v32 }
 0x370   : > { %v5166_v48 = vadd.f32 %v1502_v35, %v5628_v38  ;;  %1850 = vmatmul.bf16.gmra.mxu1 %v1767_v28 }
 0x371   : > { %v1651_v42 = vpop.f32.mrf.mxu0 }
 0x372   : > { %v1571_v60 = vpack.c.bf16 %v5166_v48, %v5162_v9  ;;  %v1652_v53 = vadd.f32 %v5126_v37, %v1651_v42 }
 0x373   : > { %v1459_v3 = vpop.f32.mrf.mxu3 }
 0x374   : > { %1690 = vmatmul.bf16.gmra.mxu0 %v1571_v60  ;;  %v1460_v43 = vadd.f32 %v4994_v49, %v1459_v3  ;;  %v1722_v34 = vmax.f32 %v1652_v53, 0.0  ;;  %v5631_v60 = vmax.f32 %v4773_v24, 0.0  ;;  %v5632_v53 = vmax.f32 %v4780_v30, 0.0 }
 0x376   : > { %v1503_v14 = vmax.f32 %v1460_v43, 0.0 }
 0x378   : > { %v5176_v2 = vadd.f32 %v1503_v14, %v5629_v29 }
 0x379   : > { %v1653_v1 = vpop.f32.mrf.mxu0 }
 0x37a   : > { %v1654_v33 = vadd.f32 %v5126_v37, %v1653_v1  ;;  %v3665_v1 = vld [vmem:[#allocation17 + $0x28] sm:$0xff] }
 0x37b   : > { %v1461_v47 = vpop.f32.mrf.mxu3  ;;  %2276 = vmatpush.bf16.msra.mxu3 %v3665_v1 }
 0x37c   : > { %v1723_v21 = vmax.f32 %v1654_v33, 0.0  ;;  %v1462_v20 = vadd.f32 %v4994_v49, %v1461_v47 }
 0x37e   : > { %v1504_v25 = vmax.f32 %v1462_v20, 0.0  ;;  %v1768_v27 = vpack.c.bf16 %v1723_v21, %v1722_v34 }
 0x380   : > { %v5180_v17 = vadd.f32 %v1504_v25, %v5630_v19  ;;  %1855 = vmatmul.bf16.gmra.mxu1 %v1768_v27 }
 0x381   : > { %v1656_v23 = vpop.f32.mrf.mxu0 }
 0x382   : > { %v1572_v52 = vpack.c.bf16 %v5180_v17, %v5176_v2  ;;  %v1657_v54 = vadd.f32 %v5126_v37, %v1656_v23 }
 0x383   : > { %v1464_v32 = vpop.f32.mrf.mxu3 }
 0x384   : > { %1695 = vmatmul.bf16.gmra.mxu0 %v1572_v52  ;;  %v1465_v26 = vadd.f32 %v4994_v49, %v1464_v32  ;;  %v1724_v28 = vmax.f32 %v1657_v54, 0.0  ;;  %v5633_v32 = vmax.f32 %v4799_v41, 0.0 }
 0x386   : > { %v1505_v6 = vmax.f32 %v1465_v26, 0.0  ;;  %v5634_v26 = vmax.f32 %v4804_v45, 0.0 }
 0x388   : > { %v5190_v3 = vadd.f32 %v1505_v6, %v5631_v60  ;;  %v3652_v6 = vld [vmem:[#allocation16] sm:$0xff] }
 0x389   : > { %v1658_v15 = vpop.f32.mrf.mxu0  ;;  %2044 = vmatpush.bf16.msrb.mxu2 %v3652_v6  ;;  %v5230_v6 = vld [vmem:[#allocation5 + $0x5] ss:$0 sm:$0xff] }
 0x38a   : > { %v1659_v7 = vadd.f32 %v5126_v37, %v1658_v15 }
 0x38b   : > { %v1466_v35 = vpop.f32.mrf.mxu3 }
 0x38c   : > { %v1725_v13 = vmax.f32 %v1659_v7, 0.0  ;;  %v1467_v38 = vadd.f32 %v4994_v49, %v1466_v35 }
 0x38e   : > { %v1506_v12 = vmax.f32 %v1467_v38, 0.0  ;;  %v1769_v42 = vpack.c.bf16 %v1725_v13, %v1724_v28 }
 0x390   : > { %v5194_v43 = vadd.f32 %v1506_v12, %v5632_v53  ;;  %1860 = vmatmul.bf16.gmra.mxu1 %v1769_v42 }
 0x391   : > { %v1661_v33 = vpop.f32.mrf.mxu0 }
 0x392   : > { %v1573_v47 = vpack.c.bf16 %v5194_v43, %v5190_v3  ;;  %v1662_v14 = vadd.f32 %v5126_v37, %v1661_v33 }
 0x393   : > { %v1469_v34 = vpop.f32.mrf.mxu3 }
 0x394   : > { %1700 = vmatmul.bf16.gmra.mxu0 %v1573_v47  ;;  %v1470_v24 = vadd.f32 %v4994_v49, %v1469_v34  ;;  %v1726_v25 = vmax.f32 %v1662_v14, 0.0  ;;  %v5635_v47 = vmax.f32 %v4823_v55, 0.0  ;;  %v5636_v14 = vmax.f32 %v4828_v0, 0.0 }
 0x396   : > { %v1507_v27 = vmax.f32 %v1470_v24, 0.0 }
 0x398   : > { %v5204_v54 = vadd.f32 %v1507_v27, %v5633_v32 }
 0x399   : > { %v1663_v21 = vpop.f32.mrf.mxu0 }
 0x39a   : > { %v1664_v30 = vadd.f32 %v5126_v37, %v1663_v21  ;;  %v3664_v21 = vld [vmem:[#allocation17 + $0x20] sm:$0xff] }
 0x39b   : > { %v1471_v20 = vpop.f32.mrf.mxu3  ;;  %2277 = vmatpush.bf16.msra.mxu3 %v3664_v21 }
 0x39c   : > { %v1727_v29 = vmax.f32 %v1664_v30, 0.0  ;;  %v1472_v19 = vadd.f32 %v4994_v49, %v1471_v20 }
 0x39e   : > { %v1508_v23 = vmax.f32 %v1472_v19, 0.0  ;;  %v1770_v52 = vpack.c.bf16 %v1727_v29, %v1726_v25 }
 0x3a0   : > { %v5208_v15 = vadd.f32 %v1508_v23, %v5634_v26  ;;  %1865 = vmatmul.bf16.gmra.mxu1 %v1770_v52 }
 0x3a1   : > { %v1666_v7 = vpop.f32.mrf.mxu0 }
 0x3a2   : > { %v1574_v35 = vpack.c.bf16 %v5208_v15, %v5204_v54  ;;  %v1667_v13 = vadd.f32 %v5126_v37, %v1666_v7 }
 0x3a3   : > { %v1474_v28 = vpop.f32.mrf.mxu3 }
 0x3a4   : > { %1705 = vmatmul.bf16.gmra.mxu0 %v1574_v35  ;;  %v1475_v38 = vadd.f32 %v4994_v49, %v1474_v28  ;;  %v1728_v45 = vmax.f32 %v1667_v13, 0.0  ;;  %v3663_v13 = vld [vmem:[#allocation17 + $0x18] sm:$0xff] }
 0x3a5   : > { %2278 = vmatpush.bf16.msra.mxu3 %v3663_v13  ;;  %v3662_v13 = vld [vmem:[#allocation17 + $0x10] sm:$0xff] }
 0x3a6   : > { %v1509_v60 = vmax.f32 %v1475_v38, 0.0 }
 0x3a8   : > { %v5218_v34 = vadd.f32 %v1509_v60, %v5635_v47 }
 0x3a9   : > { %v1668_v41 = vpop.f32.mrf.mxu0  ;;  %2279 = vmatpush.bf16.msra.mxu3 %v3662_v13  ;;  %v3661_v13 = vld [vmem:[#allocation17 + $0x8] sm:$0xff] }
 0x3aa   : > { %v1669_v12 = vadd.f32 %v5126_v37, %v1668_v41 }
 0x3ab   : > { %v1476_v42 = vpop.f32.mrf.mxu3 }
 0x3ac   : > { %v1729_v53 = vmax.f32 %v1669_v12, 0.0  ;;  %v1477_v10 = vadd.f32 %v4994_v49, %v1476_v42 }
 0x3ad   : > { %2280 = vmatpush.bf16.msra.mxu3 %v3661_v13  ;;  %v3660_v13 = vld [vmem:[#allocation17] sm:$0xff] }
 0x3ae   : > { %v1510_v1 = vmax.f32 %v1477_v10, 0.0  ;;  %v1771_v33 = vpack.c.bf16 %v1729_v53, %v1728_v45 }
 0x3b0   : > { %v5222_v24 = vadd.f32 %v1510_v1, %v5636_v14  ;;  %1870 = vmatmul.bf16.gmra.mxu1 %v1771_v33 }
 0x3b1   : > { %v1671_v30 = vpop.f32.mrf.mxu0  ;;  %2281 = vmatpush.bf16.msra.mxu3 %v3660_v13  ;;  %v5264_v13 = vld [vmem:[#allocation5 + $0x6] ss:$0 sm:$0xff] }
 0x3b2   : > { %v1575_v20 = vpack.c.bf16 %v5222_v24, %v5218_v34  ;;  %v1672_v49 = vadd.f32 %v5126_v37, %v1671_v30 }
 0x3b4   : > { %1710 = vmatmul.bf16.gmra.mxu0 %v1575_v20  ;;  %v1730_v55 = vmax.f32 %v1672_v49, 0.0 }
 0x3b9   : > { %v1673_v25 = vpop.f32.mrf.mxu0 }
 0x3ba   : > { %v1674_v27 = vadd.f32 %v5126_v37, %v1673_v25  ;;  %v3675_v25 = vld [vmem:[#allocation19 + $0x38] sm:$0xff] }
 0x3bb   : > { %2479 = vmatpush.bf16.msra.mxu0 %v3675_v25  ;;  %v3674_v25 = vld [vmem:[#allocation19 + $0x30] sm:$0xff] }
 0x3bc   : > { %v1731_v29 = vmax.f32 %v1674_v27, 0.0 }
 0x3be   : > { %v1772_v19 = vpack.c.bf16 %v1731_v29, %v1730_v55 }
 0x3bf   : > { %2480 = vmatpush.bf16.msra.mxu0 %v3674_v25 }
 0x3c0   : > { %1875 = vmatmul.bf16.gmra.mxu1 %v1772_v19 }
 0x3c1   : > { %v1676_v0 = vpop.f32.mrf.mxu0 }
 0x3c2   : > { %v1677_v23 = vadd.f32 %v5126_v37, %v1676_v0 }
 0x3c4   : > { %v1732_v26 = vmax.f32 %v1677_v23, 0.0 }
 0x3c9   : > { %v1678_v52 = vpop.f32.mrf.mxu0 }
 0x3ca   : > { %v1679_v32 = vadd.f32 %v5126_v37, %v1678_v52 }
 0x3cc   : > { %v1733_v7 = vmax.f32 %v1679_v32, 0.0 }
 0x3cd   : > { %v1841_v35 = vpop.f32.mrf.mxu1 }
 0x3ce   : > { %v1773_v28 = vpack.c.bf16 %v1733_v7, %v1732_v26  ;;  %v1842_v41 = vadd.f32 %v5230_v6, %v1841_v35 }
 0x3d0   : > { %1880 = vmatmul.bf16.gmra.mxu1 %v1773_v28  ;;  %v1921_v45 = vmax.f32 %v1842_v41, 0.0 }
 0x3d1   : > { %v1681_v38 = vpop.f32.mrf.mxu0 }
 0x3d2   : > { %v1682_v60 = vadd.f32 %v5126_v37, %v1681_v38 }
 0x3d4   : > { %v1734_v47 = vmax.f32 %v1682_v60, 0.0 }
 0x3d5   : > { %v1843_v12 = vpop.f32.mrf.mxu1 }
 0x3d6   : > { %v1844_v42 = vadd.f32 %v5230_v6, %v1843_v12 }
 0x3d8   : > { %v1922_v53 = vmax.f32 %v1844_v42, 0.0 }
 0x3d9   : > { %v1683_v10 = vpop.f32.mrf.mxu0 }
 0x3da   : > { %v1970_v1 = vpack.c.bf16 %v1922_v53, %v1921_v45  ;;  %v1684_v33 = vadd.f32 %v5126_v37, %v1683_v10 }
 0x3dc   : > { %v1735_v14 = vmax.f32 %v1684_v33, 0.0  ;;  %2045 = vmatmul.bf16.vlgmr.msrb.gmra.mxu2 %v1970_v1 }
 0x3dd   : > { %v1846_v21 = vpop.f32.mrf.mxu1 }
 0x3de   : > { %v1774_v30 = vpack.c.bf16 %v1735_v14, %v1734_v47  ;;  %v1847_v49 = vadd.f32 %v5230_v6, %v1846_v21 }
 0x3e0   : > { %1885 = vmatmul.bf16.gmra.mxu1 %v1774_v30  ;;  %v1923_v29 = vmax.f32 %v1847_v49, 0.0 }
 0x3e1   : > { %v1686_v20 = vpop.f32.mrf.mxu0 }
 0x3e2   : > { %v1687_v19 = vadd.f32 %v5126_v37, %v1686_v20 }
 0x3e4   : > { %v1736_v26 = vmax.f32 %v1687_v19, 0.0 }
 0x3e5   : > { %v1848_v27 = vpop.f32.mrf.mxu1 }
 0x3e6   : > { %v1849_v55 = vadd.f32 %v5230_v6, %v1848_v27 }
 0x3e8   : > { %v1924_v0 = vmax.f32 %v1849_v55, 0.0 }
 0x3e9   : > { %v1688_v23 = vpop.f32.mrf.mxu0 }
 0x3ea   : > { %v1689_v52 = vadd.f32 %v5126_v37, %v1688_v23  ;;  %v1971_v32 = vpack.c.bf16 %v1924_v0, %v1923_v29 }
 0x3ec   : > { %v1737_v7 = vmax.f32 %v1689_v52, 0.0  ;;  %2050 = vmatmul.bf16.gmra.mxu2 %v1971_v32 }
 0x3ed   : > { %v1851_v35 = vpop.f32.mrf.mxu1 }
 0x3ee   : > { %v1775_v28 = vpack.c.bf16 %v1737_v7, %v1736_v26  ;;  %v1852_v41 = vadd.f32 %v5230_v6, %v1851_v35 }
 0x3f0   : > { %1890 = vmatmul.bf16.gmra.mxu1 %v1775_v28  ;;  %v1925_v45 = vmax.f32 %v1852_v41, 0.0 }
 0x3f1   : > { %v1691_v38 = vpop.f32.mrf.mxu0 }
 0x3f2   : > { %v1692_v60 = vadd.f32 %v5126_v37, %v1691_v38 }
 0x3f4   : > { %v1738_v47 = vmax.f32 %v1692_v60, 0.0 }
 0x3f5   : > { %v1853_v12 = vpop.f32.mrf.mxu1 }
 0x3f6   : > { %v1854_v42 = vadd.f32 %v5230_v6, %v1853_v12 }
 0x3f8   : > { %v1926_v53 = vmax.f32 %v1854_v42, 0.0 }
 0x3f9   : > { %v1693_v10 = vpop.f32.mrf.mxu0 }
 0x3fa   : > { %v1694_v1 = vadd.f32 %v5126_v37, %v1693_v10  ;;  %v1972_v33 = vpack.c.bf16 %v1926_v53, %v1925_v45 }
 0x3fc   : > { %v1739_v14 = vmax.f32 %v1694_v1, 0.0  ;;  %2055 = vmatmul.bf16.gmra.mxu2 %v1972_v33 }
 0x3fd   : > { %v1856_v21 = vpop.f32.mrf.mxu1 }
 0x3fe   : > { %v1776_v30 = vpack.c.bf16 %v1739_v14, %v1738_v47  ;;  %v1857_v49 = vadd.f32 %v5230_v6, %v1856_v21 }
 0x400   : > { %1895 = vmatmul.bf16.gmra.mxu1 %v1776_v30  ;;  %v1927_v29 = vmax.f32 %v1857_v49, 0.0 }
 0x401   : > { %v1696_v20 = vpop.f32.mrf.mxu0 }
 0x402   : > { %v1697_v19 = vadd.f32 %v5126_v37, %v1696_v20  ;;  %v3673_v20 = vld [vmem:[#allocation19 + $0x28] sm:$0xff] }
 0x403   : > { %2481 = vmatpush.bf16.msra.mxu0 %v3673_v20 }
 0x404   : > { %v1740_v26 = vmax.f32 %v1697_v19, 0.0 }
 0x405   : > { %v1858_v27 = vpop.f32.mrf.mxu1 }
 0x406   : > { %v1859_v55 = vadd.f32 %v5230_v6, %v1858_v27 }
 0x408   : > { %v1928_v0 = vmax.f32 %v1859_v55, 0.0 }
 0x409   : > { %v1698_v23 = vpop.f32.mrf.mxu0 }
 0x40a   : > { %v1699_v52 = vadd.f32 %v5126_v37, %v1698_v23  ;;  %v1973_v32 = vpack.c.bf16 %v1928_v0, %v1927_v29 }
 0x40c   : > { %v1741_v7 = vmax.f32 %v1699_v52, 0.0  ;;  %2060 = vmatmul.bf16.gmra.mxu2 %v1973_v32 }
 0x40d   : > { %v1861_v35 = vpop.f32.mrf.mxu1 }
 0x40e   : > { %v1777_v28 = vpack.c.bf16 %v1741_v7, %v1740_v26  ;;  %v1862_v41 = vadd.f32 %v5230_v6, %v1861_v35 }
 0x410   : > { %1900 = vmatmul.bf16.gmra.mxu1 %v1777_v28  ;;  %v1929_v45 = vmax.f32 %v1862_v41, 0.0 }
 0x411   : > { %v1701_v38 = vpop.f32.mrf.mxu0 }
 0x412   : > { %v1702_v60 = vadd.f32 %v5126_v37, %v1701_v38 }
 0x414   : > { %v1742_v47 = vmax.f32 %v1702_v60, 0.0 }
 0x415   : > { %v1863_v12 = vpop.f32.mrf.mxu1 }
 0x416   : > { %v1864_v42 = vadd.f32 %v5230_v6, %v1863_v12 }
 0x418   : > { %v1930_v53 = vmax.f32 %v1864_v42, 0.0 }
 0x419   : > { %v1703_v10 = vpop.f32.mrf.mxu0 }
 0x41a   : > { %v1704_v1 = vadd.f32 %v5126_v37, %v1703_v10  ;;  %v1974_v33 = vpack.c.bf16 %v1930_v53, %v1929_v45 }
 0x41c   : > { %v1743_v14 = vmax.f32 %v1704_v1, 0.0  ;;  %2065 = vmatmul.bf16.gmra.mxu2 %v1974_v33 }
 0x41d   : > { %v1866_v21 = vpop.f32.mrf.mxu1 }
 0x41e   : > { %v1778_v30 = vpack.c.bf16 %v1743_v14, %v1742_v47  ;;  %v1867_v25 = vadd.f32 %v5230_v6, %v1866_v21 }
 0x420   : > { %1905 = vmatmul.bf16.gmra.mxu1 %v1778_v30  ;;  %v1931_v29 = vmax.f32 %v1867_v25, 0.0 }
 0x421   : > { %v1706_v49 = vpop.f32.mrf.mxu0 }
 0x422   : > { %v1707_v19 = vadd.f32 %v5126_v37, %v1706_v49  ;;  %v3672_v49 = vld [vmem:[#allocation19 + $0x20] sm:$0xff] }
 0x423   : > { %2482 = vmatpush.bf16.msra.mxu0 %v3672_v49 }
 0x424   : > { %v1744_v26 = vmax.f32 %v1707_v19, 0.0 }
 0x425   : > { %v1868_v27 = vpop.f32.mrf.mxu1 }
 0x426   : > { %v1869_v55 = vadd.f32 %v5230_v6, %v1868_v27 }
 0x428   : > { %v1932_v0 = vmax.f32 %v1869_v55, 0.0 }
 0x429   : > { %v1708_v23 = vpop.f32.mrf.mxu0 }
 0x42a   : > { %v1709_v52 = vadd.f32 %v5126_v37, %v1708_v23  ;;  %v1975_v32 = vpack.c.bf16 %v1932_v0, %v1931_v29 }
 0x42c   : > { %v1745_v7 = vmax.f32 %v1709_v52, 0.0  ;;  %2070 = vmatmul.bf16.gmra.mxu2 %v1975_v32 }
 0x42d   : > { %v1871_v35 = vpop.f32.mrf.mxu1 }
 0x42e   : > { %v1779_v28 = vpack.c.bf16 %v1745_v7, %v1744_v26  ;;  %v1872_v41 = vadd.f32 %v5230_v6, %v1871_v35 }
 0x430   : > { %1910 = vmatmul.bf16.gmra.mxu1 %v1779_v28  ;;  %v1933_v45 = vmax.f32 %v1872_v41, 0.0 }
 0x431   : > { %v1711_v38 = vpop.f32.mrf.mxu0 }
 0x432   : > { %v1712_v60 = vadd.f32 %v5126_v37, %v1711_v38 }
 0x434   : > { %v1746_v47 = vmax.f32 %v1712_v60, 0.0 }
 0x435   : > { %v1873_v12 = vpop.f32.mrf.mxu1 }
 0x436   : > { %v1874_v42 = vadd.f32 %v5230_v6, %v1873_v12  ;;  %v3671_v12 = vld [vmem:[#allocation19 + $0x18] sm:$0xff] }
 0x437   : > { %2483 = vmatpush.bf16.msra.mxu0 %v3671_v12 }
 0x438   : > { %v1934_v53 = vmax.f32 %v1874_v42, 0.0 }
 0x439   : > { %v1713_v10 = vpop.f32.mrf.mxu0 }
 0x43a   : > { %v1714_v1 = vadd.f32 %v5126_v37, %v1713_v10  ;;  %v1976_v33 = vpack.c.bf16 %v1934_v53, %v1933_v45 }
 0x43c   : > { %v1747_v14 = vmax.f32 %v1714_v1, 0.0  ;;  %2075 = vmatmul.bf16.gmra.mxu2 %v1976_v33 }
 0x43d   : > { %v1876_v21 = vpop.f32.mrf.mxu1 }
 0x43e   : > { %v1780_v30 = vpack.c.bf16 %v1747_v14, %v1746_v47  ;;  %v1877_v20 = vadd.f32 %v5230_v6, %v1876_v21 }
 0x440   : > { %1915 = vmatmul.bf16.gmra.mxu1 %v1780_v30  ;;  %v1935_v55 = vmax.f32 %v1877_v20, 0.0 }
 0x445   : > { %v1878_v25 = vpop.f32.mrf.mxu1 }
 0x446   : > { %v1879_v27 = vadd.f32 %v5230_v6, %v1878_v25 }
 0x448   : > { %v1936_v29 = vmax.f32 %v1879_v27, 0.0  ;;  %v3683_v27 = vld [vmem:[#allocation20 + $0x38] sm:$0xff] }
 0x449   : > { %2684 = vmatpush.bf16.msra.mxu1 %v3683_v27  ;;  %v3682_v27 = vld [vmem:[#allocation20 + $0x30] sm:$0xff] }
 0x44a   : > { %v1977_v19 = vpack.c.bf16 %v1936_v29, %v1935_v55 }
 0x44c   : > { %2080 = vmatmul.bf16.gmra.mxu2 %v1977_v19 }
 0x44d   : > { %v1881_v0 = vpop.f32.mrf.mxu1  ;;  %2685 = vmatpush.bf16.msra.mxu1 %v3682_v27 }
 0x44e   : > { %v1882_v37 = vadd.f32 %v5230_v6, %v1881_v0 }
 0x450   : > { %v1937_v32 = vmax.f32 %v1882_v37, 0.0 }
 0x455   : > { %v1883_v23 = vpop.f32.mrf.mxu1 }
 0x456   : > { %v1884_v52 = vadd.f32 %v5230_v6, %v1883_v23 }
 0x458   : > { %v1938_v26 = vmax.f32 %v1884_v52, 0.0 }
 0x45a   : > { %v1978_v7 = vpack.c.bf16 %v1938_v26, %v1937_v32 }
 0x45c   : > { %2085 = vmatmul.bf16.gmra.mxu2 %v1978_v7 }
 0x45d   : > { %v1886_v35 = vpop.f32.mrf.mxu1 }
 0x45e   : > { %v1887_v38 = vadd.f32 %v5230_v6, %v1886_v35 }
 0x45f   : > { %v2046_v28 = vpop.f32.mrf.mxu2 }
 0x460   : > { %v2047_v41 = vadd.f32 %v5264_v13, %v2046_v28  ;;  %v1939_v53 = vmax.f32 %v1887_v38, 0.0 }
 0x462   : > { %v2126_v10 = vmax.f32 %v2047_v41, 0.0 }
 0x464   : > { %v2158_v21 = vadd.f32 %v2126_v10, %v5002_v16 }
 0x465   : > { %v1888_v42 = vpop.f32.mrf.mxu1 }
 0x466   : > { %v1889_v45 = vadd.f32 %v5230_v6, %v1888_v42 }
 0x467   : > { %v2048_v60 = vpop.f32.mrf.mxu2 }
 0x468   : > { %v1940_v1 = vmax.f32 %v1889_v45, 0.0  ;;  %v2049_v33 = vadd.f32 %v5264_v13, %v2048_v60  ;;  %v3670_v45 = vld [vmem:[#allocation19 + $0x10] sm:$0xff] }
 0x469   : > { %2484 = vmatpush.bf16.msra.mxu0 %v3670_v45 }
 0x46a   : > { %v2127_v47 = vmax.f32 %v2049_v33, 0.0  ;;  %v1979_v14 = vpack.c.bf16 %v1940_v1, %v1939_v53 }
 0x46c   : > { %v2159_v30 = vadd.f32 %v2127_v47, %v5006_v22  ;;  %2090 = vmatmul.bf16.gmra.mxu2 %v1979_v14 }
 0x46d   : > { %v1891_v20 = vpop.f32.mrf.mxu1 }
 0x46e   : > { %v2207_v49 = vpack.c.bf16 %v2159_v30, %v2158_v21  ;;  %v1892_v55 = vadd.f32 %v5230_v6, %v1891_v20 }
 0x46f   : > { %v2051_v25 = vpop.f32.mrf.mxu2 }
 0x470   : > { %2282 = vmatmul.bf16.vlgmr.msra.gmra.mxu3 %v2207_v49  ;;  %v2052_v29 = vadd.f32 %v5264_v13, %v2051_v25  ;;  %v1941_v23 = vmax.f32 %v1892_v55, 0.0 }
 0x472   : > { %v2128_v52 = vmax.f32 %v2052_v29, 0.0 }
 0x474   : > { %v2160_v7 = vadd.f32 %v2128_v52, %v5016_v18 }
 0x475   : > { %v1893_v19 = vpop.f32.mrf.mxu1 }
 0x476   : > { %v1894_v0 = vadd.f32 %v5230_v6, %v1893_v19 }
 0x477   : > { %v2053_v37 = vpop.f32.mrf.mxu2 }
 0x478   : > { %v1942_v16 = vmax.f32 %v1894_v0, 0.0  ;;  %v2054_v22 = vadd.f32 %v5264_v13, %v2053_v37 }
 0x47a   : > { %v2129_v32 = vmax.f32 %v2054_v22, 0.0  ;;  %v1980_v26 = vpack.c.bf16 %v1942_v16, %v1941_v23 }
 0x47c   : > { %v2161_v35 = vadd.f32 %v2129_v32, %v5020_v62  ;;  %2095 = vmatmul.bf16.gmra.mxu2 %v1980_v26 }
 0x47d   : > { %v1896_v28 = vpop.f32.mrf.mxu1 }
 0x47e   : > { %v2208_v38 = vpack.c.bf16 %v2161_v35, %v2160_v7  ;;  %v1897_v12 = vadd.f32 %v5230_v6, %v1896_v28 }
 0x47f   : > { %v2056_v41 = vpop.f32.mrf.mxu2 }
 0x480   : > { %2287 = vmatmul.bf16.gmra.mxu3 %v2208_v38  ;;  %v2057_v42 = vadd.f32 %v5264_v13, %v2056_v41  ;;  %v1943_v1 = vmax.f32 %v1897_v12, 0.0  ;;  %v3669_v12 = vld [vmem:[#allocation19 + $0x8] sm:$0xff] }
 0x481   : > { %2485 = vmatpush.bf16.msra.mxu0 %v3669_v12 }
 0x482   : > { %v2130_v33 = vmax.f32 %v2057_v42, 0.0 }
 0x484   : > { %v2162_v21 = vadd.f32 %v2130_v33, %v5030_v59 }
 0x485   : > { %v1898_v60 = vpop.f32.mrf.mxu1 }
 0x486   : > { %v1899_v53 = vadd.f32 %v5230_v6, %v1898_v60 }
 0x487   : > { %v2058_v10 = vpop.f32.mrf.mxu2 }
 0x488   : > { %v1944_v18 = vmax.f32 %v1899_v53, 0.0  ;;  %v2059_v62 = vadd.f32 %v5264_v13, %v2058_v10 }
 0x48a   : > { %v2131_v47 = vmax.f32 %v2059_v62, 0.0  ;;  %v1981_v14 = vpack.c.bf16 %v1944_v18, %v1943_v1 }
 0x48c   : > { %v2163_v30 = vadd.f32 %v2131_v47, %v5034_v61  ;;  %2100 = vmatmul.bf16.gmra.mxu2 %v1981_v14  ;;  %v3681_v47 = vld [vmem:[#allocation20 + $0x28] sm:$0xff] }
 0x48d   : > { %v1901_v20 = vpop.f32.mrf.mxu1  ;;  %2686 = vmatpush.bf16.msra.mxu1 %v3681_v47 }
 0x48e   : > { %v2209_v49 = vpack.c.bf16 %v2163_v30, %v2162_v21  ;;  %v1902_v55 = vadd.f32 %v5230_v6, %v1901_v20 }
 0x48f   : > { %v2061_v25 = vpop.f32.mrf.mxu2 }
 0x490   : > { %2292 = vmatmul.bf16.gmra.mxu3 %v2209_v49  ;;  %v2062_v29 = vadd.f32 %v5264_v13, %v2061_v25  ;;  %v1945_v23 = vmax.f32 %v1902_v55, 0.0 }
 0x492   : > { %v2132_v52 = vmax.f32 %v2062_v29, 0.0 }
 0x494   : > { %v2164_v32 = vadd.f32 %v2132_v52, %v5046_v8 }
 0x495   : > { %v1903_v19 = vpop.f32.mrf.mxu1 }
 0x496   : > { %v1904_v0 = vadd.f32 %v5230_v6, %v1903_v19 }
 0x497   : > { %v2063_v37 = vpop.f32.mrf.mxu2 }
 0x498   : > { %v1946_v59 = vmax.f32 %v1904_v0, 0.0  ;;  %v2064_v61 = vadd.f32 %v5264_v13, %v2063_v37 }
 0x49a   : > { %v2133_v16 = vmax.f32 %v2064_v61, 0.0  ;;  %v1982_v22 = vpack.c.bf16 %v1946_v59, %v1945_v23 }
 0x49c   : > { %v2165_v26 = vadd.f32 %v2133_v16, %v5050_v58  ;;  %2105 = vmatmul.bf16.gmra.mxu2 %v1982_v22 }
 0x49d   : > { %v1906_v7 = vpop.f32.mrf.mxu1 }
 0x49e   : > { %v2210_v35 = vpack.c.bf16 %v2165_v26, %v2164_v32  ;;  %v1907_v38 = vadd.f32 %v5230_v6, %v1906_v7  ;;  %v3668_v26 = vld [vmem:[#allocation19] sm:$0xff] }
 0x49f   : > { %v2066_v28 = vpop.f32.mrf.mxu2  ;;  %2486 = vmatpush.bf16.msra.mxu0 %v3668_v26 }
 0x4a0   : > { %2297 = vmatmul.bf16.gmra.mxu3 %v2210_v35  ;;  %v2067_v41 = vadd.f32 %v5264_v13, %v2066_v28  ;;  %v1947_v53 = vmax.f32 %v1907_v38, 0.0 }
 0x4a2   : > { %v2134_v10 = vmax.f32 %v2067_v41, 0.0 }
 0x4a4   : > { %v2166_v18 = vadd.f32 %v2134_v10, %v5062_v44 }
 0x4a5   : > { %v1908_v42 = vpop.f32.mrf.mxu1 }
 0x4a6   : > { %v1909_v45 = vadd.f32 %v5230_v6, %v1908_v42 }
 0x4a7   : > { %v2068_v60 = vpop.f32.mrf.mxu2 }
 0x4a8   : > { %v1948_v8 = vmax.f32 %v1909_v45, 0.0  ;;  %v2069_v58 = vadd.f32 %v5264_v13, %v2068_v60 }
 0x4aa   : > { %v2135_v1 = vmax.f32 %v2069_v58, 0.0  ;;  %v1983_v33 = vpack.c.bf16 %v1948_v8, %v1947_v53  ;;  %v3680_v53 = vld [vmem:[#allocation20 + $0x20] sm:$0xff] }
 0x4ab   : > { %2687 = vmatpush.bf16.msra.mxu1 %v3680_v53 }
 0x4ac   : > { %v2167_v62 = vadd.f32 %v2135_v1, %v5066_v36  ;;  %2110 = vmatmul.bf16.gmra.mxu2 %v1983_v33 }
 0x4ad   : > { %v1911_v14 = vpop.f32.mrf.mxu1 }
 0x4ae   : > { %v2211_v21 = vpack.c.bf16 %v2167_v62, %v2166_v18  ;;  %v1912_v20 = vadd.f32 %v5230_v6, %v1911_v14 }
 0x4af   : > { %v2071_v30 = vpop.f32.mrf.mxu2 }
 0x4b0   : > { %2302 = vmatmul.bf16.gmra.mxu3 %v2211_v21  ;;  %v2072_v49 = vadd.f32 %v5264_v13, %v2071_v30  ;;  %v1949_v29 = vmax.f32 %v1912_v20, 0.0 }
 0x4b2   : > { %v2136_v19 = vmax.f32 %v2072_v49, 0.0 }
 0x4b4   : > { %v2168_v23 = vadd.f32 %v2136_v19, %v5078_v57 }
 0x4b5   : > { %v1913_v25 = vpop.f32.mrf.mxu1 }
 0x4b6   : > { %v1914_v27 = vadd.f32 %v5230_v6, %v1913_v25 }
 0x4b7   : > { %v2073_v55 = vpop.f32.mrf.mxu2 }
 0x4b8   : > { %v1950_v44 = vmax.f32 %v1914_v27, 0.0  ;;  %v2074_v36 = vadd.f32 %v5264_v13, %v2073_v55 }
 0x4ba   : > { %v2137_v0 = vmax.f32 %v2074_v36, 0.0  ;;  %v1984_v37 = vpack.c.bf16 %v1950_v44, %v1949_v29  ;;  %v3679_v29 = vld [vmem:[#allocation20 + $0x18] sm:$0xff] }
 0x4bb   : > { %2688 = vmatpush.bf16.msra.mxu1 %v3679_v29  ;;  %v5317_v44 = vld [vmem:[#allocation5 + $0x7] ss:$0 sm:$0xff] }
 0x4bc   : > { %v2169_v52 = vadd.f32 %v2137_v0, %v5082_v63  ;;  %2115 = vmatmul.bf16.gmra.mxu2 %v1984_v37 }
 0x4bd   : > { %v1916_v59 = vpop.f32.mrf.mxu1 }
 0x4be   : > { %v2212_v61 = vpack.c.bf16 %v2169_v52, %v2168_v23  ;;  %v1917_v22 = vadd.f32 %v5230_v6, %v1916_v59 }
 0x4bf   : > { %v2076_v16 = vpop.f32.mrf.mxu2 }
 0x4c0   : > { %2307 = vmatmul.bf16.gmra.mxu3 %v2212_v61  ;;  %v2077_v32 = vadd.f32 %v5264_v13, %v2076_v16  ;;  %v1951_v38 = vmax.f32 %v1917_v22, 0.0  ;;  %v3691_v16 = vld [vmem:[#allocation22 + $0x38] sm:$0xff] }
 0x4c1   : > { %2889 = vmatpush.bf16.msra.mxu2 %v3691_v16 }
 0x4c2   : > { %v2138_v41 = vmax.f32 %v2077_v32, 0.0 }
 0x4c4   : > { %v2170_v45 = vadd.f32 %v2138_v41, %v5094_v56 }
 0x4c5   : > { %v1918_v7 = vpop.f32.mrf.mxu1 }
 0x4c6   : > { %v1919_v35 = vadd.f32 %v5230_v6, %v1918_v7 }
 0x4c7   : > { %v2078_v28 = vpop.f32.mrf.mxu2 }
 0x4c8   : > { %v1952_v57 = vmax.f32 %v1919_v35, 0.0  ;;  %v2079_v63 = vadd.f32 %v5264_v13, %v2078_v28 }
 0x4ca   : > { %v2139_v12 = vmax.f32 %v2079_v63, 0.0  ;;  %v1985_v42 = vpack.c.bf16 %v1952_v57, %v1951_v38 }
 0x4cc   : > { %v2171_v60 = vadd.f32 %v2139_v12, %v5098_v46  ;;  %2120 = vmatmul.bf16.gmra.mxu2 %v1985_v42 }
 0x4ce   : > { %v2213_v10 = vpack.c.bf16 %v2171_v60, %v2170_v45 }
 0x4cf   : > { %v2081_v8 = vpop.f32.mrf.mxu2 }
 0x4d0   : > { %2312 = vmatmul.bf16.gmra.mxu3 %v2213_v10  ;;  %v2082_v6 = vadd.f32 %v5264_v13, %v2081_v8 }
 0x4d2   : > { %v2140_v1 = vmax.f32 %v2082_v6, 0.0  ;;  %v3678_v6 = vld [vmem:[#allocation20 + $0x10] sm:$0xff] }
 0x4d3   : > { %2689 = vmatpush.bf16.msra.mxu1 %v3678_v6 }
 0x4d4   : > { %v2172_v62 = vadd.f32 %v2140_v1, %v5106_v4 }
 0x4d7   : > { %v2083_v58 = vpop.f32.mrf.mxu2 }
 0x4d8   : > { %v2084_v33 = vadd.f32 %v5264_v13, %v2083_v58 }
 0x4da   : > { %v2141_v18 = vmax.f32 %v2084_v33, 0.0 }
 0x4dc   : > { %v2173_v47 = vadd.f32 %v2141_v18, %v5110_v51 }
 0x4de   : > { %v2214_v56 = vpack.c.bf16 %v2173_v47, %v2172_v62 }
 0x4df   : > { %v2086_v14 = vpop.f32.mrf.mxu2 }
 0x4e0   : > { %2317 = vmatmul.bf16.gmra.mxu3 %v2214_v56  ;;  %v2087_v46 = vadd.f32 %v5264_v13, %v2086_v14 }
 0x4e2   : > { %v2142_v30 = vmax.f32 %v2087_v46, 0.0 }
 0x4e4   : > { %v2174_v25 = vadd.f32 %v2142_v30, %v5118_v11 }
 0x4e7   : > { %v2088_v21 = vpop.f32.mrf.mxu2 }
 0x4e8   : > { %v2089_v20 = vadd.f32 %v5264_v13, %v2088_v21 }
 0x4ea   : > { %v2143_v49 = vmax.f32 %v2089_v20, 0.0  ;;  %v3690_v20 = vld [vmem:[#allocation22 + $0x30] sm:$0xff] }
 0x4eb   : > { %2890 = vmatpush.bf16.msra.mxu2 %v3690_v20 }
 0x4ec   : > { %v2175_v27 = vadd.f32 %v2143_v49, %v5122_v40 }
 0x4ee   : > { %v2215_v55 = vpack.c.bf16 %v2175_v27, %v2174_v25 }
 0x4ef   : > { %v2091_v19 = vpop.f32.mrf.mxu2 }
 0x4f0   : > { %2322 = vmatmul.bf16.gmra.mxu3 %v2215_v55  ;;  %v2092_v51 = vadd.f32 %v5264_v13, %v2091_v19 }
 0x4f2   : > { %v2144_v0 = vmax.f32 %v2092_v51, 0.0 }
 0x4f3   : > { %v2283_v4 = vpop.f32.mrf.mxu3 }
 0x4f4   : > { %v2284_v23 = vadd.f32 %v5317_v44, %v2283_v4  ;;  %v2176_v40 = vadd.f32 %v2144_v0, %v5134_v39 }
 0x4f6   : > { %v2363_v22 = vmax.f32 %v2284_v23, 0.0 }
 0x4f7   : > { %v2093_v36 = vpop.f32.mrf.mxu2 }
 0x4f8   : > { %v2094_v37 = vadd.f32 %v5264_v13, %v2093_v36 }
 0x4fa   : > { %v2145_v52 = vmax.f32 %v2094_v37, 0.0 }
 0x4fb   : > { %v2285_v11 = vpop.f32.mrf.mxu3 }
 0x4fc   : > { %v2177_v59 = vadd.f32 %v2145_v52, %v5138_v31  ;;  %v2286_v61 = vadd.f32 %v5317_v44, %v2285_v11 }
 0x4fe   : > { %v2364_v32 = vmax.f32 %v2286_v61, 0.0  ;;  %v2216_v26 = vpack.c.bf16 %v2177_v59, %v2176_v40 }
 0x4ff   : > { %v2096_v7 = vpop.f32.mrf.mxu2 }
 0x500   : > { %v2412_v35 = vpack.c.bf16 %v2364_v32, %v2363_v22  ;;  %2327 = vmatmul.bf16.gmra.mxu3 %v2216_v26  ;;  %v2097_v38 = vadd.f32 %v5264_v13, %v2096_v7  ;;  %v3677_v32 = vld [vmem:[#allocation20 + $0x8] sm:$0xff] }
 0x501   : > { %2690 = vmatpush.bf16.msra.mxu1 %v3677_v32 }
 0x502   : > { %2487 = vmatmul.bf16.vlgmr.msra.gmra.mxu0 %v2412_v35  ;;  %v2146_v57 = vmax.f32 %v2097_v38, 0.0 }
 0x503   : > { %v2288_v28 = vpop.f32.mrf.mxu3 }
 0x504   : > { %v2289_v31 = vadd.f32 %v5317_v44, %v2288_v28  ;;  %v2178_v42 = vadd.f32 %v2146_v57, %v5148_v5 }
 0x506   : > { %v2365_v53 = vmax.f32 %v2289_v31, 0.0 }
 0x507   : > { %v2098_v41 = vpop.f32.mrf.mxu2 }
 0x508   : > { %v2099_v39 = vadd.f32 %v5264_v13, %v2098_v41 }
 0x50a   : > { %v2147_v63 = vmax.f32 %v2099_v39, 0.0 }
 0x50b   : > { %v2290_v12 = vpop.f32.mrf.mxu3 }
 0x50c   : > { %v2179_v45 = vadd.f32 %v2147_v63, %v5152_v50  ;;  %v2291_v60 = vadd.f32 %v5317_v44, %v2290_v12  ;;  %v3689_v63 = vld [vmem:[#allocation22 + $0x28] sm:$0xff] }
 0x50d   : > { %2891 = vmatpush.bf16.msra.mxu2 %v3689_v63 }
 0x50e   : > { %v2366_v10 = vmax.f32 %v2291_v60, 0.0  ;;  %v2217_v8 = vpack.c.bf16 %v2179_v45, %v2178_v42 }
 0x50f   : > { %v2101_v58 = vpop.f32.mrf.mxu2 }
 0x510   : > { %2332 = vmatmul.bf16.gmra.mxu3 %v2217_v8  ;;  %v2413_v1 = vpack.c.bf16 %v2366_v10, %v2365_v53  ;;  %v2102_v18 = vadd.f32 %v5264_v13, %v2101_v58 }
 0x512   : > { %2492 = vmatmul.bf16.gmra.mxu0 %v2413_v1  ;;  %v2148_v47 = vmax.f32 %v2102_v18, 0.0 }
 0x513   : > { %v2293_v33 = vpop.f32.mrf.mxu3 }
 0x514   : > { %v2294_v50 = vadd.f32 %v5317_v44, %v2293_v33  ;;  %v2180_v46 = vadd.f32 %v2148_v47, %v5162_v9 }
 0x516   : > { %v2367_v49 = vmax.f32 %v2294_v50, 0.0 }
 0x517   : > { %v2103_v62 = vpop.f32.mrf.mxu2 }
 0x518   : > { %v2104_v5 = vadd.f32 %v5264_v13, %v2103_v62 }
 0x51a   : > { %v2149_v56 = vmax.f32 %v2104_v5, 0.0 }
 0x51b   : > { %v2295_v14 = vpop.f32.mrf.mxu3 }
 0x51c   : > { %v2181_v21 = vadd.f32 %v2149_v56, %v5166_v48  ;;  %v2296_v30 = vadd.f32 %v5317_v44, %v2295_v14 }
 0x51e   : > { %v2368_v25 = vmax.f32 %v2296_v30, 0.0  ;;  %v2218_v27 = vpack.c.bf16 %v2181_v21, %v2180_v46  ;;  %v3676_v21 = vld [vmem:[#allocation20] sm:$0xff] }
 0x51f   : > { %v2106_v55 = vpop.f32.mrf.mxu2  ;;  %2691 = vmatpush.bf16.msra.mxu1 %v3676_v21 }
 0x520   : > { %2337 = vmatmul.bf16.gmra.mxu3 %v2218_v27  ;;  %v2414_v29 = vpack.c.bf16 %v2368_v25, %v2367_v49  ;;  %v2107_v4 = vadd.f32 %v5264_v13, %v2106_v55  ;;  %v3688_v49 = vld [vmem:[#allocation22 + $0x20] sm:$0xff] }
 0x521   : > { %2892 = vmatpush.bf16.msra.mxu2 %v3688_v49 }
 0x522   : > { %2497 = vmatmul.bf16.gmra.mxu0 %v2414_v29  ;;  %v2150_v36 = vmax.f32 %v2107_v4, 0.0 }
 0x523   : > { %v2298_v19 = vpop.f32.mrf.mxu3 }
 0x524   : > { %v2299_v48 = vadd.f32 %v5317_v44, %v2298_v19  ;;  %v2182_v23 = vadd.f32 %v2150_v36, %v5176_v2 }
 0x526   : > { %v2369_v40 = vmax.f32 %v2299_v48, 0.0 }
 0x527   : > { %v2108_v51 = vpop.f32.mrf.mxu2 }
 0x528   : > { %v2109_v9 = vadd.f32 %v5264_v13, %v2108_v51 }
 0x52a   : > { %v2151_v0 = vmax.f32 %v2109_v9, 0.0 }
 0x52b   : > { %v2300_v37 = vpop.f32.mrf.mxu3 }
 0x52c   : > { %v2183_v52 = vadd.f32 %v2151_v0, %v5180_v17  ;;  %v2301_v11 = vadd.f32 %v5317_v44, %v2300_v37 }
 0x52e   : > { %v2370_v59 = vmax.f32 %v2301_v11, 0.0  ;;  %v2219_v61 = vpack.c.bf16 %v2183_v52, %v2182_v23 }
 0x52f   : > { %v2111_v16 = vpop.f32.mrf.mxu2 }
 0x530   : > { %2342 = vmatmul.bf16.gmra.mxu3 %v2219_v61  ;;  %v2415_v22 = vpack.c.bf16 %v2370_v59, %v2369_v40  ;;  %v2112_v7 = vadd.f32 %v5264_v13, %v2111_v16  ;;  %v3687_v61 = vld [vmem:[#allocation22 + $0x18] sm:$0xff] }
 0x531   : > { %2893 = vmatpush.bf16.msra.mxu2 %v3687_v61 }
 0x532   : > { %2502 = vmatmul.bf16.gmra.mxu0 %v2415_v22  ;;  %v2152_v28 = vmax.f32 %v2112_v7, 0.0 }
 0x533   : > { %v2303_v26 = vpop.f32.mrf.mxu3 }
 0x534   : > { %v2304_v17 = vadd.f32 %v5317_v44, %v2303_v26  ;;  %v2184_v57 = vadd.f32 %v2152_v28, %v5190_v3  ;;  %v5364_v28 = vld [vmem:[#allocation5 + $0x8] ss:$0 sm:$0xff] }
 0x536   : > { %v2371_v12 = vmax.f32 %v2304_v17, 0.0 }
 0x537   : > { %v2113_v35 = vpop.f32.mrf.mxu2 }
 0x538   : > { %v2114_v2 = vadd.f32 %v5264_v13, %v2113_v35 }
 0x53a   : > { %v2153_v38 = vmax.f32 %v2114_v2, 0.0 }
 0x53b   : > { %v2305_v41 = vpop.f32.mrf.mxu3 }
 0x53c   : > { %v2185_v39 = vadd.f32 %v2153_v38, %v5194_v43  ;;  %v2306_v31 = vadd.f32 %v5317_v44, %v2305_v41 }
 0x53e   : > { %v2372_v42 = vmax.f32 %v2306_v31, 0.0  ;;  %v2220_v45 = vpack.c.bf16 %v2185_v39, %v2184_v57 }
 0x53f   : > { %v2116_v60 = vpop.f32.mrf.mxu2 }
 0x540   : > { %v2416_v53 = vpack.c.bf16 %v2372_v42, %v2371_v12  ;;  %2347 = vmatmul.bf16.gmra.mxu3 %v2220_v45  ;;  %v2117_v8 = vadd.f32 %v5264_v13, %v2116_v60 }
 0x542   : > { %2507 = vmatmul.bf16.gmra.mxu0 %v2416_v53  ;;  %v2154_v58 = vmax.f32 %v2117_v8, 0.0 }
 0x543   : > { %v2308_v10 = vpop.f32.mrf.mxu3 }
 0x544   : > { %v2309_v43 = vadd.f32 %v5317_v44, %v2308_v10  ;;  %v2186_v18 = vadd.f32 %v2154_v58, %v5204_v54 }
 0x546   : > { %v2373_v5 = vmax.f32 %v2309_v43, 0.0 }
 0x547   : > { %v2118_v6 = vpop.f32.mrf.mxu2 }
 0x548   : > { %v2119_v3 = vadd.f32 %v5264_v13, %v2118_v6 }
 0x54a   : > { %v2155_v1 = vmax.f32 %v2119_v3, 0.0 }
 0x54b   : > { %v2310_v33 = vpop.f32.mrf.mxu3 }
 0x54c   : > { %v2187_v62 = vadd.f32 %v2155_v1, %v5208_v15  ;;  %v2311_v47 = vadd.f32 %v5317_v44, %v2310_v33 }
 0x54e   : > { %v2374_v50 = vmax.f32 %v2311_v47, 0.0  ;;  %v2221_v56 = vpack.c.bf16 %v2187_v62, %v2186_v18  ;;  %v3686_v18 = vld [vmem:[#allocation22 + $0x10] sm:$0xff] }
 0x54f   : > { %v2121_v14 = vpop.f32.mrf.mxu2  ;;  %2894 = vmatpush.bf16.msra.mxu2 %v3686_v18 }
 0x550   : > { %v2417_v46 = vpack.c.bf16 %v2374_v50, %v2373_v5  ;;  %2352 = vmatmul.bf16.gmra.mxu3 %v2221_v56  ;;  %v2122_v20 = vadd.f32 %v5264_v13, %v2121_v14 }
 0x552   : > { %2512 = vmatmul.bf16.gmra.mxu0 %v2417_v46  ;;  %v2156_v27 = vmax.f32 %v2122_v20, 0.0 }
 0x553   : > { %v2313_v30 = vpop.f32.mrf.mxu3 }
 0x554   : > { %v2314_v15 = vadd.f32 %v5317_v44, %v2313_v30  ;;  %v2188_v19 = vadd.f32 %v2156_v27, %v5218_v34 }
 0x556   : > { %v2375_v36 = vmax.f32 %v2314_v15, 0.0 }
 0x557   : > { %v2123_v25 = vpop.f32.mrf.mxu2 }
 0x558   : > { %v2124_v54 = vadd.f32 %v5264_v13, %v2123_v25 }
 0x55a   : > { %v2157_v55 = vmax.f32 %v2124_v54, 0.0 }
 0x55b   : > { %v2315_v29 = vpop.f32.mrf.mxu3 }
 0x55c   : > { %v2189_v4 = vadd.f32 %v2157_v55, %v5222_v24  ;;  %v2316_v51 = vadd.f32 %v5317_v44, %v2315_v29 }
 0x55e   : > { %v2376_v9 = vmax.f32 %v2316_v51, 0.0  ;;  %v2222_v48 = vpack.c.bf16 %v2189_v4, %v2188_v19 }
 0x560   : > { %v2418_v0 = vpack.c.bf16 %v2376_v9, %v2375_v36  ;;  %2357 = vmatmul.bf16.gmra.mxu3 %v2222_v48 }
 0x562   : > { %2517 = vmatmul.bf16.gmra.mxu0 %v2418_v0 }
 0x563   : > { %v2318_v37 = vpop.f32.mrf.mxu3 }
 0x564   : > { %v2319_v13 = vadd.f32 %v5317_v44, %v2318_v37 }
 0x566   : > { %v2377_v11 = vmax.f32 %v2319_v13, 0.0 }
 0x56b   : > { %v2320_v23 = vpop.f32.mrf.mxu3 }
 0x56c   : > { %v2321_v52 = vadd.f32 %v5317_v44, %v2320_v23 }
 0x56e   : > { %v2378_v40 = vmax.f32 %v2321_v52, 0.0 }
 0x570   : > { %v2419_v59 = vpack.c.bf16 %v2378_v40, %v2377_v11 }
 0x572   : > { %2522 = vmatmul.bf16.gmra.mxu0 %v2419_v59 }
 0x573   : > { %v2323_v34 = vpop.f32.mrf.mxu3 }
 0x574   : > { %v2324_v24 = vadd.f32 %v5317_v44, %v2323_v34  ;;  %v3685_v34 = vld [vmem:[#allocation22 + $0x8] sm:$0xff] }
 0x575   : > { %2895 = vmatpush.bf16.msra.mxu2 %v3685_v34 }
 0x576   : > { %v2379_v32 = vmax.f32 %v2324_v24, 0.0 }
 0x57b   : > { %v2325_v16 = vpop.f32.mrf.mxu3 }
 0x57c   : > { %v2326_v22 = vadd.f32 %v5317_v44, %v2325_v16 }
 0x57e   : > { %v2380_v26 = vmax.f32 %v2326_v22, 0.0 }
 0x57f   : > { %v2488_v7 = vpop.f32.mrf.mxu0 }
 0x580   : > { %v2420_v35 = vpack.c.bf16 %v2380_v26, %v2379_v32  ;;  %v2489_v17 = vadd.f32 %v5364_v28, %v2488_v7 }
 0x582   : > { %2527 = vmatmul.bf16.gmra.mxu0 %v2420_v35  ;;  %v2568_v57 = vmax.f32 %v2489_v17, 0.0 }
 0x583   : > { %v2328_v2 = vpop.f32.mrf.mxu3 }
 0x584   : > { %v2329_v39 = vadd.f32 %v5317_v44, %v2328_v2 }
 0x586   : > { %v2381_v45 = vmax.f32 %v2329_v39, 0.0 }
 0x587   : > { %v2490_v38 = vpop.f32.mrf.mxu0 }
 0x588   : > { %v2491_v41 = vadd.f32 %v5364_v28, %v2490_v38 }
 0x58a   : > { %v2569_v31 = vmax.f32 %v2491_v41, 0.0 }
 0x58b   : > { %v2330_v63 = vpop.f32.mrf.mxu3 }
 0x58c   : > { %v2617_v12 = vpack.c.bf16 %v2569_v31, %v2568_v57  ;;  %v2331_v42 = vadd.f32 %v5317_v44, %v2330_v63 }
 0x58e   : > { %v2382_v60 = vmax.f32 %v2331_v42, 0.0  ;;  %2692 = vmatmul.bf16.vlgmr.msra.gmra.mxu1 %v2617_v12 }
 0x58f   : > { %v2493_v53 = vpop.f32.mrf.mxu0 }
 0x590   : > { %v2421_v10 = vpack.c.bf16 %v2382_v60, %v2381_v45  ;;  %v2494_v6 = vadd.f32 %v5364_v28, %v2493_v53 }
 0x592   : > { %2532 = vmatmul.bf16.gmra.mxu0 %v2421_v10  ;;  %v2570_v43 = vmax.f32 %v2494_v6, 0.0 }
 0x593   : > { %v2333_v8 = vpop.f32.mrf.mxu3 }
 0x594   : > { %v2334_v1 = vadd.f32 %v5317_v44, %v2333_v8 }
 0x596   : > { %v2383_v50 = vmax.f32 %v2334_v1, 0.0 }
 0x597   : > { %v2495_v58 = vpop.f32.mrf.mxu0 }
 0x598   : > { %v2496_v3 = vadd.f32 %v5364_v28, %v2495_v58 }
 0x59a   : > { %v2571_v33 = vmax.f32 %v2496_v3, 0.0 }
 0x59b   : > { %v2335_v62 = vpop.f32.mrf.mxu3 }
 0x59c   : > { %v2336_v47 = vadd.f32 %v5317_v44, %v2335_v62  ;;  %v2618_v5 = vpack.c.bf16 %v2571_v33, %v2570_v43  ;;  %v3684_v33 = vld [vmem:[#allocation22] sm:$0xff] }
 0x59d   : > { %2896 = vmatpush.bf16.msra.mxu2 %v3684_v33 }
 0x59e   : > { %v2384_v56 = vmax.f32 %v2336_v47, 0.0  ;;  %2697 = vmatmul.bf16.gmra.mxu1 %v2618_v5 }
 0x59f   : > { %v2498_v14 = vpop.f32.mrf.mxu0 }
 0x5a0   : > { %v2422_v46 = vpack.c.bf16 %v2384_v56, %v2383_v50  ;;  %v2499_v30 = vadd.f32 %v5364_v28, %v2498_v14 }
 0x5a2   : > { %2537 = vmatmul.bf16.gmra.mxu0 %v2422_v46  ;;  %v2572_v25 = vmax.f32 %v2499_v30, 0.0 }
 0x5a3   : > { %v2338_v21 = vpop.f32.mrf.mxu3 }
 0x5a4   : > { %v2339_v27 = vadd.f32 %v5317_v44, %v2338_v21 }
 0x5a6   : > { %v2385_v19 = vmax.f32 %v2339_v27, 0.0 }
 0x5a7   : > { %v2500_v20 = vpop.f32.mrf.mxu0 }
 0x5a8   : > { %v2501_v49 = vadd.f32 %v5364_v28, %v2500_v20 }
 0x5aa   : > { %v2573_v54 = vmax.f32 %v2501_v49, 0.0 }
 0x5ab   : > { %v2340_v15 = vpop.f32.mrf.mxu3 }
 0x5ac   : > { %v2341_v55 = vadd.f32 %v5317_v44, %v2340_v15  ;;  %v2619_v29 = vpack.c.bf16 %v2573_v54, %v2572_v25 }
 0x5ae   : > { %v2386_v4 = vmax.f32 %v2341_v55, 0.0  ;;  %2702 = vmatmul.bf16.gmra.mxu1 %v2619_v29 }
 0x5af   : > { %v2503_v51 = vpop.f32.mrf.mxu0 }
 0x5b0   : > { %v2423_v36 = vpack.c.bf16 %v2386_v4, %v2385_v19  ;;  %v2504_v48 = vadd.f32 %v5364_v28, %v2503_v51 }
 0x5b2   : > { %2542 = vmatmul.bf16.gmra.mxu0 %v2423_v36  ;;  %v2574_v13 = vmax.f32 %v2504_v48, 0.0 }
 0x5b3   : > { %v2343_v9 = vpop.f32.mrf.mxu3 }
 0x5b4   : > { %v2344_v23 = vadd.f32 %v5317_v44, %v2343_v9 }
 0x5b6   : > { %v2387_v24 = vmax.f32 %v2344_v23, 0.0 }
 0x5b7   : > { %v2505_v0 = vpop.f32.mrf.mxu0 }
 0x5b8   : > { %v2506_v37 = vadd.f32 %v5364_v28, %v2505_v0 }
 0x5ba   : > { %v2575_v52 = vmax.f32 %v2506_v37, 0.0 }
 0x5bb   : > { %v2345_v11 = vpop.f32.mrf.mxu3 }
 0x5bc   : > { %v2346_v40 = vadd.f32 %v5317_v44, %v2345_v11  ;;  %v2620_v59 = vpack.c.bf16 %v2575_v52, %v2574_v13 }
 0x5be   : > { %v2388_v61 = vmax.f32 %v2346_v40, 0.0  ;;  %2707 = vmatmul.bf16.gmra.mxu1 %v2620_v59  ;;  %v5398_v59 = vld [vmem:[#allocation5 + $0x9] ss:$0 sm:$0xff] }
 0x5bf   : > { %v2508_v16 = vpop.f32.mrf.mxu0 }
 0x5c0   : > { %v2424_v22 = vpack.c.bf16 %v2388_v61, %v2387_v24  ;;  %v2509_v26 = vadd.f32 %v5364_v28, %v2508_v16 }
 0x5c2   : > { %2547 = vmatmul.bf16.gmra.mxu0 %v2424_v22  ;;  %v2576_v2 = vmax.f32 %v2509_v26, 0.0 }
 0x5c3   : > { %v2348_v32 = vpop.f32.mrf.mxu3 }
 0x5c4   : > { %v2349_v17 = vadd.f32 %v5317_v44, %v2348_v32 }
 0x5c6   : > { %v2389_v31 = vmax.f32 %v2349_v17, 0.0 }
 0x5c7   : > { %v2510_v7 = vpop.f32.mrf.mxu0 }
 0x5c8   : > { %v2511_v35 = vadd.f32 %v5364_v28, %v2510_v7 }
 0x5ca   : > { %v2577_v38 = vmax.f32 %v2511_v35, 0.0 }
 0x5cb   : > { %v2350_v41 = vpop.f32.mrf.mxu3 }
 0x5cc   : > { %v2621_v57 = vpack.c.bf16 %v2577_v38, %v2576_v2  ;;  %v2351_v39 = vadd.f32 %v5317_v44, %v2350_v41 }
 0x5ce   : > { %v2390_v63 = vmax.f32 %v2351_v39, 0.0  ;;  %2712 = vmatmul.bf16.gmra.mxu1 %v2621_v57 }
 0x5cf   : > { %v2513_v12 = vpop.f32.mrf.mxu0 }
 0x5d0   : > { %v2425_v42 = vpack.c.bf16 %v2390_v63, %v2389_v31  ;;  %v2514_v60 = vadd.f32 %v5364_v28, %v2513_v12 }
 0x5d2   : > { %2552 = vmatmul.bf16.gmra.mxu0 %v2425_v42  ;;  %v2578_v8 = vmax.f32 %v2514_v60, 0.0 }
 0x5d3   : > { %v2353_v45 = vpop.f32.mrf.mxu3 }
 0x5d4   : > { %v2354_v6 = vadd.f32 %v5317_v44, %v2353_v45 }
 0x5d6   : > { %v2391_v18 = vmax.f32 %v2354_v6, 0.0 }
 0x5d7   : > { %v2515_v53 = vpop.f32.mrf.mxu0 }
 0x5d8   : > { %v2516_v10 = vadd.f32 %v5364_v28, %v2515_v53 }
 0x5da   : > { %v2579_v58 = vmax.f32 %v2516_v10, 0.0 }
 0x5db   : > { %v2355_v3 = vpop.f32.mrf.mxu3 }
 0x5dc   : > { %v2622_v43 = vpack.c.bf16 %v2579_v58, %v2578_v8  ;;  %v2356_v1 = vadd.f32 %v5317_v44, %v2355_v3 }
 0x5de   : > { %v2392_v62 = vmax.f32 %v2356_v1, 0.0  ;;  %2717 = vmatmul.bf16.gmra.mxu1 %v2622_v43 }
 0x5df   : > { %v2518_v47 = vpop.f32.mrf.mxu0 }
 0x5e0   : > { %v2426_v5 = vpack.c.bf16 %v2392_v62, %v2391_v18  ;;  %v2519_v56 = vadd.f32 %v5364_v28, %v2518_v47 }
 0x5e2   : > { %2557 = vmatmul.bf16.gmra.mxu0 %v2426_v5  ;;  %v2580_v21 = vmax.f32 %v2519_v56, 0.0 }
 0x5e3   : > { %v2358_v50 = vpop.f32.mrf.mxu3 }
 0x5e4   : > { %v2359_v30 = vadd.f32 %v5317_v44, %v2358_v50 }
 0x5e6   : > { %v2393_v54 = vmax.f32 %v2359_v30, 0.0 }
 0x5e7   : > { %v2520_v14 = vpop.f32.mrf.mxu0 }
 0x5e8   : > { %v2521_v46 = vadd.f32 %v5364_v28, %v2520_v14 }
 0x5ea   : > { %v2581_v20 = vmax.f32 %v2521_v46, 0.0 }
 0x5eb   : > { %v2360_v49 = vpop.f32.mrf.mxu3 }
 0x5ec   : > { %v2623_v25 = vpack.c.bf16 %v2581_v20, %v2580_v21  ;;  %v2361_v27 = vadd.f32 %v5317_v44, %v2360_v49 }
 0x5ee   : > { %v2394_v15 = vmax.f32 %v2361_v27, 0.0  ;;  %2722 = vmatmul.bf16.gmra.mxu1 %v2623_v25 }
 0x5ef   : > { %v2523_v55 = vpop.f32.mrf.mxu0 }
 0x5f0   : > { %v2427_v29 = vpack.c.bf16 %v2394_v15, %v2393_v54  ;;  %v2524_v19 = vadd.f32 %v5364_v28, %v2523_v55 }
 0x5f2   : > { %2562 = vmatmul.bf16.gmra.mxu0 %v2427_v29  ;;  %v2582_v36 = vmax.f32 %v2524_v19, 0.0 }
 0x5f7   : > { %v2525_v4 = vpop.f32.mrf.mxu0 }
 0x5f8   : > { %v2526_v51 = vadd.f32 %v5364_v28, %v2525_v4 }
 0x5fa   : > { %v2583_v9 = vmax.f32 %v2526_v51, 0.0 }
 0x5fc   : > { %v2624_v48 = vpack.c.bf16 %v2583_v9, %v2582_v36 }
 0x5fe   : > { %2727 = vmatmul.bf16.gmra.mxu1 %v2624_v48 }
 0x5ff   : > { %v2528_v0 = vpop.f32.mrf.mxu0 }
 0x600   : > { %v2529_v37 = vadd.f32 %v5364_v28, %v2528_v0 }
 0x602   : > { %v2584_v23 = vmax.f32 %v2529_v37, 0.0 }
 0x607   : > { %v2530_v13 = vpop.f32.mrf.mxu0 }
 0x608   : > { %v2531_v44 = vadd.f32 %v5364_v28, %v2530_v13 }
 0x60a   : > { %v2585_v52 = vmax.f32 %v2531_v44, 0.0 }
 0x60b   : > { %v2693_v11 = vpop.f32.mrf.mxu1 }
 0x60c   : > { %v2625_v40 = vpack.c.bf16 %v2585_v52, %v2584_v23  ;;  %v2694_v24 = vadd.f32 %v5398_v59, %v2693_v11 }
 0x60e   : > { %2732 = vmatmul.bf16.gmra.mxu1 %v2625_v40  ;;  %v2773_v22 = vmax.f32 %v2694_v24, 0.0 }
 0x60f   : > { %v2533_v34 = vpop.f32.mrf.mxu0 }
 0x610   : > { %v2534_v32 = vadd.f32 %v5364_v28, %v2533_v34 }
 0x612   : > { %v2586_v17 = vmax.f32 %v2534_v32, 0.0 }
 0x613   : > { %v2695_v61 = vpop.f32.mrf.mxu1 }
 0x614   : > { %v2696_v16 = vadd.f32 %v5398_v59, %v2695_v61 }
 0x616   : > { %v2774_v26 = vmax.f32 %v2696_v16, 0.0 }
 0x617   : > { %v2535_v7 = vpop.f32.mrf.mxu0 }
 0x618   : > { %v2822_v35 = vpack.c.bf16 %v2774_v26, %v2773_v22  ;;  %v2536_v2 = vadd.f32 %v5364_v28, %v2535_v7 }
 0x61a   : > { %v2587_v38 = vmax.f32 %v2536_v2, 0.0  ;;  %2897 = vmatmul.bf16.vlgmr.msra.gmra.mxu2 %v2822_v35 }
 0x61b   : > { %v2698_v41 = vpop.f32.mrf.mxu1 }
 0x61c   : > { %v2626_v57 = vpack.c.bf16 %v2587_v38, %v2586_v17  ;;  %v2699_v31 = vadd.f32 %v5398_v59, %v2698_v41 }
 0x61e   : > { %2737 = vmatmul.bf16.gmra.mxu1 %v2626_v57  ;;  %v2775_v42 = vmax.f32 %v2699_v31, 0.0 }
 0x61f   : > { %v2538_v39 = vpop.f32.mrf.mxu0 }
 0x620   : > { %v2539_v45 = vadd.f32 %v5364_v28, %v2538_v39 }
 0x622   : > { %v2588_v6 = vmax.f32 %v2539_v45, 0.0 }
 0x623   : > { %v2700_v63 = vpop.f32.mrf.mxu1 }
 0x624   : > { %v2701_v12 = vadd.f32 %v5398_v59, %v2700_v63 }
 0x626   : > { %v2776_v60 = vmax.f32 %v2701_v12, 0.0 }
 0x627   : > { %v2540_v53 = vpop.f32.mrf.mxu0 }
 0x628   : > { %v2541_v10 = vadd.f32 %v5364_v28, %v2540_v53  ;;  %v2823_v8 = vpack.c.bf16 %v2776_v60, %v2775_v42 }
 0x62a   : > { %v2589_v58 = vmax.f32 %v2541_v10, 0.0  ;;  %2902 = vmatmul.bf16.gmra.mxu2 %v2823_v8 }
 0x62b   : > { %v2703_v3 = vpop.f32.mrf.mxu1 }
 0x62c   : > { %v2627_v43 = vpack.c.bf16 %v2589_v58, %v2588_v6  ;;  %v2704_v33 = vadd.f32 %v5398_v59, %v2703_v3 }
 0x62e   : > { %2742 = vmatmul.bf16.gmra.mxu1 %v2627_v43  ;;  %v2777_v47 = vmax.f32 %v2704_v33, 0.0 }
 0x62f   : > { %v2543_v1 = vpop.f32.mrf.mxu0 }
 0x630   : > { %v2544_v5 = vadd.f32 %v5364_v28, %v2543_v1 }
 0x632   : > { %v2590_v21 = vmax.f32 %v2544_v5, 0.0 }
 0x633   : > { %v2705_v18 = vpop.f32.mrf.mxu1 }
 0x634   : > { %v2706_v62 = vadd.f32 %v5398_v59, %v2705_v18 }
 0x636   : > { %v2778_v50 = vmax.f32 %v2706_v62, 0.0 }
 0x637   : > { %v2545_v56 = vpop.f32.mrf.mxu0 }
 0x638   : > { %v2546_v14 = vadd.f32 %v5364_v28, %v2545_v56  ;;  %v2824_v46 = vpack.c.bf16 %v2778_v50, %v2777_v47 }
 0x63a   : > { %v2591_v30 = vmax.f32 %v2546_v14, 0.0  ;;  %2907 = vmatmul.bf16.gmra.mxu2 %v2824_v46 }
 0x63b   : > { %v2708_v20 = vpop.f32.mrf.mxu1 }
 0x63c   : > { %v2628_v49 = vpack.c.bf16 %v2591_v30, %v2590_v21  ;;  %v2709_v27 = vadd.f32 %v5398_v59, %v2708_v20 }
 0x63e   : > { %2747 = vmatmul.bf16.gmra.mxu1 %v2628_v49  ;;  %v2779_v55 = vmax.f32 %v2709_v27, 0.0 }
 0x63f   : > { %v2548_v25 = vpop.f32.mrf.mxu0 }
 0x640   : > { %v2549_v29 = vadd.f32 %v5364_v28, %v2548_v25 }
 0x642   : > { %v2592_v9 = vmax.f32 %v2549_v29, 0.0 }
 0x643   : > { %v2710_v54 = vpop.f32.mrf.mxu1 }
 0x644   : > { %v2711_v15 = vadd.f32 %v5398_v59, %v2710_v54 }
 0x646   : > { %v2780_v19 = vmax.f32 %v2711_v15, 0.0 }
 0x647   : > { %v2550_v4 = vpop.f32.mrf.mxu0 }
 0x648   : > { %v2551_v51 = vadd.f32 %v5364_v28, %v2550_v4  ;;  %v2825_v36 = vpack.c.bf16 %v2780_v19, %v2779_v55  ;;  %v5432_v19 = vld [vmem:[#allocation5 + $0xa] ss:$0 sm:$0xff] }
 0x64a   : > { %v2593_v48 = vmax.f32 %v2551_v51, 0.0  ;;  %2912 = vmatmul.bf16.gmra.mxu2 %v2825_v36 }
 0x64b   : > { %v2713_v0 = vpop.f32.mrf.mxu1 }
 0x64c   : > { %v2629_v37 = vpack.c.bf16 %v2593_v48, %v2592_v9  ;;  %v2714_v44 = vadd.f32 %v5398_v59, %v2713_v0 }
 0x64e   : > { %2752 = vmatmul.bf16.gmra.mxu1 %v2629_v37  ;;  %v2781_v11 = vmax.f32 %v2714_v44, 0.0 }
 0x64f   : > { %v2553_v13 = vpop.f32.mrf.mxu0 }
 0x650   : > { %v2554_v40 = vadd.f32 %v5364_v28, %v2553_v13 }
 0x652   : > { %v2594_v22 = vmax.f32 %v2554_v40, 0.0 }
 0x653   : > { %v2715_v23 = vpop.f32.mrf.mxu1 }
 0x654   : > { %v2716_v52 = vadd.f32 %v5398_v59, %v2715_v23 }
 0x656   : > { %v2782_v34 = vmax.f32 %v2716_v52, 0.0 }
 0x657   : > { %v2555_v24 = vpop.f32.mrf.mxu0 }
 0x658   : > { %v2826_v61 = vpack.c.bf16 %v2782_v34, %v2781_v11  ;;  %v2556_v16 = vadd.f32 %v5364_v28, %v2555_v24 }
 0x65a   : > { %v2595_v32 = vmax.f32 %v2556_v16, 0.0  ;;  %2917 = vmatmul.bf16.gmra.mxu2 %v2826_v61 }
 0x65b   : > { %v2718_v26 = vpop.f32.mrf.mxu1 }
 0x65c   : > { %v2630_v7 = vpack.c.bf16 %v2595_v32, %v2594_v22  ;;  %v2719_v2 = vadd.f32 %v5398_v59, %v2718_v26 }
 0x65e   : > { %2757 = vmatmul.bf16.gmra.mxu1 %v2630_v7  ;;  %v2783_v41 = vmax.f32 %v2719_v2, 0.0 }
 0x65f   : > { %v2558_v35 = vpop.f32.mrf.mxu0 }
 0x660   : > { %v2559_v57 = vadd.f32 %v5364_v28, %v2558_v35 }
 0x662   : > { %v2596_v42 = vmax.f32 %v2559_v57, 0.0 }
 0x663   : > { %v2720_v17 = vpop.f32.mrf.mxu1 }
 0x664   : > { %v2721_v38 = vadd.f32 %v5398_v59, %v2720_v17 }
 0x666   : > { %v2784_v39 = vmax.f32 %v2721_v38, 0.0 }
 0x667   : > { %v2560_v31 = vpop.f32.mrf.mxu0 }
 0x668   : > { %v2827_v63 = vpack.c.bf16 %v2784_v39, %v2783_v41  ;;  %v2561_v12 = vadd.f32 %v5364_v28, %v2560_v31 }
 0x66a   : > { %v2597_v45 = vmax.f32 %v2561_v12, 0.0  ;;  %2922 = vmatmul.bf16.gmra.mxu2 %v2827_v63 }
 0x66b   : > { %v2723_v60 = vpop.f32.mrf.mxu1 }
 0x66c   : > { %v2631_v53 = vpack.c.bf16 %v2597_v45, %v2596_v42  ;;  %v2724_v8 = vadd.f32 %v5398_v59, %v2723_v60 }
 0x66e   : > { %2762 = vmatmul.bf16.gmra.mxu1 %v2631_v53  ;;  %v2785_v3 = vmax.f32 %v2724_v8, 0.0 }
 0x66f   : > { %v2563_v10 = vpop.f32.mrf.mxu0 }
 0x670   : > { %v2564_v43 = vadd.f32 %v5364_v28, %v2563_v10 }
 0x672   : > { %v2598_v47 = vmax.f32 %v2564_v43, 0.0 }
 0x673   : > { %v2725_v6 = vpop.f32.mrf.mxu1 }
 0x674   : > { %v2726_v58 = vadd.f32 %v5398_v59, %v2725_v6 }
 0x676   : > { %v2786_v1 = vmax.f32 %v2726_v58, 0.0 }
 0x677   : > { %v2565_v33 = vpop.f32.mrf.mxu0 }
 0x678   : > { %v2828_v18 = vpack.c.bf16 %v2786_v1, %v2785_v3  ;;  %v2566_v62 = vadd.f32 %v5364_v28, %v2565_v33 }
 0x67a   : > { %v2599_v5 = vmax.f32 %v2566_v62, 0.0  ;;  %2927 = vmatmul.bf16.gmra.mxu2 %v2828_v18 }
 0x67b   : > { %v2728_v50 = vpop.f32.mrf.mxu1 }
 0x67c   : > { %v2632_v56 = vpack.c.bf16 %v2599_v5, %v2598_v47  ;;  %v2729_v14 = vadd.f32 %v5398_v59, %v2728_v50 }
 0x67e   : > { %2767 = vmatmul.bf16.gmra.mxu1 %v2632_v56  ;;  %v2787_v30 = vmax.f32 %v2729_v14, 0.0 }
 0x683   : > { %v2730_v46 = vpop.f32.mrf.mxu1 }
 0x684   : > { %v2731_v21 = vadd.f32 %v5398_v59, %v2730_v46 }
 0x686   : > { %v2788_v20 = vmax.f32 %v2731_v21, 0.0 }
 0x688   : > { %v2829_v49 = vpack.c.bf16 %v2788_v20, %v2787_v30 }
 0x68a   : > { %2932 = vmatmul.bf16.gmra.mxu2 %v2829_v49 }
 0x68b   : > { %v2733_v25 = vpop.f32.mrf.mxu1 }
 0x68c   : > { %v2734_v27 = vadd.f32 %v5398_v59, %v2733_v25 }
 0x68e   : > { %v2789_v15 = vmax.f32 %v2734_v27, 0.0 }
 0x693   : > { %v2735_v28 = vpop.f32.mrf.mxu1 }
 0x694   : > { %v2736_v54 = vadd.f32 %v5398_v59, %v2735_v28 }
 0x696   : > { %v2790_v55 = vmax.f32 %v2736_v54, 0.0 }
 0x698   : > { %v2830_v29 = vpack.c.bf16 %v2790_v55, %v2789_v15 }
 0x69a   : > { %2937 = vmatmul.bf16.gmra.mxu2 %v2830_v29 }
 0x69b   : > { %v2738_v4 = vpop.f32.mrf.mxu1 }
 0x69c   : > { %v2739_v9 = vadd.f32 %v5398_v59, %v2738_v4 }
 0x69d   : > { %v2898_v51 = vpop.f32.mrf.mxu2 }
 0x69e   : > { %v2899_v36 = vadd.f32 %v5432_v19, %v2898_v51  ;;  %v2791_v13 = vmax.f32 %v2739_v9, 0.0 }
 0x6a0   : > { %2978 = vst [vmem:[%s5437_s2] sm:$0xff] %v2899_v36 }
 0x6a3   : > { %v2740_v48 = vpop.f32.mrf.mxu1 }
 0x6a4   : > { %v2741_v0 = vadd.f32 %v5398_v59, %v2740_v48 }
 0x6a5   : > { %v2900_v37 = vpop.f32.mrf.mxu2 }
 0x6a6   : > { %v2792_v44 = vmax.f32 %v2741_v0, 0.0  ;;  %v2901_v23 = vadd.f32 %v5432_v19, %v2900_v37 }
 0x6a8   : > { %v2831_v52 = vpack.c.bf16 %v2792_v44, %v2791_v13  ;;  %2979 = vst [vmem:[%s5437_s2 + $0x8] sm:$0xff] %v2901_v23 }
 0x6aa   : > { %2942 = vmatmul.bf16.gmra.mxu2 %v2831_v52 }
 0x6ab   : > { %v2743_v11 = vpop.f32.mrf.mxu1 }
 0x6ac   : > { %v2744_v24 = vadd.f32 %v5398_v59, %v2743_v11 }
 0x6ad   : > { %v2903_v40 = vpop.f32.mrf.mxu2 }
 0x6ae   : > { %v2904_v34 = vadd.f32 %v5432_v19, %v2903_v40  ;;  %v2793_v32 = vmax.f32 %v2744_v24, 0.0 }
 0x6b0   : > { %2980 = vst [vmem:[%s5437_s2 + $0x10] sm:$0xff] %v2904_v34 }
 0x6b3   : > { %v2745_v61 = vpop.f32.mrf.mxu1 }
 0x6b4   : > { %v2746_v16 = vadd.f32 %v5398_v59, %v2745_v61 }
 0x6b5   : > { %v2905_v22 = vpop.f32.mrf.mxu2 }
 0x6b6   : > { %v2794_v26 = vmax.f32 %v2746_v16, 0.0  ;;  %v2906_v7 = vadd.f32 %v5432_v19, %v2905_v22 }
 0x6b8   : > { %v2832_v35 = vpack.c.bf16 %v2794_v26, %v2793_v32  ;;  %2981 = vst [vmem:[%s5437_s2 + $0x18] sm:$0xff] %v2906_v7 }
 0x6ba   : > { %2947 = vmatmul.bf16.gmra.mxu2 %v2832_v35 }
 0x6bb   : > { %v2748_v2 = vpop.f32.mrf.mxu1 }
 0x6bc   : > { %v2749_v41 = vadd.f32 %v5398_v59, %v2748_v2 }
 0x6bd   : > { %v2908_v17 = vpop.f32.mrf.mxu2 }
 0x6be   : > { %v2909_v38 = vadd.f32 %v5432_v19, %v2908_v17  ;;  %v2795_v63 = vmax.f32 %v2749_v41, 0.0 }
 0x6c0   : > { %2982 = vst [vmem:[%s5437_s2 + $0x20] sm:$0xff] %v2909_v38 }
 0x6c3   : > { %v2750_v57 = vpop.f32.mrf.mxu1 }
 0x6c4   : > { %v2751_v39 = vadd.f32 %v5398_v59, %v2750_v57 }
 0x6c5   : > { %v2910_v31 = vpop.f32.mrf.mxu2 }
 0x6c6   : > { %v2796_v12 = vmax.f32 %v2751_v39, 0.0  ;;  %v2911_v42 = vadd.f32 %v5432_v19, %v2910_v31 }
 0x6c8   : > { %v2833_v45 = vpack.c.bf16 %v2796_v12, %v2795_v63  ;;  %2983 = vst [vmem:[%s5437_s2 + $0x28] sm:$0xff] %v2911_v42 }
 0x6ca   : > { %2952 = vmatmul.bf16.gmra.mxu2 %v2833_v45 }
 0x6cb   : > { %v2753_v60 = vpop.f32.mrf.mxu1 }
 0x6cc   : > { %v2754_v8 = vadd.f32 %v5398_v59, %v2753_v60 }
 0x6cd   : > { %v2913_v53 = vpop.f32.mrf.mxu2 }
 0x6ce   : > { %v2914_v10 = vadd.f32 %v5432_v19, %v2913_v53  ;;  %v2797_v43 = vmax.f32 %v2754_v8, 0.0 }
 0x6d0   : > { %2984 = vst [vmem:[%s5437_s2 + $0x30] sm:$0xff] %v2914_v10 }
 0x6d3   : > { %v2755_v6 = vpop.f32.mrf.mxu1 }
 0x6d4   : > { %v2756_v58 = vadd.f32 %v5398_v59, %v2755_v6 }
 0x6d5   : > { %v2915_v3 = vpop.f32.mrf.mxu2 }
 0x6d6   : > { %v2798_v1 = vmax.f32 %v2756_v58, 0.0  ;;  %v2916_v33 = vadd.f32 %v5432_v19, %v2915_v3 }
 0x6d8   : > { %v2834_v18 = vpack.c.bf16 %v2798_v1, %v2797_v43  ;;  %2985 = vst [vmem:[%s5437_s2 + $0x38] sm:$0xff] %v2916_v33 }
 0x6da   : > { %2957 = vmatmul.bf16.gmra.mxu2 %v2834_v18 }
 0x6db   : > { %v2758_v62 = vpop.f32.mrf.mxu1 }
 0x6dc   : > { %v2759_v50 = vadd.f32 %v5398_v59, %v2758_v62 }
 0x6dd   : > { %v2918_v47 = vpop.f32.mrf.mxu2 }
 0x6de   : > { %v2919_v5 = vadd.f32 %v5432_v19, %v2918_v47  ;;  %v2799_v21 = vmax.f32 %v2759_v50, 0.0 }
 0x6e0   : > { %2986 = vst [vmem:[%s5437_s2 + $0x40] sm:$0xff] %v2919_v5 }
 0x6e3   : > { %v2760_v56 = vpop.f32.mrf.mxu1 }
 0x6e4   : > { %v2761_v14 = vadd.f32 %v5398_v59, %v2760_v56 }
 0x6e5   : > { %v2920_v46 = vpop.f32.mrf.mxu2 }
 0x6e6   : > { %v2800_v30 = vmax.f32 %v2761_v14, 0.0  ;;  %v2921_v20 = vadd.f32 %v5432_v19, %v2920_v46 }
 0x6e8   : > { %v2835_v49 = vpack.c.bf16 %v2800_v30, %v2799_v21  ;;  %2987 = vst [vmem:[%s5437_s2 + $0x48] sm:$0xff] %v2921_v20 }
 0x6ea   : > { %2962 = vmatmul.bf16.gmra.mxu2 %v2835_v49 }
 0x6eb   : > { %v2763_v25 = vpop.f32.mrf.mxu1 }
 0x6ec   : > { %v2764_v54 = vadd.f32 %v5398_v59, %v2763_v25 }
 0x6ed   : > { %v2923_v27 = vpop.f32.mrf.mxu2 }
 0x6ee   : > { %v2924_v28 = vadd.f32 %v5432_v19, %v2923_v27  ;;  %v2801_v4 = vmax.f32 %v2764_v54, 0.0 }
 0x6f0   : > { %2988 = vst [vmem:[%s5437_s2 + $0x50] sm:$0xff] %v2924_v28 }
 0x6f3   : > { %v2765_v15 = vpop.f32.mrf.mxu1 }
 0x6f4   : > { %v2766_v55 = vadd.f32 %v5398_v59, %v2765_v15 }
 0x6f5   : > { %v2925_v29 = vpop.f32.mrf.mxu2 }
 0x6f6   : > { %v2802_v51 = vmax.f32 %v2766_v55, 0.0  ;;  %v2926_v36 = vadd.f32 %v5432_v19, %v2925_v29 }
 0x6f8   : > { %v2836_v9 = vpack.c.bf16 %v2802_v51, %v2801_v4  ;;  %2989 = vst [vmem:[%s5437_s2 + $0x58] sm:$0xff] %v2926_v36 }
 0x6fa   : > { %2967 = vmatmul.bf16.gmra.mxu2 %v2836_v9 }
 0x6fb   : > { %v2768_v48 = vpop.f32.mrf.mxu1 }
 0x6fc   : > { %v2769_v13 = vadd.f32 %v5398_v59, %v2768_v48 }
 0x6fd   : > { %v2928_v0 = vpop.f32.mrf.mxu2 }
 0x6fe   : > { %v2929_v37 = vadd.f32 %v5432_v19, %v2928_v0  ;;  %v2803_v11 = vmax.f32 %v2769_v13, 0.0 }
 0x700   : > { %2990 = vst [vmem:[%s5437_s2 + $0x60] sm:$0xff] %v2929_v37 }
 0x703   : > { %v2770_v44 = vpop.f32.mrf.mxu1 }
 0x704   : > { %v2771_v23 = vadd.f32 %v5398_v59, %v2770_v44 }
 0x705   : > { %v2930_v52 = vpop.f32.mrf.mxu2 }
 0x706   : > { %v2804_v40 = vmax.f32 %v2771_v23, 0.0  ;;  %v2931_v34 = vadd.f32 %v5432_v19, %v2930_v52 }
 0x708   : > { %v2837_v24 = vpack.c.bf16 %v2804_v40, %v2803_v11  ;;  %2991 = vst [vmem:[%s5437_s2 + $0x68] sm:$0xff] %v2931_v34 }
 0x70a   : > { %2972 = vmatmul.bf16.gmra.mxu2 %v2837_v24 }
 0x70d   : > { %v2933_v61 = vpop.f32.mrf.mxu2 }
 0x70e   : > { %v2934_v16 = vadd.f32 %v5432_v19, %v2933_v61 }
 0x710   : > { %2992 = vst [vmem:[%s5437_s2 + $0x70] sm:$0xff] %v2934_v16 }
 0x715   : > { %v2935_v22 = vpop.f32.mrf.mxu2 }
 0x716   : > { %v2936_v32 = vadd.f32 %v5432_v19, %v2935_v22 }
 0x718   : > { %2993 = vst [vmem:[%s5437_s2 + $0x78] sm:$0xff] %v2936_v32 }
 0x71d   : > { %v2938_v59 = vpop.f32.mrf.mxu2 }
 0x71e   : > { %v2939_v26 = vadd.f32 %v5432_v19, %v2938_v59 }
 0x720   : > { %2994 = vst [vmem:[%s5437_s2 + $0x80] sm:$0xff] %v2939_v26 }
 0x725   : > { %v2940_v7 = vpop.f32.mrf.mxu2 }
 0x726   : > { %v2941_v35 = vadd.f32 %v5432_v19, %v2940_v7 }
 0x728   : > { %2995 = vst [vmem:[%s5437_s2 + $0x88] sm:$0xff] %v2941_v35 }
 0x72d   : > { %v2943_v2 = vpop.f32.mrf.mxu2 }
 0x72e   : > { %v2944_v17 = vadd.f32 %v5432_v19, %v2943_v2 }
 0x730   : > { %2996 = vst [vmem:[%s5437_s2 + $0x90] sm:$0xff] %v2944_v17 }
 0x735   : > { %v2945_v38 = vpop.f32.mrf.mxu2 }
 0x736   : > { %v2946_v41 = vadd.f32 %v5432_v19, %v2945_v38 }
 0x738   : > { %2997 = vst [vmem:[%s5437_s2 + $0x98] sm:$0xff] %v2946_v41 }
 0x73d   : > { %v2948_v57 = vpop.f32.mrf.mxu2 }
 0x73e   : > { %v2949_v39 = vadd.f32 %v5432_v19, %v2948_v57 }
 0x740   : > { %2998 = vst [vmem:[%s5437_s2 + $0xa0] sm:$0xff] %v2949_v39 }
 0x745   : > { %v2950_v31 = vpop.f32.mrf.mxu2 }
 0x746   : > { %v2951_v63 = vadd.f32 %v5432_v19, %v2950_v31 }
 0x748   : > { %2999 = vst [vmem:[%s5437_s2 + $0xa8] sm:$0xff] %v2951_v63 }
 0x74d   : > { %v2953_v12 = vpop.f32.mrf.mxu2 }
 0x74e   : > { %v2954_v42 = vadd.f32 %v5432_v19, %v2953_v12 }
 0x750   : > { %3000 = vst [vmem:[%s5437_s2 + $0xb0] sm:$0xff] %v2954_v42 }
 0x755   : > { %v2955_v45 = vpop.f32.mrf.mxu2 }
 0x756   : > { %v2956_v60 = vadd.f32 %v5432_v19, %v2955_v45 }
 0x758   : > { %3001 = vst [vmem:[%s5437_s2 + $0xb8] sm:$0xff] %v2956_v60 }
 0x75d   : > { %v2958_v53 = vpop.f32.mrf.mxu2 }
 0x75e   : > { %v2959_v10 = vadd.f32 %v5432_v19, %v2958_v53 }
 0x760   : > { %3002 = vst [vmem:[%s5437_s2 + $0xc0] sm:$0xff] %v2959_v10 }
 0x765   : > { %v2960_v8 = vpop.f32.mrf.mxu2 }
 0x766   : > { %v2961_v6 = vadd.f32 %v5432_v19, %v2960_v8 }
 0x768   : > { %3003 = vst [vmem:[%s5437_s2 + $0xc8] sm:$0xff] %v2961_v6 }
 0x76d   : > { %v2963_v58 = vpop.f32.mrf.mxu2 }
 0x76e   : > { %v2964_v3 = vadd.f32 %v5432_v19, %v2963_v58 }
 0x770   : > { %3004 = vst [vmem:[%s5437_s2 + $0xd0] sm:$0xff] %v2964_v3 }
 0x775   : > { %v2965_v43 = vpop.f32.mrf.mxu2 }
 0x776   : > { %v2966_v1 = vadd.f32 %v5432_v19, %v2965_v43 }
 0x778   : > { %3005 = vst [vmem:[%s5437_s2 + $0xd8] sm:$0xff] %v2966_v1 }
 0x77d   : > { %v2968_v33 = vpop.f32.mrf.mxu2 }
 0x77e   : > { %v2969_v18 = vadd.f32 %v5432_v19, %v2968_v33 }
 0x780   : > { %3006 = vst [vmem:[%s5437_s2 + $0xe0] sm:$0xff] %v2969_v18 }
 0x785   : > { %v2970_v62 = vpop.f32.mrf.mxu2 }
 0x786   : > { %v2971_v47 = vadd.f32 %v5432_v19, %v2970_v62 }
 0x788   : > { %3007 = vst [vmem:[%s5437_s2 + $0xe8] sm:$0xff] %v2971_v47 }
 0x78d   : > { %v2973_v5 = vpop.f32.mrf.mxu2 }
 0x78e   : > { %v2974_v50 = vadd.f32 %v5432_v19, %v2973_v5 }
 0x790   : > { %3008 = vst [vmem:[%s5437_s2 + $0xf0] sm:$0xff] %v2974_v50 }
 0x795   : > { %v2975_v56 = vpop.f32.mrf.mxu2 }
 0x796   : > { %v2976_v14 = vadd.f32 %v5432_v19, %v2975_v56 }
 0x798   : > { %3009 = vst [vmem:[%s5437_s2 + $0xf8] sm:$0xff] %v2976_v14 }
 0x799   : > { %4318 = shalt.err (!%p4315_p9)
}
 0x79a   : > { %s4399_s14 = smov 128   ;;  %s4400_s2 = smov 8  }
 0x79b   : > { %3767 = dma.vmem_to_hbm [thread:$0]  (%p4631_p5), %s3024_s18, 4096, %s3026_s23, %s3011_s1, %s4399_s14, %s4399_s14, %s4400_s2  }
 0x79c PF: > { %s3040_s4 = sand.u32 1, %s4369_s25   ;;  %p5638_p10 = scmp.ge.s32.totalorder %s4381_s28, 2 }
 0x79d   : > { %s3041_s16 = scalar_lea.sflag [#allocation4], %s3040_s4 }
 0x79e   : > { %p3811_p13 = pnand %p5638_p10, %p4635_p6 }
 0x7a0   : > { %p3812_p11 = pneg %p3811_p13 }
 0x7a2   : > { %4364 = dma.done.wait (%p3812_p11), %s3041_s16, 4096  }
 0x7a3   : > { %4366 = vsyncadd (%p3812_p11), %s3041_s16, 4294963200  ;;  %p32_p0 = scmp.ge.s32.totalorder %s4605_s29, 4   ;;  %s5639_s25 = smov %s4373_s26 }
 0x7a4   : > { %s5640_s26 = smov %s4377_s27  ;;  %s5641_s27 = smov %s4616_s5 }
 0x7a5   : > { %s5642_s28 = smov %s4605_s29  ;;  %34 = sbr.rel (!%p32_p0) target bundleno = 20 (0x14), region = 165 }
 0x7aa   :  { %3047 = vsyncpa [#allocation3], 1 }
 0x7ab   :  { %3049 = vsyncpa [#allocation3 + $0x1], 1 }
 0x7ac   :  { %3050 = vsyncpa [#allocation6], 1 }
 0x7ad   :  { %3051 = vsyncpa [#allocation9], 1 }
 0x7ae   :  { %3052 = vsyncpa [#allocation12], 1 }
 0x7af   :  { %3053 = vsyncpa [#allocation15], 1 }
 0x7b0   :  { %3054 = vsyncpa [#allocation18], 1 }
 0x7b1   :  { %3055 = vsyncpa [#allocation21], 1 }
 0x7b2   :  { %3056 = vsyncpa [#allocation4], 1 }
 0x7b3   :  { %3058 = vsyncpa [#allocation4 + $0x1], 1 }

</bundles_post_ra>
